<compile_context>
chip_gen: v6e
topology: v6e:2x2x1
jax: 0.10.0
libtpu: 0.0.40
codegen_flags: <defaults>
</compile_context>

<pallas_src>
import jax
import jax.numpy as jnp
import numpy as np
from jax.experimental import pallas as pl
from jax.experimental.pallas import tpu as pltpu

# Small, module-consistent shapes.
B = 4        # batch
T = 8        # sequence length
D_IN = 32    # input_size
H = 32       # hidden_size
O = 16       # output_size
L = 2        # num_layers
P = 4        # pool_size (hidden_size % pool_size == 0)
BN_EPS = 1e-5

assert L >= 2 and H % P == 0 and T * O == 128


def _deep_residual_gru_kernel(xf_ref, w0x_ref, w0h_ref, wf_ref, wexp_ref,
                              bexp_ref, wproj_ref, out_ref):
    f32 = jnp.float32

    # Load weights / hoist broadcasts ONCE, outside the unrolled loops.
    w0h = w0h_ref[...]                                        # (H, 3H)
    wproj = wproj_ref[...]                                    # (H, O)
    wexp = [wexp_ref[i] for i in range(L)]                    # each (H//P, H)
    bexp = [jnp.broadcast_to(bexp_ref[i], (B, H)) for i in range(L)]
    wf = [wf_ref[i] for i in range(L - 1)]                    # each (H, 5H)

    # Hoisted layer-0 input projection for ALL timesteps: one MXU pass.
    # Columns: [gi_r | gi_z | gi_n | residual].
    pre0 = jnp.dot(xf_ref[...], w0x_ref[...],
                   preferred_element_type=f32)                # (T*B, 4H)

    def post_gru(hidden, wexp_i, bexp_i):
        # BatchNorm1d: training-mode (biased) batch statistics, gamma=1, beta=0.
        mean = jnp.mean(hidden, axis=0, keepdims=True)
        var = jnp.mean(jnp.square(hidden - mean), axis=0, keepdims=True)
        hidden = (hidden - mean) * jax.lax.rsqrt(var + BN_EPS)
        hidden = jnp.maximum(hidden, 0.0)                     # ReLU
        # TODO(synk): nn.Dropout(p) omitted (identity / eval semantics), no RNG mask.
        pooled = jnp.max(hidden.reshape(B, H // P, P), axis=-1)  # MaxPool1d(P)
        return jnp.tanh(
            jnp.dot(pooled, wexp_i, preferred_element_type=f32) + bexp_i)

    h = jnp.zeros((B, H), f32)          # torch.zeros(batch, hidden), vreg-carried
    proj_parts = []
    for t in range(T):                  # fully unrolled: T is tiny and static
        # ---- layer 0: GRUCell + residual Linear (x part comes from pre0) ----
        p = pre0[t * B:(t + 1) * B, :]                            # (B, 4H)
        gh = jnp.dot(h, w0h, preferred_element_type=f32)          # (B, 3H)
        r = jax.nn.sigmoid(p[:, 0:H] + gh[:, 0:H])
        z = jax.nn.sigmoid(p[:, H:2 * H] + gh[:, H:2 * H])
        n = jnp.tanh(p[:, 2 * H:3 * H] + r * gh[:, 2 * H:3 * H])
        hidden = (1.0 - z) * n + z * h + p[:, 3 * H:4 * H]
        h = post_gru(hidden, wexp[0], bexp[0])

        # ---- layers 1..L-1: one fused matmul per layer ----
        # The module passes the SAME tensor as GRU input and hidden for every
        # layer after the first, so ih/hh/linear weights were pre-folded into
        # a single (H, 5H) block: [r,z summed | gi_n | residual | gh_n].
        for li in range(1, L):
            g = jnp.dot(h, wf[li - 1], preferred_element_type=f32)   # (B, 5H)
            r = jax.nn.sigmoid(g[:, 0:H])
            z = jax.nn.sigmoid(g[:, H:2 * H])
            n = jnp.tanh(g[:, 2 * H:3 * H] + r * g[:, 4 * H:5 * H])
            hidden = (1.0 - z) * n + z * h + g[:, 3 * H:4 * H]
            h = post_gru(hidden, wexp[li], bexp[li])

        # output[:, t, :] = proj(hidden) of the LAST layer (proj bias == 0).
        proj_parts.append(jnp.dot(h, wproj, preferred_element_type=f32))

    # Single lane-dense store: (B, T*O) == (4, 128) == one full lane width.
    out_ref[...] = jnp.concatenate(proj_parts, axis=1).astype(out_ref.dtype)


def _pack_weights(layer_params, wproj_t):
    """Fold per-layer weights into the kernel's fused slabs (wrapper-side)."""
    wih0, whh0, wlin0, _, _ = layer_params[0]
    w0x = jnp.concatenate([wih0, wlin0], axis=1)              # (D_IN, 4H)
    w0h = whh0                                                # (H, 3H)
    wf = []
    for (wih, whh, wlin, _, _) in layer_params[1:]:
        wf.append(jnp.concatenate([
            wih[:, :2 * H] + whh[:, :2 * H],   # r,z: gi+gh (GRU input == hidden)
            wih[:, 2 * H:3 * H],               # gi_n
            wlin,                              # residual Linear
            whh[:, 2 * H:3 * H],               # gh_n (separate: n uses r * gh_n)
        ], axis=1))
    wf = jnp.stack(wf, axis=0)                                # (L-1, H, 5H)
    wexp = jnp.stack([lp[3] for lp in layer_params], axis=0)  # (L, H//P, H)
    bexp = jnp.stack([lp[4] for lp in layer_params], axis=0)  # (L, 1, H)
    return w0x, w0h, wf, wexp, bexp, wproj_t


def deep_residual_gru(x_btd, layer_params, wproj_t):
    """x_btd: (B, T, D_IN) float32 -> (B, T, O) float32."""
    w0x, w0h, wf, wexp, bexp, wproj = _pack_weights(layer_params, wproj_t)
    # Time-major rows: row t*B + b == x[b, t, :].
    x_flat = jnp.transpose(x_btd, (1, 0, 2)).reshape(T * B, D_IN)

    vmem = pl.BlockSpec(memory_space=pltpu.MemorySpace.VMEM)   # whole array in VMEM
    out_flat = pl.pallas_call(
        _deep_residual_gru_kernel,
        out_shape=jax.ShapeDtypeStruct((B, T * O), jnp.float32),
        in_specs=[vmem] * 7,
        out_specs=vmem,
    )(x_flat, w0x, w0h, wf, wexp, bexp, wproj)

    return out_flat.reshape(B, T, O)


def init_params(key):
    """Deterministic synthetic parameters matching the module's shapes/inits."""
    n_keys = 5 * L + 1
    keys = jax.random.split(key, n_keys)
    k = 0
    layer_params = []
    for i in range(L):
        d_in = D_IN if i == 0 else H
        wih_t = 0.2 * jax.random.normal(keys[k], (d_in, 3 * H), jnp.float32); k += 1
        whh_t = 0.2 * jax.random.normal(keys[k], (H, 3 * H), jnp.float32); k += 1
        wlin_t = 0.2 * jax.random.normal(keys[k], (d_in, H), jnp.float32); k += 1
        wexp_t = 0.2 * jax.random.normal(keys[k], (H // P, H), jnp.float32); k += 1
        bexp = 0.1 * jax.random.normal(keys[k], (1, H), jnp.float32); k += 1
        layer_params.append((wih_t, whh_t, wlin_t, wexp_t, bexp))
    wproj_t = 0.2 * jax.random.normal(keys[k], (H, O), jnp.float32)
    return layer_params, wproj_t


def reference(x_btd, layer_params, wproj_t):
    """Pure-JAX mirror of the PyTorch forward (same assumptions as kernel)."""
    h = jnp.zeros((B, H), jnp.float32)
    outs = []
    for t in range(T):
        inp = x_btd[:, t, :]
        for (wih_t, whh_t, wlin_t, wexp_t, bexp) in layer_params:
            gi = inp @ wih_t
            gh = h @ whh_t
            r = jax.nn.sigmoid(gi[:, :H] + gh[:, :H])
            z = jax.nn.sigmoid(gi[:, H:2 * H] + gh[:, H:2 * H])
            n = jnp.tanh(gi[:, 2 * H:] + r * gh[:, 2 * H:])
            hidden = (1.0 - z) * n + z * h
            hidden = hidden + inp @ wlin_t
            mean = hidden.mean(axis=0, keepdims=True)
            var = ((hidden - mean) ** 2).mean(axis=0, keepdims=True)
            hidden = (hidden - mean) / jnp.sqrt(var + BN_EPS)
            hidden = jnp.maximum(hidden, 0.0)
            pooled = hidden.reshape(B, H // P, P).max(axis=-1)
            h = jnp.tanh(pooled @ wexp_t + bexp)
            inp = h
        outs.append(h @ wproj_t)
    return jnp.stack(outs, axis=1)


if __name__ == "__main__":
    key = jax.random.PRNGKey(0)
    kx, kp = jax.random.split(key)
    x = jax.random.normal(kx, (B, T, D_IN), jnp.float32)
    layer_params, wproj_t = init_params(kp)

    out = jax.jit(deep_residual_gru)(x, layer_params, wproj_t)
    out = jax.block_until_ready(out)

    ref = jax.block_until_ready(reference(x, layer_params, wproj_t))
    np.testing.assert_allclose(np.asarray(out), np.asarray(ref), rtol=2e-3, atol=2e-3)

    print("KERNEL_OK")
</pallas_src>

<mosaic_0001>
module attributes {stable_mosaic.version = 11 : i64} {
  func.func @_deep_residual_gru_kernel(%arg0: memref<32x32xf32, #tpu.memory_space<vmem>>, %arg1: memref<32x128xf32, #tpu.memory_space<vmem>>, %arg2: memref<32x96xf32, #tpu.memory_space<vmem>>, %arg3: memref<1x32x160xf32, #tpu.memory_space<vmem>>, %arg4: memref<2x8x32xf32, #tpu.memory_space<vmem>>, %arg5: memref<2x1x32xf32, #tpu.memory_space<vmem>>, %arg6: memref<32x16xf32, #tpu.memory_space<vmem>>, %arg7: memref<4x128xf32, #tpu.memory_space<vmem>>) attributes {dimension_semantics = [], scalar_prefetch = 0 : i64, scratch_operands = 0 : i64, tpu.core_type = #tpu.core_type<tc>} {
    %c0 = arith.constant 0 : index
    %c0_0 = arith.constant 0 : index
    %0 = vector.load %arg2[%c0, %c0_0] : memref<32x96xf32, #tpu.memory_space<vmem>>, vector<32x96xf32>
    %c0_1 = arith.constant 0 : index
    %c0_2 = arith.constant 0 : index
    %1 = vector.load %arg6[%c0_1, %c0_2] : memref<32x16xf32, #tpu.memory_space<vmem>>, vector<32x16xf32>
    %c0_3 = arith.constant 0 : index
    %c0_4 = arith.constant 0 : index
    %c0_5 = arith.constant 0 : index
    %2 = vector.load %arg4[%c0_3, %c0_4, %c0_5] : memref<2x8x32xf32, #tpu.memory_space<vmem>>, vector<1x8x32xf32>
    %3 = vector.shape_cast %2 : vector<1x8x32xf32> to vector<8x32xf32>
    %c1 = arith.constant 1 : index
    %c0_6 = arith.constant 0 : index
    %c0_7 = arith.constant 0 : index
    %4 = vector.load %arg4[%c1, %c0_6, %c0_7] : memref<2x8x32xf32, #tpu.memory_space<vmem>>, vector<1x8x32xf32>
    %5 = vector.shape_cast %4 : vector<1x8x32xf32> to vector<8x32xf32>
    %c0_8 = arith.constant 0 : index
    %c0_9 = arith.constant 0 : index
    %c0_10 = arith.constant 0 : index
    %6 = vector.load %arg5[%c0_8, %c0_9, %c0_10] : memref<2x1x32xf32, #tpu.memory_space<vmem>>, vector<1x1x32xf32>
    %7 = vector.shape_cast %6 : vector<1x1x32xf32> to vector<1x32xf32>
    %8 = vector.shape_cast %7 : vector<1x32xf32> to vector<1x32xf32>
    %9 = vector.broadcast %8 : vector<1x32xf32> to vector<4x32xf32>
    %c1_11 = arith.constant 1 : index
    %c0_12 = arith.constant 0 : index
    %c0_13 = arith.constant 0 : index
    %10 = vector.load %arg5[%c1_11, %c0_12, %c0_13] : memref<2x1x32xf32, #tpu.memory_space<vmem>>, vector<1x1x32xf32>
    %11 = vector.shape_cast %10 : vector<1x1x32xf32> to vector<1x32xf32>
    %12 = vector.shape_cast %11 : vector<1x32xf32> to vector<1x32xf32>
    %13 = vector.broadcast %12 : vector<1x32xf32> to vector<4x32xf32>
    %c0_14 = arith.constant 0 : index
    %c0_15 = arith.constant 0 : index
    %c0_16 = arith.constant 0 : index
    %14 = vector.load %arg3[%c0_14, %c0_15, %c0_16] : memref<1x32x160xf32, #tpu.memory_space<vmem>>, vector<1x32x160xf32>
    %15 = vector.shape_cast %14 : vector<1x32x160xf32> to vector<32x160xf32>
    %c0_17 = arith.constant 0 : index
    %c0_18 = arith.constant 0 : index
    %16 = vector.load %arg0[%c0_17, %c0_18] : memref<32x32xf32, #tpu.memory_space<vmem>>, vector<32x32xf32>
    %c0_19 = arith.constant 0 : index
    %c0_20 = arith.constant 0 : index
    %17 = vector.load %arg1[%c0_19, %c0_20] : memref<32x128xf32, #tpu.memory_space<vmem>>, vector<32x128xf32>
    %cst = arith.constant dense<0.000000e+00> : vector<32x128xf32>
    %18 = tpu.matmul %16, %17, %cst {dimension_numbers = #tpu.dot_dimension_numbers<[1], [0], [0], [1], [0, 0, 1, 1], [], []>} : vector<32x32xf32>, vector<32x128xf32>, vector<32x128xf32> -> vector<32x128xf32>
    %cst_21 = arith.constant 0.000000e+00 : f32
    %19 = vector.broadcast %cst_21 : f32 to vector<4x32xf32>
    %20 = vector.extract_strided_slice %18 {offsets = [0, 0], sizes = [4, 128], strides = [1, 1]} : vector<32x128xf32> to vector<4x128xf32>
    %cst_22 = arith.constant dense<0.000000e+00> : vector<4x96xf32>
    %21 = tpu.matmul %19, %0, %cst_22 {dimension_numbers = #tpu.dot_dimension_numbers<[1], [0], [0], [1], [0, 0, 1, 1], [], []>} : vector<4x32xf32>, vector<32x96xf32>, vector<4x96xf32> -> vector<4x96xf32>
    %22 = vector.extract_strided_slice %20 {offsets = [0, 0], sizes = [4, 32], strides = [1, 1]} : vector<4x128xf32> to vector<4x32xf32>
    %23 = vector.extract_strided_slice %21 {offsets = [0, 0], sizes = [4, 32], strides = [1, 1]} : vector<4x96xf32> to vector<4x32xf32>
    %24 = arith.addf %22, %23 : vector<4x32xf32>
    %25 = arith.negf %24 : vector<4x32xf32>
    %26 = math.exp %25 : vector<4x32xf32>
    %cst_23 = arith.constant 1.000000e+00 : f32
    %27 = vector.broadcast %cst_23 : f32 to vector<4x32xf32>
    %28 = arith.addf %27, %26 : vector<4x32xf32>
    %29 = arith.divf %27, %28 : vector<4x32xf32>
    %30 = vector.extract_strided_slice %20 {offsets = [0, 32], sizes = [4, 32], strides = [1, 1]} : vector<4x128xf32> to vector<4x32xf32>
    %31 = vector.extract_strided_slice %21 {offsets = [0, 32], sizes = [4, 32], strides = [1, 1]} : vector<4x96xf32> to vector<4x32xf32>
    %32 = arith.addf %30, %31 : vector<4x32xf32>
    %33 = arith.negf %32 : vector<4x32xf32>
    %34 = math.exp %33 : vector<4x32xf32>
    %cst_24 = arith.constant 1.000000e+00 : f32
    %35 = vector.broadcast %cst_24 : f32 to vector<4x32xf32>
    %36 = arith.addf %35, %34 : vector<4x32xf32>
    %37 = arith.divf %35, %36 : vector<4x32xf32>
    %38 = vector.extract_strided_slice %20 {offsets = [0, 64], sizes = [4, 32], strides = [1, 1]} : vector<4x128xf32> to vector<4x32xf32>
    %39 = vector.extract_strided_slice %21 {offsets = [0, 64], sizes = [4, 32], strides = [1, 1]} : vector<4x96xf32> to vector<4x32xf32>
    %40 = arith.mulf %29, %39 : vector<4x32xf32>
    %41 = arith.addf %38, %40 : vector<4x32xf32>
    %42 = math.tanh %41 : vector<4x32xf32>
    %cst_25 = arith.constant 1.000000e+00 : f32
    %43 = vector.broadcast %cst_25 : f32 to vector<4x32xf32>
    %44 = arith.subf %43, %37 : vector<4x32xf32>
    %45 = arith.mulf %44, %42 : vector<4x32xf32>
    %46 = arith.mulf %37, %19 : vector<4x32xf32>
    %47 = arith.addf %45, %46 : vector<4x32xf32>
    %48 = vector.extract_strided_slice %20 {offsets = [0, 96], sizes = [4, 32], strides = [1, 1]} : vector<4x128xf32> to vector<4x32xf32>
    %49 = arith.addf %47, %48 : vector<4x32xf32>
    %cst_26 = arith.constant dense<0.000000e+00> : vector<32xf32>
    %50 = vector.multi_reduction <add>, %49, %cst_26 [0] : vector<4x32xf32> to vector<32xf32>
    %51 = vector.shape_cast %50 : vector<32xf32> to vector<1x32xf32>
    %cst_27 = arith.constant 4.000000e+00 : f32
    %52 = vector.broadcast %cst_27 : f32 to vector<1x32xf32>
    %53 = arith.divf %51, %52 : vector<1x32xf32>
    %54 = vector.broadcast %53 : vector<1x32xf32> to vector<4x32xf32>
    %55 = arith.subf %49, %54 : vector<4x32xf32>
    %56 = arith.mulf %55, %55 : vector<4x32xf32>
    %cst_28 = arith.constant dense<0.000000e+00> : vector<32xf32>
    %57 = vector.multi_reduction <add>, %56, %cst_28 [0] : vector<4x32xf32> to vector<32xf32>
    %58 = vector.shape_cast %57 : vector<32xf32> to vector<1x32xf32>
    %cst_29 = arith.constant 4.000000e+00 : f32
    %59 = vector.broadcast %cst_29 : f32 to vector<1x32xf32>
    %60 = arith.divf %58, %59 : vector<1x32xf32>
    %61 = vector.broadcast %53 : vector<1x32xf32> to vector<4x32xf32>
    %62 = arith.subf %49, %61 : vector<4x32xf32>
    %cst_30 = arith.constant 9.99999974E-6 : f32
    %63 = vector.broadcast %cst_30 : f32 to vector<1x32xf32>
    %64 = arith.addf %60, %63 : vector<1x32xf32>
    %65 = math.rsqrt %64 : vector<1x32xf32>
    %66 = vector.broadcast %65 : vector<1x32xf32> to vector<4x32xf32>
    %67 = arith.mulf %62, %66 : vector<4x32xf32>
    %cst_31 = arith.constant 0.000000e+00 : f32
    %68 = vector.broadcast %cst_31 : f32 to vector<4x32xf32>
    %69 = arith.maximumf %67, %68 : vector<4x32xf32>
    %70 = vector.shape_cast %69 : vector<4x32xf32> to vector<4x8x4xf32>
    %cst_32 = arith.constant dense<0xFF800000> : vector<4x8xf32>
    %71 = vector.multi_reduction <maximumf>, %70, %cst_32 [2] : vector<4x8x4xf32> to vector<4x8xf32>
    %cst_33 = arith.constant dense<0.000000e+00> : vector<4x32xf32>
    %72 = tpu.matmul %71, %3, %cst_33 {dimension_numbers = #tpu.dot_dimension_numbers<[1], [0], [0], [1], [0, 0, 1, 1], [], []>} : vector<4x8xf32>, vector<8x32xf32>, vector<4x32xf32> -> vector<4x32xf32>
    %73 = arith.addf %72, %9 : vector<4x32xf32>
    %74 = math.tanh %73 : vector<4x32xf32>
    %cst_34 = arith.constant dense<0.000000e+00> : vector<4x160xf32>
    %75 = tpu.matmul %74, %15, %cst_34 {dimension_numbers = #tpu.dot_dimension_numbers<[1], [0], [0], [1], [0, 0, 1, 1], [], []>} : vector<4x32xf32>, vector<32x160xf32>, vector<4x160xf32> -> vector<4x160xf32>
    %76 = vector.extract_strided_slice %75 {offsets = [0, 0], sizes = [4, 32], strides = [1, 1]} : vector<4x160xf32> to vector<4x32xf32>
    %77 = arith.negf %76 : vector<4x32xf32>
    %78 = math.exp %77 : vector<4x32xf32>
    %cst_35 = arith.constant 1.000000e+00 : f32
    %79 = vector.broadcast %cst_35 : f32 to vector<4x32xf32>
    %80 = arith.addf %79, %78 : vector<4x32xf32>
    %81 = arith.divf %79, %80 : vector<4x32xf32>
    %82 = vector.extract_strided_slice %75 {offsets = [0, 32], sizes = [4, 32], strides = [1, 1]} : vector<4x160xf32> to vector<4x32xf32>
    %83 = arith.negf %82 : vector<4x32xf32>
    %84 = math.exp %83 : vector<4x32xf32>
    %cst_36 = arith.constant 1.000000e+00 : f32
    %85 = vector.broadcast %cst_36 : f32 to vector<4x32xf32>
    %86 = arith.addf %85, %84 : vector<4x32xf32>
    %87 = arith.divf %85, %86 : vector<4x32xf32>
    %88 = vector.extract_strided_slice %75 {offsets = [0, 64], sizes = [4, 32], strides = [1, 1]} : vector<4x160xf32> to vector<4x32xf32>
    %89 = vector.extract_strided_slice %75 {offsets = [0, 128], sizes = [4, 32], strides = [1, 1]} : vector<4x160xf32> to vector<4x32xf32>
    %90 = arith.mulf %81, %89 : vector<4x32xf32>
    %91 = arith.addf %88, %90 : vector<4x32xf32>
    %92 = math.tanh %91 : vector<4x32xf32>
    %cst_37 = arith.constant 1.000000e+00 : f32
    %93 = vector.broadcast %cst_37 : f32 to vector<4x32xf32>
    %94 = arith.subf %93, %87 : vector<4x32xf32>
    %95 = arith.mulf %94, %92 : vector<4x32xf32>
    %96 = arith.mulf %87, %74 : vector<4x32xf32>
    %97 = arith.addf %95, %96 : vector<4x32xf32>
    %98 = vector.extract_strided_slice %75 {offsets = [0, 96], sizes = [4, 32], strides = [1, 1]} : vector<4x160xf32> to vector<4x32xf32>
    %99 = arith.addf %97, %98 : vector<4x32xf32>
    %cst_38 = arith.constant dense<0.000000e+00> : vector<32xf32>
    %100 = vector.multi_reduction <add>, %99, %cst_38 [0] : vector<4x32xf32> to vector<32xf32>
    %101 = vector.shape_cast %100 : vector<32xf32> to vector<1x32xf32>
    %cst_39 = arith.constant 4.000000e+00 : f32
    %102 = vector.broadcast %cst_39 : f32 to vector<1x32xf32>
    %103 = arith.divf %101, %102 : vector<1x32xf32>
    %104 = vector.broadcast %103 : vector<1x32xf32> to vector<4x32xf32>
    %105 = arith.subf %99, %104 : vector<4x32xf32>
    %106 = arith.mulf %105, %105 : vector<4x32xf32>
    %cst_40 = arith.constant dense<0.000000e+00> : vector<32xf32>
    %107 = vector.multi_reduction <add>, %106, %cst_40 [0] : vector<4x32xf32> to vector<32xf32>
    %108 = vector.shape_cast %107 : vector<32xf32> to vector<1x32xf32>
    %cst_41 = arith.constant 4.000000e+00 : f32
    %109 = vector.broadcast %cst_41 : f32 to vector<1x32xf32>
    %110 = arith.divf %108, %109 : vector<1x32xf32>
    %111 = vector.broadcast %103 : vector<1x32xf32> to vector<4x32xf32>
    %112 = arith.subf %99, %111 : vector<4x32xf32>
    %cst_42 = arith.constant 9.99999974E-6 : f32
    %113 = vector.broadcast %cst_42 : f32 to vector<1x32xf32>
    %114 = arith.addf %110, %113 : vector<1x32xf32>
    %115 = math.rsqrt %114 : vector<1x32xf32>
    %116 = vector.broadcast %115 : vector<1x32xf32> to vector<4x32xf32>
    %117 = arith.mulf %112, %116 : vector<4x32xf32>
    %cst_43 = arith.constant 0.000000e+00 : f32
    %118 = vector.broadcast %cst_43 : f32 to vector<4x32xf32>
    %119 = arith.maximumf %117, %118 : vector<4x32xf32>
    %120 = vector.shape_cast %119 : vector<4x32xf32> to vector<4x8x4xf32>
    %cst_44 = arith.constant dense<0xFF800000> : vector<4x8xf32>
    %121 = vector.multi_reduction <maximumf>, %120, %cst_44 [2] : vector<4x8x4xf32> to vector<4x8xf32>
    %cst_45 = arith.constant dense<0.000000e+00> : vector<4x32xf32>
    %122 = tpu.matmul %121, %5, %cst_45 {dimension_numbers = #tpu.dot_dimension_numbers<[1], [0], [0], [1], [0, 0, 1, 1], [], []>} : vector<4x8xf32>, vector<8x32xf32>, vector<4x32xf32> -> vector<4x32xf32>
    %123 = arith.addf %122, %13 : vector<4x32xf32>
    %124 = math.tanh %123 : vector<4x32xf32>
    %cst_46 = arith.constant dense<0.000000e+00> : vector<4x16xf32>
    %125 = tpu.matmul %124, %1, %cst_46 {dimension_numbers = #tpu.dot_dimension_numbers<[1], [0], [0], [1], [0, 0, 1, 1], [], []>} : vector<4x32xf32>, vector<32x16xf32>, vector<4x16xf32> -> vector<4x16xf32>
    %126 = vector.extract_strided_slice %18 {offsets = [4, 0], sizes = [4, 128], strides = [1, 1]} : vector<32x128xf32> to vector<4x128xf32>
    %cst_47 = arith.constant dense<0.000000e+00> : vector<4x96xf32>
    %127 = tpu.matmul %124, %0, %cst_47 {dimension_numbers = #tpu.dot_dimension_numbers<[1], [0], [0], [1], [0, 0, 1, 1], [], []>} : vector<4x32xf32>, vector<32x96xf32>, vector<4x96xf32> -> vector<4x96xf32>
    %128 = vector.extract_strided_slice %126 {offsets = [0, 0], sizes = [4, 32], strides = [1, 1]} : vector<4x128xf32> to vector<4x32xf32>
    %129 = vector.extract_strided_slice %127 {offsets = [0, 0], sizes = [4, 32], strides = [1, 1]} : vector<4x96xf32> to vector<4x32xf32>
    %130 = arith.addf %128, %129 : vector<4x32xf32>
    %131 = arith.negf %130 : vector<4x32xf32>
    %132 = math.exp %131 : vector<4x32xf32>
    %cst_48 = arith.constant 1.000000e+00 : f32
    %133 = vector.broadcast %cst_48 : f32 to vector<4x32xf32>
    %134 = arith.addf %133, %132 : vector<4x32xf32>
    %135 = arith.divf %133, %134 : vector<4x32xf32>
    %136 = vector.extract_strided_slice %126 {offsets = [0, 32], sizes = [4, 32], strides = [1, 1]} : vector<4x128xf32> to vector<4x32xf32>
    %137 = vector.extract_strided_slice %127 {offsets = [0, 32], sizes = [4, 32], strides = [1, 1]} : vector<4x96xf32> to vector<4x32xf32>
    %138 = arith.addf %136, %137 : vector<4x32xf32>
    %139 = arith.negf %138 : vector<4x32xf32>
    %140 = math.exp %139 : vector<4x32xf32>
    %cst_49 = arith.constant 1.000000e+00 : f32
    %141 = vector.broadcast %cst_49 : f32 to vector<4x32xf32>
    %142 = arith.addf %141, %140 : vector<4x32xf32>
    %143 = arith.divf %141, %142 : vector<4x32xf32>
    %144 = vector.extract_strided_slice %126 {offsets = [0, 64], sizes = [4, 32], strides = [1, 1]} : vector<4x128xf32> to vector<4x32xf32>
    %145 = vector.extract_strided_slice %127 {offsets = [0, 64], sizes = [4, 32], strides = [1, 1]} : vector<4x96xf32> to vector<4x32xf32>
    %146 = arith.mulf %135, %145 : vector<4x32xf32>
    %147 = arith.addf %144, %146 : vector<4x32xf32>
    %148 = math.tanh %147 : vector<4x32xf32>
    %cst_50 = arith.constant 1.000000e+00 : f32
    %149 = vector.broadcast %cst_50 : f32 to vector<4x32xf32>
    %150 = arith.subf %149, %143 : vector<4x32xf32>
    %151 = arith.mulf %150, %148 : vector<4x32xf32>
    %152 = arith.mulf %143, %124 : vector<4x32xf32>
    %153 = arith.addf %151, %152 : vector<4x32xf32>
    %154 = vector.extract_strided_slice %126 {offsets = [0, 96], sizes = [4, 32], strides = [1, 1]} : vector<4x128xf32> to vector<4x32xf32>
    %155 = arith.addf %153, %154 : vector<4x32xf32>
    %cst_51 = arith.constant dense<0.000000e+00> : vector<32xf32>
    %156 = vector.multi_reduction <add>, %155, %cst_51 [0] : vector<4x32xf32> to vector<32xf32>
    %157 = vector.shape_cast %156 : vector<32xf32> to vector<1x32xf32>
    %cst_52 = arith.constant 4.000000e+00 : f32
    %158 = vector.broadcast %cst_52 : f32 to vector<1x32xf32>
    %159 = arith.divf %157, %158 : vector<1x32xf32>
    %160 = vector.broadcast %159 : vector<1x32xf32> to vector<4x32xf32>
    %161 = arith.subf %155, %160 : vector<4x32xf32>
    %162 = arith.mulf %161, %161 : vector<4x32xf32>
    %cst_53 = arith.constant dense<0.000000e+00> : vector<32xf32>
    %163 = vector.multi_reduction <add>, %162, %cst_53 [0] : vector<4x32xf32> to vector<32xf32>
    %164 = vector.shape_cast %163 : vector<32xf32> to vector<1x32xf32>
    %cst_54 = arith.constant 4.000000e+00 : f32
    %165 = vector.broadcast %cst_54 : f32 to vector<1x32xf32>
    %166 = arith.divf %164, %165 : vector<1x32xf32>
    %167 = vector.broadcast %159 : vector<1x32xf32> to vector<4x32xf32>
    %168 = arith.subf %155, %167 : vector<4x32xf32>
    %cst_55 = arith.constant 9.99999974E-6 : f32
    %169 = vector.broadcast %cst_55 : f32 to vector<1x32xf32>
    %170 = arith.addf %166, %169 : vector<1x32xf32>
    %171 = math.rsqrt %170 : vector<1x32xf32>
    %172 = vector.broadcast %171 : vector<1x32xf32> to vector<4x32xf32>
    %173 = arith.mulf %168, %172 : vector<4x32xf32>
    %cst_56 = arith.constant 0.000000e+00 : f32
    %174 = vector.broadcast %cst_56 : f32 to vector<4x32xf32>
    %175 = arith.maximumf %173, %174 : vector<4x32xf32>
    %176 = vector.shape_cast %175 : vector<4x32xf32> to vector<4x8x4xf32>
    %cst_57 = arith.constant dense<0xFF800000> : vector<4x8xf32>
    %177 = vector.multi_reduction <maximumf>, %176, %cst_57 [2] : vector<4x8x4xf32> to vector<4x8xf32>
    %cst_58 = arith.constant dense<0.000000e+00> : vector<4x32xf32>
    %178 = tpu.matmul %177, %3, %cst_58 {dimension_numbers = #tpu.dot_dimension_numbers<[1], [0], [0], [1], [0, 0, 1, 1], [], []>} : vector<4x8xf32>, vector<8x32xf32>, vector<4x32xf32> -> vector<4x32xf32>
    %179 = arith.addf %178, %9 : vector<4x32xf32>
    %180 = math.tanh %179 : vector<4x32xf32>
    %cst_59 = arith.constant dense<0.000000e+00> : vector<4x160xf32>
    %181 = tpu.matmul %180, %15, %cst_59 {dimension_numbers = #tpu.dot_dimension_numbers<[1], [0], [0], [1], [0, 0, 1, 1], [], []>} : vector<4x32xf32>, vector<32x160xf32>, vector<4x160xf32> -> vector<4x160xf32>
    %182 = vector.extract_strided_slice %181 {offsets = [0, 0], sizes = [4, 32], strides = [1, 1]} : vector<4x160xf32> to vector<4x32xf32>
    %183 = arith.negf %182 : vector<4x32xf32>
    %184 = math.exp %183 : vector<4x32xf32>
    %cst_60 = arith.constant 1.000000e+00 : f32
    %185 = vector.broadcast %cst_60 : f32 to vector<4x32xf32>
    %186 = arith.addf %185, %184 : vector<4x32xf32>
    %187 = arith.divf %185, %186 : vector<4x32xf32>
    %188 = vector.extract_strided_slice %181 {offsets = [0, 32], sizes = [4, 32], strides = [1, 1]} : vector<4x160xf32> to vector<4x32xf32>
    %189 = arith.negf %188 : vector<4x32xf32>
    %190 = math.exp %189 : vector<4x32xf32>
    %cst_61 = arith.constant 1.000000e+00 : f32
    %191 = vector.broadcast %cst_61 : f32 to vector<4x32xf32>
    %192 = arith.addf %191, %190 : vector<4x32xf32>
    %193 = arith.divf %191, %192 : vector<4x32xf32>
    %194 = vector.extract_strided_slice %181 {offsets = [0, 64], sizes = [4, 32], strides = [1, 1]} : vector<4x160xf32> to vector<4x32xf32>
    %195 = vector.extract_strided_slice %181 {offsets = [0, 128], sizes = [4, 32], strides = [1, 1]} : vector<4x160xf32> to vector<4x32xf32>
    %196 = arith.mulf %187, %195 : vector<4x32xf32>
    %197 = arith.addf %194, %196 : vector<4x32xf32>
    %198 = math.tanh %197 : vector<4x32xf32>
    %cst_62 = arith.constant 1.000000e+00 : f32
    %199 = vector.broadcast %cst_62 : f32 to vector<4x32xf32>
    %200 = arith.subf %199, %193 : vector<4x32xf32>
    %201 = arith.mulf %200, %198 : vector<4x32xf32>
    %202 = arith.mulf %193, %180 : vector<4x32xf32>
    %203 = arith.addf %201, %202 : vector<4x32xf32>
    %204 = vector.extract_strided_slice %181 {offsets = [0, 96], sizes = [4, 32], strides = [1, 1]} : vector<4x160xf32> to vector<4x32xf32>
    %205 = arith.addf %203, %204 : vector<4x32xf32>
    %cst_63 = arith.constant dense<0.000000e+00> : vector<32xf32>
    %206 = vector.multi_reduction <add>, %205, %cst_63 [0] : vector<4x32xf32> to vector<32xf32>
    %207 = vector.shape_cast %206 : vector<32xf32> to vector<1x32xf32>
    %cst_64 = arith.constant 4.000000e+00 : f32
    %208 = vector.broadcast %cst_64 : f32 to vector<1x32xf32>
    %209 = arith.divf %207, %208 : vector<1x32xf32>
    %210 = vector.broadcast %209 : vector<1x32xf32> to vector<4x32xf32>
    %211 = arith.subf %205, %210 : vector<4x32xf32>
    %212 = arith.mulf %211, %211 : vector<4x32xf32>
    %cst_65 = arith.constant dense<0.000000e+00> : vector<32xf32>
    %213 = vector.multi_reduction <add>, %212, %cst_65 [0] : vector<4x32xf32> to vector<32xf32>
    %214 = vector.shape_cast %213 : vector<32xf32> to vector<1x32xf32>
    %cst_66 = arith.constant 4.000000e+00 : f32
    %215 = vector.broadcast %cst_66 : f32 to vector<1x32xf32>
    %216 = arith.divf %214, %215 : vector<1x32xf32>
    %217 = vector.broadcast %209 : vector<1x32xf32> to vector<4x32xf32>
    %218 = arith.subf %205, %217 : vector<4x32xf32>
    %cst_67 = arith.constant 9.99999974E-6 : f32
    %219 = vector.broadcast %cst_67 : f32 to vector<1x32xf32>
    %220 = arith.addf %216, %219 : vector<1x32xf32>
    %221 = math.rsqrt %220 : vector<1x32xf32>
    %222 = vector.broadcast %221 : vector<1x32xf32> to vector<4x32xf32>
    %223 = arith.mulf %218, %222 : vector<4x32xf32>
    %cst_68 = arith.constant 0.000000e+00 : f32
    %224 = vector.broadcast %cst_68 : f32 to vector<4x32xf32>
    %225 = arith.maximumf %223, %224 : vector<4x32xf32>
    %226 = vector.shape_cast %225 : vector<4x32xf32> to vector<4x8x4xf32>
    %cst_69 = arith.constant dense<0xFF800000> : vector<4x8xf32>
    %227 = vector.multi_reduction <maximumf>, %226, %cst_69 [2] : vector<4x8x4xf32> to vector<4x8xf32>
    %cst_70 = arith.constant dense<0.000000e+00> : vector<4x32xf32>
    %228 = tpu.matmul %227, %5, %cst_70 {dimension_numbers = #tpu.dot_dimension_numbers<[1], [0], [0], [1], [0, 0, 1, 1], [], []>} : vector<4x8xf32>, vector<8x32xf32>, vector<4x32xf32> -> vector<4x32xf32>
    %229 = arith.addf %228, %13 : vector<4x32xf32>
    %230 = math.tanh %229 : vector<4x32xf32>
    %cst_71 = arith.constant dense<0.000000e+00> : vector<4x16xf32>
    %231 = tpu.matmul %230, %1, %cst_71 {dimension_numbers = #tpu.dot_dimension_numbers<[1], [0], [0], [1], [0, 0, 1, 1], [], []>} : vector<4x32xf32>, vector<32x16xf32>, vector<4x16xf32> -> vector<4x16xf32>
    %232 = vector.extract_strided_slice %18 {offsets = [8, 0], sizes = [4, 128], strides = [1, 1]} : vector<32x128xf32> to vector<4x128xf32>
    %cst_72 = arith.constant dense<0.000000e+00> : vector<4x96xf32>
    %233 = tpu.matmul %230, %0, %cst_72 {dimension_numbers = #tpu.dot_dimension_numbers<[1], [0], [0], [1], [0, 0, 1, 1], [], []>} : vector<4x32xf32>, vector<32x96xf32>, vector<4x96xf32> -> vector<4x96xf32>
    %234 = vector.extract_strided_slice %232 {offsets = [0, 0], sizes = [4, 32], strides = [1, 1]} : vector<4x128xf32> to vector<4x32xf32>
    %235 = vector.extract_strided_slice %233 {offsets = [0, 0], sizes = [4, 32], strides = [1, 1]} : vector<4x96xf32> to vector<4x32xf32>
    %236 = arith.addf %234, %235 : vector<4x32xf32>
    %237 = arith.negf %236 : vector<4x32xf32>
    %238 = math.exp %237 : vector<4x32xf32>
    %cst_73 = arith.constant 1.000000e+00 : f32
    %239 = vector.broadcast %cst_73 : f32 to vector<4x32xf32>
    %240 = arith.addf %239, %238 : vector<4x32xf32>
    %241 = arith.divf %239, %240 : vector<4x32xf32>
    %242 = vector.extract_strided_slice %232 {offsets = [0, 32], sizes = [4, 32], strides = [1, 1]} : vector<4x128xf32> to vector<4x32xf32>
    %243 = vector.extract_strided_slice %233 {offsets = [0, 32], sizes = [4, 32], strides = [1, 1]} : vector<4x96xf32> to vector<4x32xf32>
    %244 = arith.addf %242, %243 : vector<4x32xf32>
    %245 = arith.negf %244 : vector<4x32xf32>
    %246 = math.exp %245 : vector<4x32xf32>
    %cst_74 = arith.constant 1.000000e+00 : f32
    %247 = vector.broadcast %cst_74 : f32 to vector<4x32xf32>
    %248 = arith.addf %247, %246 : vector<4x32xf32>
    %249 = arith.divf %247, %248 : vector<4x32xf32>
    %250 = vector.extract_strided_slice %232 {offsets = [0, 64], sizes = [4, 32], strides = [1, 1]} : vector<4x128xf32> to vector<4x32xf32>
    %251 = vector.extract_strided_slice %233 {offsets = [0, 64], sizes = [4, 32], strides = [1, 1]} : vector<4x96xf32> to vector<4x32xf32>
    %252 = arith.mulf %241, %251 : vector<4x32xf32>
    %253 = arith.addf %250, %252 : vector<4x32xf32>
    %254 = math.tanh %253 : vector<4x32xf32>
    %cst_75 = arith.constant 1.000000e+00 : f32
    %255 = vector.broadcast %cst_75 : f32 to vector<4x32xf32>
    %256 = arith.subf %255, %249 : vector<4x32xf32>
    %257 = arith.mulf %256, %254 : vector<4x32xf32>
    %258 = arith.mulf %249, %230 : vector<4x32xf32>
    %259 = arith.addf %257, %258 : vector<4x32xf32>
    %260 = vector.extract_strided_slice %232 {offsets = [0, 96], sizes = [4, 32], strides = [1, 1]} : vector<4x128xf32> to vector<4x32xf32>
    %261 = arith.addf %259, %260 : vector<4x32xf32>
    %cst_76 = arith.constant dense<0.000000e+00> : vector<32xf32>
    %262 = vector.multi_reduction <add>, %261, %cst_76 [0] : vector<4x32xf32> to vector<32xf32>
    %263 = vector.shape_cast %262 : vector<32xf32> to vector<1x32xf32>
    %cst_77 = arith.constant 4.000000e+00 : f32
    %264 = vector.broadcast %cst_77 : f32 to vector<1x32xf32>
    %265 = arith.divf %263, %264 : vector<1x32xf32>
    %266 = vector.broadcast %265 : vector<1x32xf32> to vector<4x32xf32>
    %267 = arith.subf %261, %266 : vector<4x32xf32>
    %268 = arith.mulf %267, %267 : vector<4x32xf32>
    %cst_78 = arith.constant dense<0.000000e+00> : vector<32xf32>
    %269 = vector.multi_reduction <add>, %268, %cst_78 [0] : vector<4x32xf32> to vector<32xf32>
    %270 = vector.shape_cast %269 : vector<32xf32> to vector<1x32xf32>
    %cst_79 = arith.constant 4.000000e+00 : f32
    %271 = vector.broadcast %cst_79 : f32 to vector<1x32xf32>
    %272 = arith.divf %270, %271 : vector<1x32xf32>
    %273 = vector.broadcast %265 : vector<1x32xf32> to vector<4x32xf32>
    %274 = arith.subf %261, %273 : vector<4x32xf32>
    %cst_80 = arith.constant 9.99999974E-6 : f32
    %275 = vector.broadcast %cst_80 : f32 to vector<1x32xf32>
    %276 = arith.addf %272, %275 : vector<1x32xf32>
    %277 = math.rsqrt %276 : vector<1x32xf32>
    %278 = vector.broadcast %277 : vector<1x32xf32> to vector<4x32xf32>
    %279 = arith.mulf %274, %278 : vector<4x32xf32>
    %cst_81 = arith.constant 0.000000e+00 : f32
    %280 = vector.broadcast %cst_81 : f32 to vector<4x32xf32>
    %281 = arith.maximumf %279, %280 : vector<4x32xf32>
    %282 = vector.shape_cast %281 : vector<4x32xf32> to vector<4x8x4xf32>
    %cst_82 = arith.constant dense<0xFF800000> : vector<4x8xf32>
    %283 = vector.multi_reduction <maximumf>, %282, %cst_82 [2] : vector<4x8x4xf32> to vector<4x8xf32>
    %cst_83 = arith.constant dense<0.000000e+00> : vector<4x32xf32>
    %284 = tpu.matmul %283, %3, %cst_83 {dimension_numbers = #tpu.dot_dimension_numbers<[1], [0], [0], [1], [0, 0, 1, 1], [], []>} : vector<4x8xf32>, vector<8x32xf32>, vector<4x32xf32> -> vector<4x32xf32>
    %285 = arith.addf %284, %9 : vector<4x32xf32>
    %286 = math.tanh %285 : vector<4x32xf32>
    %cst_84 = arith.constant dense<0.000000e+00> : vector<4x160xf32>
    %287 = tpu.matmul %286, %15, %cst_84 {dimension_numbers = #tpu.dot_dimension_numbers<[1], [0], [0], [1], [0, 0, 1, 1], [], []>} : vector<4x32xf32>, vector<32x160xf32>, vector<4x160xf32> -> vector<4x160xf32>
    %288 = vector.extract_strided_slice %287 {offsets = [0, 0], sizes = [4, 32], strides = [1, 1]} : vector<4x160xf32> to vector<4x32xf32>
    %289 = arith.negf %288 : vector<4x32xf32>
    %290 = math.exp %289 : vector<4x32xf32>
    %cst_85 = arith.constant 1.000000e+00 : f32
    %291 = vector.broadcast %cst_85 : f32 to vector<4x32xf32>
    %292 = arith.addf %291, %290 : vector<4x32xf32>
    %293 = arith.divf %291, %292 : vector<4x32xf32>
    %294 = vector.extract_strided_slice %287 {offsets = [0, 32], sizes = [4, 32], strides = [1, 1]} : vector<4x160xf32> to vector<4x32xf32>
    %295 = arith.negf %294 : vector<4x32xf32>
    %296 = math.exp %295 : vector<4x32xf32>
    %cst_86 = arith.constant 1.000000e+00 : f32
    %297 = vector.broadcast %cst_86 : f32 to vector<4x32xf32>
    %298 = arith.addf %297, %296 : vector<4x32xf32>
    %299 = arith.divf %297, %298 : vector<4x32xf32>
    %300 = vector.extract_strided_slice %287 {offsets = [0, 64], sizes = [4, 32], strides = [1, 1]} : vector<4x160xf32> to vector<4x32xf32>
    %301 = vector.extract_strided_slice %287 {offsets = [0, 128], sizes = [4, 32], strides = [1, 1]} : vector<4x160xf32> to vector<4x32xf32>
    %302 = arith.mulf %293, %301 : vector<4x32xf32>
    %303 = arith.addf %300, %302 : vector<4x32xf32>
    %304 = math.tanh %303 : vector<4x32xf32>
    %cst_87 = arith.constant 1.000000e+00 : f32
    %305 = vector.broadcast %cst_87 : f32 to vector<4x32xf32>
    %306 = arith.subf %305, %299 : vector<4x32xf32>
    %307 = arith.mulf %306, %304 : vector<4x32xf32>
    %308 = arith.mulf %299, %286 : vector<4x32xf32>
    %309 = arith.addf %307, %308 : vector<4x32xf32>
    %310 = vector.extract_strided_slice %287 {offsets = [0, 96], sizes = [4, 32], strides = [1, 1]} : vector<4x160xf32> to vector<4x32xf32>
    %311 = arith.addf %309, %310 : vector<4x32xf32>
    %cst_88 = arith.constant dense<0.000000e+00> : vector<32xf32>
    %312 = vector.multi_reduction <add>, %311, %cst_88 [0] : vector<4x32xf32> to vector<32xf32>
    %313 = vector.shape_cast %312 : vector<32xf32> to vector<1x32xf32>
    %cst_89 = arith.constant 4.000000e+00 : f32
    %314 = vector.broadcast %cst_89 : f32 to vector<1x32xf32>
    %315 = arith.divf %313, %314 : vector<1x32xf32>
    %316 = vector.broadcast %315 : vector<1x32xf32> to vector<4x32xf32>
    %317 = arith.subf %311, %316 : vector<4x32xf32>
    %318 = arith.mulf %317, %317 : vector<4x32xf32>
    %cst_90 = arith.constant dense<0.000000e+00> : vector<32xf32>
    %319 = vector.multi_reduction <add>, %318, %cst_90 [0] : vector<4x32xf32> to vector<32xf32>
    %320 = vector.shape_cast %319 : vector<32xf32> to vector<1x32xf32>
    %cst_91 = arith.constant 4.000000e+00 : f32
    %321 = vector.broadcast %cst_91 : f32 to vector<1x32xf32>
    %322 = arith.divf %320, %321 : vector<1x32xf32>
    %323 = vector.broadcast %315 : vector<1x32xf32> to vector<4x32xf32>
    %324 = arith.subf %311, %323 : vector<4x32xf32>
    %cst_92 = arith.constant 9.99999974E-6 : f32
    %325 = vector.broadcast %cst_92 : f32 to vector<1x32xf32>
    %326 = arith.addf %322, %325 : vector<1x32xf32>
    %327 = math.rsqrt %326 : vector<1x32xf32>
    %328 = vector.broadcast %327 : vector<1x32xf32> to vector<4x32xf32>
    %329 = arith.mulf %324, %328 : vector<4x32xf32>
    %cst_93 = arith.constant 0.000000e+00 : f32
    %330 = vector.broadcast %cst_93 : f32 to vector<4x32xf32>
    %331 = arith.maximumf %329, %330 : vector<4x32xf32>
    %332 = vector.shape_cast %331 : vector<4x32xf32> to vector<4x8x4xf32>
    %cst_94 = arith.constant dense<0xFF800000> : vector<4x8xf32>
    %333 = vector.multi_reduction <maximumf>, %332, %cst_94 [2] : vector<4x8x4xf32> to vector<4x8xf32>
    %cst_95 = arith.constant dense<0.000000e+00> : vector<4x32xf32>
    %334 = tpu.matmul %333, %5, %cst_95 {dimension_numbers = #tpu.dot_dimension_numbers<[1], [0], [0], [1], [0, 0, 1, 1], [], []>} : vector<4x8xf32>, vector<8x32xf32>, vector<4x32xf32> -> vector<4x32xf32>
    %335 = arith.addf %334, %13 : vector<4x32xf32>
    %336 = math.tanh %335 : vector<4x32xf32>
    %cst_96 = arith.constant dense<0.000000e+00> : vector<4x16xf32>
    %337 = tpu.matmul %336, %1, %cst_96 {dimension_numbers = #tpu.dot_dimension_numbers<[1], [0], [0], [1], [0, 0, 1, 1], [], []>} : vector<4x32xf32>, vector<32x16xf32>, vector<4x16xf32> -> vector<4x16xf32>
    %338 = vector.extract_strided_slice %18 {offsets = [12, 0], sizes = [4, 128], strides = [1, 1]} : vector<32x128xf32> to vector<4x128xf32>
    %cst_97 = arith.constant dense<0.000000e+00> : vector<4x96xf32>
    %339 = tpu.matmul %336, %0, %cst_97 {dimension_numbers = #tpu.dot_dimension_numbers<[1], [0], [0], [1], [0, 0, 1, 1], [], []>} : vector<4x32xf32>, vector<32x96xf32>, vector<4x96xf32> -> vector<4x96xf32>
    %340 = vector.extract_strided_slice %338 {offsets = [0, 0], sizes = [4, 32], strides = [1, 1]} : vector<4x128xf32> to vector<4x32xf32>
    %341 = vector.extract_strided_slice %339 {offsets = [0, 0], sizes = [4, 32], strides = [1, 1]} : vector<4x96xf32> to vector<4x32xf32>
    %342 = arith.addf %340, %341 : vector<4x32xf32>
    %343 = arith.negf %342 : vector<4x32xf32>
    %344 = math.exp %343 : vector<4x32xf32>
    %cst_98 = arith.constant 1.000000e+00 : f32
    %345 = vector.broadcast %cst_98 : f32 to vector<4x32xf32>
    %346 = arith.addf %345, %344 : vector<4x32xf32>
    %347 = arith.divf %345, %346 : vector<4x32xf32>
    %348 = vector.extract_strided_slice %338 {offsets = [0, 32], sizes = [4, 32], strides = [1, 1]} : vector<4x128xf32> to vector<4x32xf32>
    %349 = vector.extract_strided_slice %339 {offsets = [0, 32], sizes = [4, 32], strides = [1, 1]} : vector<4x96xf32> to vector<4x32xf32>
    %350 = arith.addf %348, %349 : vector<4x32xf32>
    %351 = arith.negf %350 : vector<4x32xf32>
    %352 = math.exp %351 : vector<4x32xf32>
    %cst_99 = arith.constant 1.000000e+00 : f32
    %353 = vector.broadcast %cst_99 : f32 to vector<4x32xf32>
    %354 = arith.addf %353, %352 : vector<4x32xf32>
    %355 = arith.divf %353, %354 : vector<4x32xf32>
    %356 = vector.extract_strided_slice %338 {offsets = [0, 64], sizes = [4, 32], strides = [1, 1]} : vector<4x128xf32> to vector<4x32xf32>
    %357 = vector.extract_strided_slice %339 {offsets = [0, 64], sizes = [4, 32], strides = [1, 1]} : vector<4x96xf32> to vector<4x32xf32>
    %358 = arith.mulf %347, %357 : vector<4x32xf32>
    %359 = arith.addf %356, %358 : vector<4x32xf32>
    %360 = math.tanh %359 : vector<4x32xf32>
    %cst_100 = arith.constant 1.000000e+00 : f32
    %361 = vector.broadcast %cst_100 : f32 to vector<4x32xf32>
    %362 = arith.subf %361, %355 : vector<4x32xf32>
    %363 = arith.mulf %362, %360 : vector<4x32xf32>
    %364 = arith.mulf %355, %336 : vector<4x32xf32>
    %365 = arith.addf %363, %364 : vector<4x32xf32>
    %366 = vector.extract_strided_slice %338 {offsets = [0, 96], sizes = [4, 32], strides = [1, 1]} : vector<4x128xf32> to vector<4x32xf32>
    %367 = arith.addf %365, %366 : vector<4x32xf32>
    %cst_101 = arith.constant dense<0.000000e+00> : vector<32xf32>
    %368 = vector.multi_reduction <add>, %367, %cst_101 [0] : vector<4x32xf32> to vector<32xf32>
    %369 = vector.shape_cast %368 : vector<32xf32> to vector<1x32xf32>
    %cst_102 = arith.constant 4.000000e+00 : f32
    %370 = vector.broadcast %cst_102 : f32 to vector<1x32xf32>
    %371 = arith.divf %369, %370 : vector<1x32xf32>
    %372 = vector.broadcast %371 : vector<1x32xf32> to vector<4x32xf32>
    %373 = arith.subf %367, %372 : vector<4x32xf32>
    %374 = arith.mulf %373, %373 : vector<4x32xf32>
    %cst_103 = arith.constant dense<0.000000e+00> : vector<32xf32>
    %375 = vector.multi_reduction <add>, %374, %cst_103 [0] : vector<4x32xf32> to vector<32xf32>
    %376 = vector.shape_cast %375 : vector<32xf32> to vector<1x32xf32>
    %cst_104 = arith.constant 4.000000e+00 : f32
    %377 = vector.broadcast %cst_104 : f32 to vector<1x32xf32>
    %378 = arith.divf %376, %377 : vector<1x32xf32>
    %379 = vector.broadcast %371 : vector<1x32xf32> to vector<4x32xf32>
    %380 = arith.subf %367, %379 : vector<4x32xf32>
    %cst_105 = arith.constant 9.99999974E-6 : f32
    %381 = vector.broadcast %cst_105 : f32 to vector<1x32xf32>
    %382 = arith.addf %378, %381 : vector<1x32xf32>
    %383 = math.rsqrt %382 : vector<1x32xf32>
    %384 = vector.broadcast %383 : vector<1x32xf32> to vector<4x32xf32>
    %385 = arith.mulf %380, %384 : vector<4x32xf32>
    %cst_106 = arith.constant 0.000000e+00 : f32
    %386 = vector.broadcast %cst_106 : f32 to vector<4x32xf32>
    %387 = arith.maximumf %385, %386 : vector<4x32xf32>
    %388 = vector.shape_cast %387 : vector<4x32xf32> to vector<4x8x4xf32>
    %cst_107 = arith.constant dense<0xFF800000> : vector<4x8xf32>
    %389 = vector.multi_reduction <maximumf>, %388, %cst_107 [2] : vector<4x8x4xf32> to vector<4x8xf32>
    %cst_108 = arith.constant dense<0.000000e+00> : vector<4x32xf32>
    %390 = tpu.matmul %389, %3, %cst_108 {dimension_numbers = #tpu.dot_dimension_numbers<[1], [0], [0], [1], [0, 0, 1, 1], [], []>} : vector<4x8xf32>, vector<8x32xf32>, vector<4x32xf32> -> vector<4x32xf32>
    %391 = arith.addf %390, %9 : vector<4x32xf32>
    %392 = math.tanh %391 : vector<4x32xf32>
    %cst_109 = arith.constant dense<0.000000e+00> : vector<4x160xf32>
    %393 = tpu.matmul %392, %15, %cst_109 {dimension_numbers = #tpu.dot_dimension_numbers<[1], [0], [0], [1], [0, 0, 1, 1], [], []>} : vector<4x32xf32>, vector<32x160xf32>, vector<4x160xf32> -> vector<4x160xf32>
    %394 = vector.extract_strided_slice %393 {offsets = [0, 0], sizes = [4, 32], strides = [1, 1]} : vector<4x160xf32> to vector<4x32xf32>
    %395 = arith.negf %394 : vector<4x32xf32>
    %396 = math.exp %395 : vector<4x32xf32>
    %cst_110 = arith.constant 1.000000e+00 : f32
    %397 = vector.broadcast %cst_110 : f32 to vector<4x32xf32>
    %398 = arith.addf %397, %396 : vector<4x32xf32>
    %399 = arith.divf %397, %398 : vector<4x32xf32>
    %400 = vector.extract_strided_slice %393 {offsets = [0, 32], sizes = [4, 32], strides = [1, 1]} : vector<4x160xf32> to vector<4x32xf32>
    %401 = arith.negf %400 : vector<4x32xf32>
    %402 = math.exp %401 : vector<4x32xf32>
    %cst_111 = arith.constant 1.000000e+00 : f32
    %403 = vector.broadcast %cst_111 : f32 to vector<4x32xf32>
    %404 = arith.addf %403, %402 : vector<4x32xf32>
    %405 = arith.divf %403, %404 : vector<4x32xf32>
    %406 = vector.extract_strided_slice %393 {offsets = [0, 64], sizes = [4, 32], strides = [1, 1]} : vector<4x160xf32> to vector<4x32xf32>
    %407 = vector.extract_strided_slice %393 {offsets = [0, 128], sizes = [4, 32], strides = [1, 1]} : vector<4x160xf32> to vector<4x32xf32>
    %408 = arith.mulf %399, %407 : vector<4x32xf32>
    %409 = arith.addf %406, %408 : vector<4x32xf32>
    %410 = math.tanh %409 : vector<4x32xf32>
    %cst_112 = arith.constant 1.000000e+00 : f32
    %411 = vector.broadcast %cst_112 : f32 to vector<4x32xf32>
    %412 = arith.subf %411, %405 : vector<4x32xf32>
    %413 = arith.mulf %412, %410 : vector<4x32xf32>
    %414 = arith.mulf %405, %392 : vector<4x32xf32>
    %415 = arith.addf %413, %414 : vector<4x32xf32>
    %416 = vector.extract_strided_slice %393 {offsets = [0, 96], sizes = [4, 32], strides = [1, 1]} : vector<4x160xf32> to vector<4x32xf32>
    %417 = arith.addf %415, %416 : vector<4x32xf32>
    %cst_113 = arith.constant dense<0.000000e+00> : vector<32xf32>
    %418 = vector.multi_reduction <add>, %417, %cst_113 [0] : vector<4x32xf32> to vector<32xf32>
    %419 = vector.shape_cast %418 : vector<32xf32> to vector<1x32xf32>
    %cst_114 = arith.constant 4.000000e+00 : f32
    %420 = vector.broadcast %cst_114 : f32 to vector<1x32xf32>
    %421 = arith.divf %419, %420 : vector<1x32xf32>
    %422 = vector.broadcast %421 : vector<1x32xf32> to vector<4x32xf32>
    %423 = arith.subf %417, %422 : vector<4x32xf32>
    %424 = arith.mulf %423, %423 : vector<4x32xf32>
    %cst_115 = arith.constant dense<0.000000e+00> : vector<32xf32>
    %425 = vector.multi_reduction <add>, %424, %cst_115 [0] : vector<4x32xf32> to vector<32xf32>
    %426 = vector.shape_cast %425 : vector<32xf32> to vector<1x32xf32>
    %cst_116 = arith.constant 4.000000e+00 : f32
    %427 = vector.broadcast %cst_116 : f32 to vector<1x32xf32>
    %428 = arith.divf %426, %427 : vector<1x32xf32>
    %429 = vector.broadcast %421 : vector<1x32xf32> to vector<4x32xf32>
    %430 = arith.subf %417, %429 : vector<4x32xf32>
    %cst_117 = arith.constant 9.99999974E-6 : f32
    %431 = vector.broadcast %cst_117 : f32 to vector<1x32xf32>
    %432 = arith.addf %428, %431 : vector<1x32xf32>
    %433 = math.rsqrt %432 : vector<1x32xf32>
    %434 = vector.broadcast %433 : vector<1x32xf32> to vector<4x32xf32>
    %435 = arith.mulf %430, %434 : vector<4x32xf32>
    %cst_118 = arith.constant 0.000000e+00 : f32
    %436 = vector.broadcast %cst_118 : f32 to vector<4x32xf32>
    %437 = arith.maximumf %435, %436 : vector<4x32xf32>
    %438 = vector.shape_cast %437 : vector<4x32xf32> to vector<4x8x4xf32>
    %cst_119 = arith.constant dense<0xFF800000> : vector<4x8xf32>
    %439 = vector.multi_reduction <maximumf>, %438, %cst_119 [2] : vector<4x8x4xf32> to vector<4x8xf32>
    %cst_120 = arith.constant dense<0.000000e+00> : vector<4x32xf32>
    %440 = tpu.matmul %439, %5, %cst_120 {dimension_numbers = #tpu.dot_dimension_numbers<[1], [0], [0], [1], [0, 0, 1, 1], [], []>} : vector<4x8xf32>, vector<8x32xf32>, vector<4x32xf32> -> vector<4x32xf32>
    %441 = arith.addf %440, %13 : vector<4x32xf32>
    %442 = math.tanh %441 : vector<4x32xf32>
    %cst_121 = arith.constant dense<0.000000e+00> : vector<4x16xf32>
    %443 = tpu.matmul %442, %1, %cst_121 {dimension_numbers = #tpu.dot_dimension_numbers<[1], [0], [0], [1], [0, 0, 1, 1], [], []>} : vector<4x32xf32>, vector<32x16xf32>, vector<4x16xf32> -> vector<4x16xf32>
    %444 = vector.extract_strided_slice %18 {offsets = [16, 0], sizes = [4, 128], strides = [1, 1]} : vector<32x128xf32> to vector<4x128xf32>
    %cst_122 = arith.constant dense<0.000000e+00> : vector<4x96xf32>
    %445 = tpu.matmul %442, %0, %cst_122 {dimension_numbers = #tpu.dot_dimension_numbers<[1], [0], [0], [1], [0, 0, 1, 1], [], []>} : vector<4x32xf32>, vector<32x96xf32>, vector<4x96xf32> -> vector<4x96xf32>
    %446 = vector.extract_strided_slice %444 {offsets = [0, 0], sizes = [4, 32], strides = [1, 1]} : vector<4x128xf32> to vector<4x32xf32>
    %447 = vector.extract_strided_slice %445 {offsets = [0, 0], sizes = [4, 32], strides = [1, 1]} : vector<4x96xf32> to vector<4x32xf32>
    %448 = arith.addf %446, %447 : vector<4x32xf32>
    %449 = arith.negf %448 : vector<4x32xf32>
    %450 = math.exp %449 : vector<4x32xf32>
    %cst_123 = arith.constant 1.000000e+00 : f32
    %451 = vector.broadcast %cst_123 : f32 to vector<4x32xf32>
    %452 = arith.addf %451, %450 : vector<4x32xf32>
    %453 = arith.divf %451, %452 : vector<4x32xf32>
    %454 = vector.extract_strided_slice %444 {offsets = [0, 32], sizes = [4, 32], strides = [1, 1]} : vector<4x128xf32> to vector<4x32xf32>
    %455 = vector.extract_strided_slice %445 {offsets = [0, 32], sizes = [4, 32], strides = [1, 1]} : vector<4x96xf32> to vector<4x32xf32>
    %456 = arith.addf %454, %455 : vector<4x32xf32>
    %457 = arith.negf %456 : vector<4x32xf32>
    %458 = math.exp %457 : vector<4x32xf32>
    %cst_124 = arith.constant 1.000000e+00 : f32
    %459 = vector.broadcast %cst_124 : f32 to vector<4x32xf32>
    %460 = arith.addf %459, %458 : vector<4x32xf32>
    %461 = arith.divf %459, %460 : vector<4x32xf32>
    %462 = vector.extract_strided_slice %444 {offsets = [0, 64], sizes = [4, 32], strides = [1, 1]} : vector<4x128xf32> to vector<4x32xf32>
    %463 = vector.extract_strided_slice %445 {offsets = [0, 64], sizes = [4, 32], strides = [1, 1]} : vector<4x96xf32> to vector<4x32xf32>
    %464 = arith.mulf %453, %463 : vector<4x32xf32>
    %465 = arith.addf %462, %464 : vector<4x32xf32>
    %466 = math.tanh %465 : vector<4x32xf32>
    %cst_125 = arith.constant 1.000000e+00 : f32
    %467 = vector.broadcast %cst_125 : f32 to vector<4x32xf32>
    %468 = arith.subf %467, %461 : vector<4x32xf32>
    %469 = arith.mulf %468, %466 : vector<4x32xf32>
    %470 = arith.mulf %461, %442 : vector<4x32xf32>
    %471 = arith.addf %469, %470 : vector<4x32xf32>
    %472 = vector.extract_strided_slice %444 {offsets = [0, 96], sizes = [4, 32], strides = [1, 1]} : vector<4x128xf32> to vector<4x32xf32>
    %473 = arith.addf %471, %472 : vector<4x32xf32>
    %cst_126 = arith.constant dense<0.000000e+00> : vector<32xf32>
    %474 = vector.multi_reduction <add>, %473, %cst_126 [0] : vector<4x32xf32> to vector<32xf32>
    %475 = vector.shape_cast %474 : vector<32xf32> to vector<1x32xf32>
    %cst_127 = arith.constant 4.000000e+00 : f32
    %476 = vector.broadcast %cst_127 : f32 to vector<1x32xf32>
    %477 = arith.divf %475, %476 : vector<1x32xf32>
    %478 = vector.broadcast %477 : vector<1x32xf32> to vector<4x32xf32>
    %479 = arith.subf %473, %478 : vector<4x32xf32>
    %480 = arith.mulf %479, %479 : vector<4x32xf32>
    %cst_128 = arith.constant dense<0.000000e+00> : vector<32xf32>
    %481 = vector.multi_reduction <add>, %480, %cst_128 [0] : vector<4x32xf32> to vector<32xf32>
    %482 = vector.shape_cast %481 : vector<32xf32> to vector<1x32xf32>
    %cst_129 = arith.constant 4.000000e+00 : f32
    %483 = vector.broadcast %cst_129 : f32 to vector<1x32xf32>
    %484 = arith.divf %482, %483 : vector<1x32xf32>
    %485 = vector.broadcast %477 : vector<1x32xf32> to vector<4x32xf32>
    %486 = arith.subf %473, %485 : vector<4x32xf32>
    %cst_130 = arith.constant 9.99999974E-6 : f32
    %487 = vector.broadcast %cst_130 : f32 to vector<1x32xf32>
    %488 = arith.addf %484, %487 : vector<1x32xf32>
    %489 = math.rsqrt %488 : vector<1x32xf32>
    %490 = vector.broadcast %489 : vector<1x32xf32> to vector<4x32xf32>
    %491 = arith.mulf %486, %490 : vector<4x32xf32>
    %cst_131 = arith.constant 0.000000e+00 : f32
    %492 = vector.broadcast %cst_131 : f32 to vector<4x32xf32>
    %493 = arith.maximumf %491, %492 : vector<4x32xf32>
    %494 = vector.shape_cast %493 : vector<4x32xf32> to vector<4x8x4xf32>
    %cst_132 = arith.constant dense<0xFF800000> : vector<4x8xf32>
    %495 = vector.multi_reduction <maximumf>, %494, %cst_132 [2] : vector<4x8x4xf32> to vector<4x8xf32>
    %cst_133 = arith.constant dense<0.000000e+00> : vector<4x32xf32>
    %496 = tpu.matmul %495, %3, %cst_133 {dimension_numbers = #tpu.dot_dimension_numbers<[1], [0], [0], [1], [0, 0, 1, 1], [], []>} : vector<4x8xf32>, vector<8x32xf32>, vector<4x32xf32> -> vector<4x32xf32>
    %497 = arith.addf %496, %9 : vector<4x32xf32>
    %498 = math.tanh %497 : vector<4x32xf32>
    %cst_134 = arith.constant dense<0.000000e+00> : vector<4x160xf32>
    %499 = tpu.matmul %498, %15, %cst_134 {dimension_numbers = #tpu.dot_dimension_numbers<[1], [0], [0], [1], [0, 0, 1, 1], [], []>} : vector<4x32xf32>, vector<32x160xf32>, vector<4x160xf32> -> vector<4x160xf32>
    %500 = vector.extract_strided_slice %499 {offsets = [0, 0], sizes = [4, 32], strides = [1, 1]} : vector<4x160xf32> to vector<4x32xf32>
    %501 = arith.negf %500 : vector<4x32xf32>
    %502 = math.exp %501 : vector<4x32xf32>
    %cst_135 = arith.constant 1.000000e+00 : f32
    %503 = vector.broadcast %cst_135 : f32 to vector<4x32xf32>
    %504 = arith.addf %503, %502 : vector<4x32xf32>
    %505 = arith.divf %503, %504 : vector<4x32xf32>
    %506 = vector.extract_strided_slice %499 {offsets = [0, 32], sizes = [4, 32], strides = [1, 1]} : vector<4x160xf32> to vector<4x32xf32>
    %507 = arith.negf %506 : vector<4x32xf32>
    %508 = math.exp %507 : vector<4x32xf32>
    %cst_136 = arith.constant 1.000000e+00 : f32
    %509 = vector.broadcast %cst_136 : f32 to vector<4x32xf32>
    %510 = arith.addf %509, %508 : vector<4x32xf32>
    %511 = arith.divf %509, %510 : vector<4x32xf32>
    %512 = vector.extract_strided_slice %499 {offsets = [0, 64], sizes = [4, 32], strides = [1, 1]} : vector<4x160xf32> to vector<4x32xf32>
    %513 = vector.extract_strided_slice %499 {offsets = [0, 128], sizes = [4, 32], strides = [1, 1]} : vector<4x160xf32> to vector<4x32xf32>
    %514 = arith.mulf %505, %513 : vector<4x32xf32>
    %515 = arith.addf %512, %514 : vector<4x32xf32>
    %516 = math.tanh %515 : vector<4x32xf32>
    %cst_137 = arith.constant 1.000000e+00 : f32
    %517 = vector.broadcast %cst_137 : f32 to vector<4x32xf32>
    %518 = arith.subf %517, %511 : vector<4x32xf32>
    %519 = arith.mulf %518, %516 : vector<4x32xf32>
    %520 = arith.mulf %511, %498 : vector<4x32xf32>
    %521 = arith.addf %519, %520 : vector<4x32xf32>
    %522 = vector.extract_strided_slice %499 {offsets = [0, 96], sizes = [4, 32], strides = [1, 1]} : vector<4x160xf32> to vector<4x32xf32>
    %523 = arith.addf %521, %522 : vector<4x32xf32>
    %cst_138 = arith.constant dense<0.000000e+00> : vector<32xf32>
    %524 = vector.multi_reduction <add>, %523, %cst_138 [0] : vector<4x32xf32> to vector<32xf32>
    %525 = vector.shape_cast %524 : vector<32xf32> to vector<1x32xf32>
    %cst_139 = arith.constant 4.000000e+00 : f32
    %526 = vector.broadcast %cst_139 : f32 to vector<1x32xf32>
    %527 = arith.divf %525, %526 : vector<1x32xf32>
    %528 = vector.broadcast %527 : vector<1x32xf32> to vector<4x32xf32>
    %529 = arith.subf %523, %528 : vector<4x32xf32>
    %530 = arith.mulf %529, %529 : vector<4x32xf32>
    %cst_140 = arith.constant dense<0.000000e+00> : vector<32xf32>
    %531 = vector.multi_reduction <add>, %530, %cst_140 [0] : vector<4x32xf32> to vector<32xf32>
    %532 = vector.shape_cast %531 : vector<32xf32> to vector<1x32xf32>
    %cst_141 = arith.constant 4.000000e+00 : f32
    %533 = vector.broadcast %cst_141 : f32 to vector<1x32xf32>
    %534 = arith.divf %532, %533 : vector<1x32xf32>
    %535 = vector.broadcast %527 : vector<1x32xf32> to vector<4x32xf32>
    %536 = arith.subf %523, %535 : vector<4x32xf32>
    %cst_142 = arith.constant 9.99999974E-6 : f32
    %537 = vector.broadcast %cst_142 : f32 to vector<1x32xf32>
    %538 = arith.addf %534, %537 : vector<1x32xf32>
    %539 = math.rsqrt %538 : vector<1x32xf32>
    %540 = vector.broadcast %539 : vector<1x32xf32> to vector<4x32xf32>
    %541 = arith.mulf %536, %540 : vector<4x32xf32>
    %cst_143 = arith.constant 0.000000e+00 : f32
    %542 = vector.broadcast %cst_143 : f32 to vector<4x32xf32>
    %543 = arith.maximumf %541, %542 : vector<4x32xf32>
    %544 = vector.shape_cast %543 : vector<4x32xf32> to vector<4x8x4xf32>
    %cst_144 = arith.constant dense<0xFF800000> : vector<4x8xf32>
    %545 = vector.multi_reduction <maximumf>, %544, %cst_144 [2] : vector<4x8x4xf32> to vector<4x8xf32>
    %cst_145 = arith.constant dense<0.000000e+00> : vector<4x32xf32>
    %546 = tpu.matmul %545, %5, %cst_145 {dimension_numbers = #tpu.dot_dimension_numbers<[1], [0], [0], [1], [0, 0, 1, 1], [], []>} : vector<4x8xf32>, vector<8x32xf32>, vector<4x32xf32> -> vector<4x32xf32>
    %547 = arith.addf %546, %13 : vector<4x32xf32>
    %548 = math.tanh %547 : vector<4x32xf32>
    %cst_146 = arith.constant dense<0.000000e+00> : vector<4x16xf32>
    %549 = tpu.matmul %548, %1, %cst_146 {dimension_numbers = #tpu.dot_dimension_numbers<[1], [0], [0], [1], [0, 0, 1, 1], [], []>} : vector<4x32xf32>, vector<32x16xf32>, vector<4x16xf32> -> vector<4x16xf32>
    %550 = vector.extract_strided_slice %18 {offsets = [20, 0], sizes = [4, 128], strides = [1, 1]} : vector<32x128xf32> to vector<4x128xf32>
    %cst_147 = arith.constant dense<0.000000e+00> : vector<4x96xf32>
    %551 = tpu.matmul %548, %0, %cst_147 {dimension_numbers = #tpu.dot_dimension_numbers<[1], [0], [0], [1], [0, 0, 1, 1], [], []>} : vector<4x32xf32>, vector<32x96xf32>, vector<4x96xf32> -> vector<4x96xf32>
    %552 = vector.extract_strided_slice %550 {offsets = [0, 0], sizes = [4, 32], strides = [1, 1]} : vector<4x128xf32> to vector<4x32xf32>
    %553 = vector.extract_strided_slice %551 {offsets = [0, 0], sizes = [4, 32], strides = [1, 1]} : vector<4x96xf32> to vector<4x32xf32>
    %554 = arith.addf %552, %553 : vector<4x32xf32>
    %555 = arith.negf %554 : vector<4x32xf32>
    %556 = math.exp %555 : vector<4x32xf32>
    %cst_148 = arith.constant 1.000000e+00 : f32
    %557 = vector.broadcast %cst_148 : f32 to vector<4x32xf32>
    %558 = arith.addf %557, %556 : vector<4x32xf32>
    %559 = arith.divf %557, %558 : vector<4x32xf32>
    %560 = vector.extract_strided_slice %550 {offsets = [0, 32], sizes = [4, 32], strides = [1, 1]} : vector<4x128xf32> to vector<4x32xf32>
    %561 = vector.extract_strided_slice %551 {offsets = [0, 32], sizes = [4, 32], strides = [1, 1]} : vector<4x96xf32> to vector<4x32xf32>
    %562 = arith.addf %560, %561 : vector<4x32xf32>
    %563 = arith.negf %562 : vector<4x32xf32>
    %564 = math.exp %563 : vector<4x32xf32>
    %cst_149 = arith.constant 1.000000e+00 : f32
    %565 = vector.broadcast %cst_149 : f32 to vector<4x32xf32>
    %566 = arith.addf %565, %564 : vector<4x32xf32>
    %567 = arith.divf %565, %566 : vector<4x32xf32>
    %568 = vector.extract_strided_slice %550 {offsets = [0, 64], sizes = [4, 32], strides = [1, 1]} : vector<4x128xf32> to vector<4x32xf32>
    %569 = vector.extract_strided_slice %551 {offsets = [0, 64], sizes = [4, 32], strides = [1, 1]} : vector<4x96xf32> to vector<4x32xf32>
    %570 = arith.mulf %559, %569 : vector<4x32xf32>
    %571 = arith.addf %568, %570 : vector<4x32xf32>
    %572 = math.tanh %571 : vector<4x32xf32>
    %cst_150 = arith.constant 1.000000e+00 : f32
    %573 = vector.broadcast %cst_150 : f32 to vector<4x32xf32>
    %574 = arith.subf %573, %567 : vector<4x32xf32>
    %575 = arith.mulf %574, %572 : vector<4x32xf32>
    %576 = arith.mulf %567, %548 : vector<4x32xf32>
    %577 = arith.addf %575, %576 : vector<4x32xf32>
    %578 = vector.extract_strided_slice %550 {offsets = [0, 96], sizes = [4, 32], strides = [1, 1]} : vector<4x128xf32> to vector<4x32xf32>
    %579 = arith.addf %577, %578 : vector<4x32xf32>
    %cst_151 = arith.constant dense<0.000000e+00> : vector<32xf32>
    %580 = vector.multi_reduction <add>, %579, %cst_151 [0] : vector<4x32xf32> to vector<32xf32>
    %581 = vector.shape_cast %580 : vector<32xf32> to vector<1x32xf32>
    %cst_152 = arith.constant 4.000000e+00 : f32
    %582 = vector.broadcast %cst_152 : f32 to vector<1x32xf32>
    %583 = arith.divf %581, %582 : vector<1x32xf32>
    %584 = vector.broadcast %583 : vector<1x32xf32> to vector<4x32xf32>
    %585 = arith.subf %579, %584 : vector<4x32xf32>
    %586 = arith.mulf %585, %585 : vector<4x32xf32>
    %cst_153 = arith.constant dense<0.000000e+00> : vector<32xf32>
    %587 = vector.multi_reduction <add>, %586, %cst_153 [0] : vector<4x32xf32> to vector<32xf32>
    %588 = vector.shape_cast %587 : vector<32xf32> to vector<1x32xf32>
    %cst_154 = arith.constant 4.000000e+00 : f32
    %589 = vector.broadcast %cst_154 : f32 to vector<1x32xf32>
    %590 = arith.divf %588, %589 : vector<1x32xf32>
    %591 = vector.broadcast %583 : vector<1x32xf32> to vector<4x32xf32>
    %592 = arith.subf %579, %591 : vector<4x32xf32>
    %cst_155 = arith.constant 9.99999974E-6 : f32
    %593 = vector.broadcast %cst_155 : f32 to vector<1x32xf32>
    %594 = arith.addf %590, %593 : vector<1x32xf32>
    %595 = math.rsqrt %594 : vector<1x32xf32>
    %596 = vector.broadcast %595 : vector<1x32xf32> to vector<4x32xf32>
    %597 = arith.mulf %592, %596 : vector<4x32xf32>
    %cst_156 = arith.constant 0.000000e+00 : f32
    %598 = vector.broadcast %cst_156 : f32 to vector<4x32xf32>
    %599 = arith.maximumf %597, %598 : vector<4x32xf32>
    %600 = vector.shape_cast %599 : vector<4x32xf32> to vector<4x8x4xf32>
    %cst_157 = arith.constant dense<0xFF800000> : vector<4x8xf32>
    %601 = vector.multi_reduction <maximumf>, %600, %cst_157 [2] : vector<4x8x4xf32> to vector<4x8xf32>
    %cst_158 = arith.constant dense<0.000000e+00> : vector<4x32xf32>
    %602 = tpu.matmul %601, %3, %cst_158 {dimension_numbers = #tpu.dot_dimension_numbers<[1], [0], [0], [1], [0, 0, 1, 1], [], []>} : vector<4x8xf32>, vector<8x32xf32>, vector<4x32xf32> -> vector<4x32xf32>
    %603 = arith.addf %602, %9 : vector<4x32xf32>
    %604 = math.tanh %603 : vector<4x32xf32>
    %cst_159 = arith.constant dense<0.000000e+00> : vector<4x160xf32>
    %605 = tpu.matmul %604, %15, %cst_159 {dimension_numbers = #tpu.dot_dimension_numbers<[1], [0], [0], [1], [0, 0, 1, 1], [], []>} : vector<4x32xf32>, vector<32x160xf32>, vector<4x160xf32> -> vector<4x160xf32>
    %606 = vector.extract_strided_slice %605 {offsets = [0, 0], sizes = [4, 32], strides = [1, 1]} : vector<4x160xf32> to vector<4x32xf32>
    %607 = arith.negf %606 : vector<4x32xf32>
    %608 = math.exp %607 : vector<4x32xf32>
    %cst_160 = arith.constant 1.000000e+00 : f32
    %609 = vector.broadcast %cst_160 : f32 to vector<4x32xf32>
    %610 = arith.addf %609, %608 : vector<4x32xf32>
    %611 = arith.divf %609, %610 : vector<4x32xf32>
    %612 = vector.extract_strided_slice %605 {offsets = [0, 32], sizes = [4, 32], strides = [1, 1]} : vector<4x160xf32> to vector<4x32xf32>
    %613 = arith.negf %612 : vector<4x32xf32>
    %614 = math.exp %613 : vector<4x32xf32>
    %cst_161 = arith.constant 1.000000e+00 : f32
    %615 = vector.broadcast %cst_161 : f32 to vector<4x32xf32>
    %616 = arith.addf %615, %614 : vector<4x32xf32>
    %617 = arith.divf %615, %616 : vector<4x32xf32>
    %618 = vector.extract_strided_slice %605 {offsets = [0, 64], sizes = [4, 32], strides = [1, 1]} : vector<4x160xf32> to vector<4x32xf32>
    %619 = vector.extract_strided_slice %605 {offsets = [0, 128], sizes = [4, 32], strides = [1, 1]} : vector<4x160xf32> to vector<4x32xf32>
    %620 = arith.mulf %611, %619 : vector<4x32xf32>
    %621 = arith.addf %618, %620 : vector<4x32xf32>
    %622 = math.tanh %621 : vector<4x32xf32>
    %cst_162 = arith.constant 1.000000e+00 : f32
    %623 = vector.broadcast %cst_162 : f32 to vector<4x32xf32>
    %624 = arith.subf %623, %617 : vector<4x32xf32>
    %625 = arith.mulf %624, %622 : vector<4x32xf32>
    %626 = arith.mulf %617, %604 : vector<4x32xf32>
    %627 = arith.addf %625, %626 : vector<4x32xf32>
    %628 = vector.extract_strided_slice %605 {offsets = [0, 96], sizes = [4, 32], strides = [1, 1]} : vector<4x160xf32> to vector<4x32xf32>
    %629 = arith.addf %627, %628 : vector<4x32xf32>
    %cst_163 = arith.constant dense<0.000000e+00> : vector<32xf32>
    %630 = vector.multi_reduction <add>, %629, %cst_163 [0] : vector<4x32xf32> to vector<32xf32>
    %631 = vector.shape_cast %630 : vector<32xf32> to vector<1x32xf32>
    %cst_164 = arith.constant 4.000000e+00 : f32
    %632 = vector.broadcast %cst_164 : f32 to vector<1x32xf32>
    %633 = arith.divf %631, %632 : vector<1x32xf32>
    %634 = vector.broadcast %633 : vector<1x32xf32> to vector<4x32xf32>
    %635 = arith.subf %629, %634 : vector<4x32xf32>
    %636 = arith.mulf %635, %635 : vector<4x32xf32>
    %cst_165 = arith.constant dense<0.000000e+00> : vector<32xf32>
    %637 = vector.multi_reduction <add>, %636, %cst_165 [0] : vector<4x32xf32> to vector<32xf32>
    %638 = vector.shape_cast %637 : vector<32xf32> to vector<1x32xf32>
    %cst_166 = arith.constant 4.000000e+00 : f32
    %639 = vector.broadcast %cst_166 : f32 to vector<1x32xf32>
    %640 = arith.divf %638, %639 : vector<1x32xf32>
    %641 = vector.broadcast %633 : vector<1x32xf32> to vector<4x32xf32>
    %642 = arith.subf %629, %641 : vector<4x32xf32>
    %cst_167 = arith.constant 9.99999974E-6 : f32
    %643 = vector.broadcast %cst_167 : f32 to vector<1x32xf32>
    %644 = arith.addf %640, %643 : vector<1x32xf32>
    %645 = math.rsqrt %644 : vector<1x32xf32>
    %646 = vector.broadcast %645 : vector<1x32xf32> to vector<4x32xf32>
    %647 = arith.mulf %642, %646 : vector<4x32xf32>
    %cst_168 = arith.constant 0.000000e+00 : f32
    %648 = vector.broadcast %cst_168 : f32 to vector<4x32xf32>
    %649 = arith.maximumf %647, %648 : vector<4x32xf32>
    %650 = vector.shape_cast %649 : vector<4x32xf32> to vector<4x8x4xf32>
    %cst_169 = arith.constant dense<0xFF800000> : vector<4x8xf32>
    %651 = vector.multi_reduction <maximumf>, %650, %cst_169 [2] : vector<4x8x4xf32> to vector<4x8xf32>
    %cst_170 = arith.constant dense<0.000000e+00> : vector<4x32xf32>
    %652 = tpu.matmul %651, %5, %cst_170 {dimension_numbers = #tpu.dot_dimension_numbers<[1], [0], [0], [1], [0, 0, 1, 1], [], []>} : vector<4x8xf32>, vector<8x32xf32>, vector<4x32xf32> -> vector<4x32xf32>
    %653 = arith.addf %652, %13 : vector<4x32xf32>
    %654 = math.tanh %653 : vector<4x32xf32>
    %cst_171 = arith.constant dense<0.000000e+00> : vector<4x16xf32>
    %655 = tpu.matmul %654, %1, %cst_171 {dimension_numbers = #tpu.dot_dimension_numbers<[1], [0], [0], [1], [0, 0, 1, 1], [], []>} : vector<4x32xf32>, vector<32x16xf32>, vector<4x16xf32> -> vector<4x16xf32>
    %656 = vector.extract_strided_slice %18 {offsets = [24, 0], sizes = [4, 128], strides = [1, 1]} : vector<32x128xf32> to vector<4x128xf32>
    %cst_172 = arith.constant dense<0.000000e+00> : vector<4x96xf32>
    %657 = tpu.matmul %654, %0, %cst_172 {dimension_numbers = #tpu.dot_dimension_numbers<[1], [0], [0], [1], [0, 0, 1, 1], [], []>} : vector<4x32xf32>, vector<32x96xf32>, vector<4x96xf32> -> vector<4x96xf32>
    %658 = vector.extract_strided_slice %656 {offsets = [0, 0], sizes = [4, 32], strides = [1, 1]} : vector<4x128xf32> to vector<4x32xf32>
    %659 = vector.extract_strided_slice %657 {offsets = [0, 0], sizes = [4, 32], strides = [1, 1]} : vector<4x96xf32> to vector<4x32xf32>
    %660 = arith.addf %658, %659 : vector<4x32xf32>
    %661 = arith.negf %660 : vector<4x32xf32>
    %662 = math.exp %661 : vector<4x32xf32>
    %cst_173 = arith.constant 1.000000e+00 : f32
    %663 = vector.broadcast %cst_173 : f32 to vector<4x32xf32>
    %664 = arith.addf %663, %662 : vector<4x32xf32>
    %665 = arith.divf %663, %664 : vector<4x32xf32>
    %666 = vector.extract_strided_slice %656 {offsets = [0, 32], sizes = [4, 32], strides = [1, 1]} : vector<4x128xf32> to vector<4x32xf32>
    %667 = vector.extract_strided_slice %657 {offsets = [0, 32], sizes = [4, 32], strides = [1, 1]} : vector<4x96xf32> to vector<4x32xf32>
    %668 = arith.addf %666, %667 : vector<4x32xf32>
    %669 = arith.negf %668 : vector<4x32xf32>
    %670 = math.exp %669 : vector<4x32xf32>
    %cst_174 = arith.constant 1.000000e+00 : f32
    %671 = vector.broadcast %cst_174 : f32 to vector<4x32xf32>
    %672 = arith.addf %671, %670 : vector<4x32xf32>
    %673 = arith.divf %671, %672 : vector<4x32xf32>
    %674 = vector.extract_strided_slice %656 {offsets = [0, 64], sizes = [4, 32], strides = [1, 1]} : vector<4x128xf32> to vector<4x32xf32>
    %675 = vector.extract_strided_slice %657 {offsets = [0, 64], sizes = [4, 32], strides = [1, 1]} : vector<4x96xf32> to vector<4x32xf32>
    %676 = arith.mulf %665, %675 : vector<4x32xf32>
    %677 = arith.addf %674, %676 : vector<4x32xf32>
    %678 = math.tanh %677 : vector<4x32xf32>
    %cst_175 = arith.constant 1.000000e+00 : f32
    %679 = vector.broadcast %cst_175 : f32 to vector<4x32xf32>
    %680 = arith.subf %679, %673 : vector<4x32xf32>
    %681 = arith.mulf %680, %678 : vector<4x32xf32>
    %682 = arith.mulf %673, %654 : vector<4x32xf32>
    %683 = arith.addf %681, %682 : vector<4x32xf32>
    %684 = vector.extract_strided_slice %656 {offsets = [0, 96], sizes = [4, 32], strides = [1, 1]} : vector<4x128xf32> to vector<4x32xf32>
    %685 = arith.addf %683, %684 : vector<4x32xf32>
    %cst_176 = arith.constant dense<0.000000e+00> : vector<32xf32>
    %686 = vector.multi_reduction <add>, %685, %cst_176 [0] : vector<4x32xf32> to vector<32xf32>
    %687 = vector.shape_cast %686 : vector<32xf32> to vector<1x32xf32>
    %cst_177 = arith.constant 4.000000e+00 : f32
    %688 = vector.broadcast %cst_177 : f32 to vector<1x32xf32>
    %689 = arith.divf %687, %688 : vector<1x32xf32>
    %690 = vector.broadcast %689 : vector<1x32xf32> to vector<4x32xf32>
    %691 = arith.subf %685, %690 : vector<4x32xf32>
    %692 = arith.mulf %691, %691 : vector<4x32xf32>
    %cst_178 = arith.constant dense<0.000000e+00> : vector<32xf32>
    %693 = vector.multi_reduction <add>, %692, %cst_178 [0] : vector<4x32xf32> to vector<32xf32>
    %694 = vector.shape_cast %693 : vector<32xf32> to vector<1x32xf32>
    %cst_179 = arith.constant 4.000000e+00 : f32
    %695 = vector.broadcast %cst_179 : f32 to vector<1x32xf32>
    %696 = arith.divf %694, %695 : vector<1x32xf32>
    %697 = vector.broadcast %689 : vector<1x32xf32> to vector<4x32xf32>
    %698 = arith.subf %685, %697 : vector<4x32xf32>
    %cst_180 = arith.constant 9.99999974E-6 : f32
    %699 = vector.broadcast %cst_180 : f32 to vector<1x32xf32>
    %700 = arith.addf %696, %699 : vector<1x32xf32>
    %701 = math.rsqrt %700 : vector<1x32xf32>
    %702 = vector.broadcast %701 : vector<1x32xf32> to vector<4x32xf32>
    %703 = arith.mulf %698, %702 : vector<4x32xf32>
    %cst_181 = arith.constant 0.000000e+00 : f32
    %704 = vector.broadcast %cst_181 : f32 to vector<4x32xf32>
    %705 = arith.maximumf %703, %704 : vector<4x32xf32>
    %706 = vector.shape_cast %705 : vector<4x32xf32> to vector<4x8x4xf32>
    %cst_182 = arith.constant dense<0xFF800000> : vector<4x8xf32>
    %707 = vector.multi_reduction <maximumf>, %706, %cst_182 [2] : vector<4x8x4xf32> to vector<4x8xf32>
    %cst_183 = arith.constant dense<0.000000e+00> : vector<4x32xf32>
    %708 = tpu.matmul %707, %3, %cst_183 {dimension_numbers = #tpu.dot_dimension_numbers<[1], [0], [0], [1], [0, 0, 1, 1], [], []>} : vector<4x8xf32>, vector<8x32xf32>, vector<4x32xf32> -> vector<4x32xf32>
    %709 = arith.addf %708, %9 : vector<4x32xf32>
    %710 = math.tanh %709 : vector<4x32xf32>
    %cst_184 = arith.constant dense<0.000000e+00> : vector<4x160xf32>
    %711 = tpu.matmul %710, %15, %cst_184 {dimension_numbers = #tpu.dot_dimension_numbers<[1], [0], [0], [1], [0, 0, 1, 1], [], []>} : vector<4x32xf32>, vector<32x160xf32>, vector<4x160xf32> -> vector<4x160xf32>
    %712 = vector.extract_strided_slice %711 {offsets = [0, 0], sizes = [4, 32], strides = [1, 1]} : vector<4x160xf32> to vector<4x32xf32>
    %713 = arith.negf %712 : vector<4x32xf32>
    %714 = math.exp %713 : vector<4x32xf32>
    %cst_185 = arith.constant 1.000000e+00 : f32
    %715 = vector.broadcast %cst_185 : f32 to vector<4x32xf32>
    %716 = arith.addf %715, %714 : vector<4x32xf32>
    %717 = arith.divf %715, %716 : vector<4x32xf32>
    %718 = vector.extract_strided_slice %711 {offsets = [0, 32], sizes = [4, 32], strides = [1, 1]} : vector<4x160xf32> to vector<4x32xf32>
    %719 = arith.negf %718 : vector<4x32xf32>
    %720 = math.exp %719 : vector<4x32xf32>
    %cst_186 = arith.constant 1.000000e+00 : f32
    %721 = vector.broadcast %cst_186 : f32 to vector<4x32xf32>
    %722 = arith.addf %721, %720 : vector<4x32xf32>
    %723 = arith.divf %721, %722 : vector<4x32xf32>
    %724 = vector.extract_strided_slice %711 {offsets = [0, 64], sizes = [4, 32], strides = [1, 1]} : vector<4x160xf32> to vector<4x32xf32>
    %725 = vector.extract_strided_slice %711 {offsets = [0, 128], sizes = [4, 32], strides = [1, 1]} : vector<4x160xf32> to vector<4x32xf32>
    %726 = arith.mulf %717, %725 : vector<4x32xf32>
    %727 = arith.addf %724, %726 : vector<4x32xf32>
    %728 = math.tanh %727 : vector<4x32xf32>
    %cst_187 = arith.constant 1.000000e+00 : f32
    %729 = vector.broadcast %cst_187 : f32 to vector<4x32xf32>
    %730 = arith.subf %729, %723 : vector<4x32xf32>
    %731 = arith.mulf %730, %728 : vector<4x32xf32>
    %732 = arith.mulf %723, %710 : vector<4x32xf32>
    %733 = arith.addf %731, %732 : vector<4x32xf32>
    %734 = vector.extract_strided_slice %711 {offsets = [0, 96], sizes = [4, 32], strides = [1, 1]} : vector<4x160xf32> to vector<4x32xf32>
    %735 = arith.addf %733, %734 : vector<4x32xf32>
    %cst_188 = arith.constant dense<0.000000e+00> : vector<32xf32>
    %736 = vector.multi_reduction <add>, %735, %cst_188 [0] : vector<4x32xf32> to vector<32xf32>
    %737 = vector.shape_cast %736 : vector<32xf32> to vector<1x32xf32>
    %cst_189 = arith.constant 4.000000e+00 : f32
    %738 = vector.broadcast %cst_189 : f32 to vector<1x32xf32>
    %739 = arith.divf %737, %738 : vector<1x32xf32>
    %740 = vector.broadcast %739 : vector<1x32xf32> to vector<4x32xf32>
    %741 = arith.subf %735, %740 : vector<4x32xf32>
    %742 = arith.mulf %741, %741 : vector<4x32xf32>
    %cst_190 = arith.constant dense<0.000000e+00> : vector<32xf32>
    %743 = vector.multi_reduction <add>, %742, %cst_190 [0] : vector<4x32xf32> to vector<32xf32>
    %744 = vector.shape_cast %743 : vector<32xf32> to vector<1x32xf32>
    %cst_191 = arith.constant 4.000000e+00 : f32
    %745 = vector.broadcast %cst_191 : f32 to vector<1x32xf32>
    %746 = arith.divf %744, %745 : vector<1x32xf32>
    %747 = vector.broadcast %739 : vector<1x32xf32> to vector<4x32xf32>
    %748 = arith.subf %735, %747 : vector<4x32xf32>
    %cst_192 = arith.constant 9.99999974E-6 : f32
    %749 = vector.broadcast %cst_192 : f32 to vector<1x32xf32>
    %750 = arith.addf %746, %749 : vector<1x32xf32>
    %751 = math.rsqrt %750 : vector<1x32xf32>
    %752 = vector.broadcast %751 : vector<1x32xf32> to vector<4x32xf32>
    %753 = arith.mulf %748, %752 : vector<4x32xf32>
    %cst_193 = arith.constant 0.000000e+00 : f32
    %754 = vector.broadcast %cst_193 : f32 to vector<4x32xf32>
    %755 = arith.maximumf %753, %754 : vector<4x32xf32>
    %756 = vector.shape_cast %755 : vector<4x32xf32> to vector<4x8x4xf32>
    %cst_194 = arith.constant dense<0xFF800000> : vector<4x8xf32>
    %757 = vector.multi_reduction <maximumf>, %756, %cst_194 [2] : vector<4x8x4xf32> to vector<4x8xf32>
    %cst_195 = arith.constant dense<0.000000e+00> : vector<4x32xf32>
    %758 = tpu.matmul %757, %5, %cst_195 {dimension_numbers = #tpu.dot_dimension_numbers<[1], [0], [0], [1], [0, 0, 1, 1], [], []>} : vector<4x8xf32>, vector<8x32xf32>, vector<4x32xf32> -> vector<4x32xf32>
    %759 = arith.addf %758, %13 : vector<4x32xf32>
    %760 = math.tanh %759 : vector<4x32xf32>
    %cst_196 = arith.constant dense<0.000000e+00> : vector<4x16xf32>
    %761 = tpu.matmul %760, %1, %cst_196 {dimension_numbers = #tpu.dot_dimension_numbers<[1], [0], [0], [1], [0, 0, 1, 1], [], []>} : vector<4x32xf32>, vector<32x16xf32>, vector<4x16xf32> -> vector<4x16xf32>
    %762 = vector.extract_strided_slice %18 {offsets = [28, 0], sizes = [4, 128], strides = [1, 1]} : vector<32x128xf32> to vector<4x128xf32>
    %cst_197 = arith.constant dense<0.000000e+00> : vector<4x96xf32>
    %763 = tpu.matmul %760, %0, %cst_197 {dimension_numbers = #tpu.dot_dimension_numbers<[1], [0], [0], [1], [0, 0, 1, 1], [], []>} : vector<4x32xf32>, vector<32x96xf32>, vector<4x96xf32> -> vector<4x96xf32>
    %764 = vector.extract_strided_slice %762 {offsets = [0, 0], sizes = [4, 32], strides = [1, 1]} : vector<4x128xf32> to vector<4x32xf32>
    %765 = vector.extract_strided_slice %763 {offsets = [0, 0], sizes = [4, 32], strides = [1, 1]} : vector<4x96xf32> to vector<4x32xf32>
    %766 = arith.addf %764, %765 : vector<4x32xf32>
    %767 = arith.negf %766 : vector<4x32xf32>
    %768 = math.exp %767 : vector<4x32xf32>
    %cst_198 = arith.constant 1.000000e+00 : f32
    %769 = vector.broadcast %cst_198 : f32 to vector<4x32xf32>
    %770 = arith.addf %769, %768 : vector<4x32xf32>
    %771 = arith.divf %769, %770 : vector<4x32xf32>
    %772 = vector.extract_strided_slice %762 {offsets = [0, 32], sizes = [4, 32], strides = [1, 1]} : vector<4x128xf32> to vector<4x32xf32>
    %773 = vector.extract_strided_slice %763 {offsets = [0, 32], sizes = [4, 32], strides = [1, 1]} : vector<4x96xf32> to vector<4x32xf32>
    %774 = arith.addf %772, %773 : vector<4x32xf32>
    %775 = arith.negf %774 : vector<4x32xf32>
    %776 = math.exp %775 : vector<4x32xf32>
    %cst_199 = arith.constant 1.000000e+00 : f32
    %777 = vector.broadcast %cst_199 : f32 to vector<4x32xf32>
    %778 = arith.addf %777, %776 : vector<4x32xf32>
    %779 = arith.divf %777, %778 : vector<4x32xf32>
    %780 = vector.extract_strided_slice %762 {offsets = [0, 64], sizes = [4, 32], strides = [1, 1]} : vector<4x128xf32> to vector<4x32xf32>
    %781 = vector.extract_strided_slice %763 {offsets = [0, 64], sizes = [4, 32], strides = [1, 1]} : vector<4x96xf32> to vector<4x32xf32>
    %782 = arith.mulf %771, %781 : vector<4x32xf32>
    %783 = arith.addf %780, %782 : vector<4x32xf32>
    %784 = math.tanh %783 : vector<4x32xf32>
    %cst_200 = arith.constant 1.000000e+00 : f32
    %785 = vector.broadcast %cst_200 : f32 to vector<4x32xf32>
    %786 = arith.subf %785, %779 : vector<4x32xf32>
    %787 = arith.mulf %786, %784 : vector<4x32xf32>
    %788 = arith.mulf %779, %760 : vector<4x32xf32>
    %789 = arith.addf %787, %788 : vector<4x32xf32>
    %790 = vector.extract_strided_slice %762 {offsets = [0, 96], sizes = [4, 32], strides = [1, 1]} : vector<4x128xf32> to vector<4x32xf32>
    %791 = arith.addf %789, %790 : vector<4x32xf32>
    %cst_201 = arith.constant dense<0.000000e+00> : vector<32xf32>
    %792 = vector.multi_reduction <add>, %791, %cst_201 [0] : vector<4x32xf32> to vector<32xf32>
    %793 = vector.shape_cast %792 : vector<32xf32> to vector<1x32xf32>
    %cst_202 = arith.constant 4.000000e+00 : f32
    %794 = vector.broadcast %cst_202 : f32 to vector<1x32xf32>
    %795 = arith.divf %793, %794 : vector<1x32xf32>
    %796 = vector.broadcast %795 : vector<1x32xf32> to vector<4x32xf32>
    %797 = arith.subf %791, %796 : vector<4x32xf32>
    %798 = arith.mulf %797, %797 : vector<4x32xf32>
    %cst_203 = arith.constant dense<0.000000e+00> : vector<32xf32>
    %799 = vector.multi_reduction <add>, %798, %cst_203 [0] : vector<4x32xf32> to vector<32xf32>
    %800 = vector.shape_cast %799 : vector<32xf32> to vector<1x32xf32>
    %cst_204 = arith.constant 4.000000e+00 : f32
    %801 = vector.broadcast %cst_204 : f32 to vector<1x32xf32>
    %802 = arith.divf %800, %801 : vector<1x32xf32>
    %803 = vector.broadcast %795 : vector<1x32xf32> to vector<4x32xf32>
    %804 = arith.subf %791, %803 : vector<4x32xf32>
    %cst_205 = arith.constant 9.99999974E-6 : f32
    %805 = vector.broadcast %cst_205 : f32 to vector<1x32xf32>
    %806 = arith.addf %802, %805 : vector<1x32xf32>
    %807 = math.rsqrt %806 : vector<1x32xf32>
    %808 = vector.broadcast %807 : vector<1x32xf32> to vector<4x32xf32>
    %809 = arith.mulf %804, %808 : vector<4x32xf32>
    %cst_206 = arith.constant 0.000000e+00 : f32
    %810 = vector.broadcast %cst_206 : f32 to vector<4x32xf32>
    %811 = arith.maximumf %809, %810 : vector<4x32xf32>
    %812 = vector.shape_cast %811 : vector<4x32xf32> to vector<4x8x4xf32>
    %cst_207 = arith.constant dense<0xFF800000> : vector<4x8xf32>
    %813 = vector.multi_reduction <maximumf>, %812, %cst_207 [2] : vector<4x8x4xf32> to vector<4x8xf32>
    %cst_208 = arith.constant dense<0.000000e+00> : vector<4x32xf32>
    %814 = tpu.matmul %813, %3, %cst_208 {dimension_numbers = #tpu.dot_dimension_numbers<[1], [0], [0], [1], [0, 0, 1, 1], [], []>} : vector<4x8xf32>, vector<8x32xf32>, vector<4x32xf32> -> vector<4x32xf32>
    %815 = arith.addf %814, %9 : vector<4x32xf32>
    %816 = math.tanh %815 : vector<4x32xf32>
    %cst_209 = arith.constant dense<0.000000e+00> : vector<4x160xf32>
    %817 = tpu.matmul %816, %15, %cst_209 {dimension_numbers = #tpu.dot_dimension_numbers<[1], [0], [0], [1], [0, 0, 1, 1], [], []>} : vector<4x32xf32>, vector<32x160xf32>, vector<4x160xf32> -> vector<4x160xf32>
    %818 = vector.extract_strided_slice %817 {offsets = [0, 0], sizes = [4, 32], strides = [1, 1]} : vector<4x160xf32> to vector<4x32xf32>
    %819 = arith.negf %818 : vector<4x32xf32>
    %820 = math.exp %819 : vector<4x32xf32>
    %cst_210 = arith.constant 1.000000e+00 : f32
    %821 = vector.broadcast %cst_210 : f32 to vector<4x32xf32>
    %822 = arith.addf %821, %820 : vector<4x32xf32>
    %823 = arith.divf %821, %822 : vector<4x32xf32>
    %824 = vector.extract_strided_slice %817 {offsets = [0, 32], sizes = [4, 32], strides = [1, 1]} : vector<4x160xf32> to vector<4x32xf32>
    %825 = arith.negf %824 : vector<4x32xf32>
    %826 = math.exp %825 : vector<4x32xf32>
    %cst_211 = arith.constant 1.000000e+00 : f32
    %827 = vector.broadcast %cst_211 : f32 to vector<4x32xf32>
    %828 = arith.addf %827, %826 : vector<4x32xf32>
    %829 = arith.divf %827, %828 : vector<4x32xf32>
    %830 = vector.extract_strided_slice %817 {offsets = [0, 64], sizes = [4, 32], strides = [1, 1]} : vector<4x160xf32> to vector<4x32xf32>
    %831 = vector.extract_strided_slice %817 {offsets = [0, 128], sizes = [4, 32], strides = [1, 1]} : vector<4x160xf32> to vector<4x32xf32>
    %832 = arith.mulf %823, %831 : vector<4x32xf32>
    %833 = arith.addf %830, %832 : vector<4x32xf32>
    %834 = math.tanh %833 : vector<4x32xf32>
    %cst_212 = arith.constant 1.000000e+00 : f32
    %835 = vector.broadcast %cst_212 : f32 to vector<4x32xf32>
    %836 = arith.subf %835, %829 : vector<4x32xf32>
    %837 = arith.mulf %836, %834 : vector<4x32xf32>
    %838 = arith.mulf %829, %816 : vector<4x32xf32>
    %839 = arith.addf %837, %838 : vector<4x32xf32>
    %840 = vector.extract_strided_slice %817 {offsets = [0, 96], sizes = [4, 32], strides = [1, 1]} : vector<4x160xf32> to vector<4x32xf32>
    %841 = arith.addf %839, %840 : vector<4x32xf32>
    %cst_213 = arith.constant dense<0.000000e+00> : vector<32xf32>
    %842 = vector.multi_reduction <add>, %841, %cst_213 [0] : vector<4x32xf32> to vector<32xf32>
    %843 = vector.shape_cast %842 : vector<32xf32> to vector<1x32xf32>
    %cst_214 = arith.constant 4.000000e+00 : f32
    %844 = vector.broadcast %cst_214 : f32 to vector<1x32xf32>
    %845 = arith.divf %843, %844 : vector<1x32xf32>
    %846 = vector.broadcast %845 : vector<1x32xf32> to vector<4x32xf32>
    %847 = arith.subf %841, %846 : vector<4x32xf32>
    %848 = arith.mulf %847, %847 : vector<4x32xf32>
    %cst_215 = arith.constant dense<0.000000e+00> : vector<32xf32>
    %849 = vector.multi_reduction <add>, %848, %cst_215 [0] : vector<4x32xf32> to vector<32xf32>
    %850 = vector.shape_cast %849 : vector<32xf32> to vector<1x32xf32>
    %cst_216 = arith.constant 4.000000e+00 : f32
    %851 = vector.broadcast %cst_216 : f32 to vector<1x32xf32>
    %852 = arith.divf %850, %851 : vector<1x32xf32>
    %853 = vector.broadcast %845 : vector<1x32xf32> to vector<4x32xf32>
    %854 = arith.subf %841, %853 : vector<4x32xf32>
    %cst_217 = arith.constant 9.99999974E-6 : f32
    %855 = vector.broadcast %cst_217 : f32 to vector<1x32xf32>
    %856 = arith.addf %852, %855 : vector<1x32xf32>
    %857 = math.rsqrt %856 : vector<1x32xf32>
    %858 = vector.broadcast %857 : vector<1x32xf32> to vector<4x32xf32>
    %859 = arith.mulf %854, %858 : vector<4x32xf32>
    %cst_218 = arith.constant 0.000000e+00 : f32
    %860 = vector.broadcast %cst_218 : f32 to vector<4x32xf32>
    %861 = arith.maximumf %859, %860 : vector<4x32xf32>
    %862 = vector.shape_cast %861 : vector<4x32xf32> to vector<4x8x4xf32>
    %cst_219 = arith.constant dense<0xFF800000> : vector<4x8xf32>
    %863 = vector.multi_reduction <maximumf>, %862, %cst_219 [2] : vector<4x8x4xf32> to vector<4x8xf32>
    %cst_220 = arith.constant dense<0.000000e+00> : vector<4x32xf32>
    %864 = tpu.matmul %863, %5, %cst_220 {dimension_numbers = #tpu.dot_dimension_numbers<[1], [0], [0], [1], [0, 0, 1, 1], [], []>} : vector<4x8xf32>, vector<8x32xf32>, vector<4x32xf32> -> vector<4x32xf32>
    %865 = arith.addf %864, %13 : vector<4x32xf32>
    %866 = math.tanh %865 : vector<4x32xf32>
    %cst_221 = arith.constant dense<0.000000e+00> : vector<4x16xf32>
    %867 = tpu.matmul %866, %1, %cst_221 {dimension_numbers = #tpu.dot_dimension_numbers<[1], [0], [0], [1], [0, 0, 1, 1], [], []>} : vector<4x32xf32>, vector<32x16xf32>, vector<4x16xf32> -> vector<4x16xf32>
    %868 = tpu.concatenate %125, %231, %337, %443, %549, %655, %761, %867 in 1 : vector<4x16xf32>, vector<4x16xf32>, vector<4x16xf32>, vector<4x16xf32>, vector<4x16xf32>, vector<4x16xf32>, vector<4x16xf32>, vector<4x16xf32> -> vector<4x128xf32>
    %c0_222 = arith.constant 0 : index
    %c0_223 = arith.constant 0 : index
    %869 = vector.load %arg7[%c0_222, %c0_223] : memref<4x128xf32, #tpu.memory_space<vmem>>, vector<4x128xf32>
    tpu.vector_store %arg7[%c0_222, %c0_223], %868 {strides = array<i32>} : memref<4x128xf32, #tpu.memory_space<vmem>>, vector<4x128xf32>,
    return
  }
}

</mosaic_0001>

<bundles_post_ra>
// kernel: deep_residual_gru.1
= control target key start
LH: loop header
LB: loop body
LE: loop exit
PB: predicated region body
PF: predicated region fallthrough
CT: control target
= control target key end

     0   :  { %v6995_v0 = vmov 0.0   ;;  %vm6996_vm0 = vmmov 0   ;;  %vm68_vm1 = vcmask 261120   ;;  %s6998_s21 = smov 96   ;;  %vm270_vm2 = vcmask 519424   ;;  %s6999_s22 = smov 120   ;;  %s8524_s1 = inlined_call_operand.vmem [shape: f32[32,128], index: 1, kind: input, shape index: {}]   ;;  %s8525_s2 = inlined_call_operand.vmem [shape: f32[32,96], index: 2, kind: input, shape index: {}]   ;;  %s8526_s0 = inlined_call_operand.vmem [shape: f32[32,32], index: 0, kind: input, shape index: {}]   ;;  %s8527_s4 = inlined_call_operand.vmem [shape: f32[2,8,32], index: 4, kind: input, shape index: {}]   ;;  %s8528_s3 = inlined_call_operand.vmem [shape: f32[1,32,160], index: 3, kind: input, shape index: {}]   ;;  %s8529_s5 = inlined_call_operand.vmem [shape: f32[2,1,32], index: 5, kind: input, shape index: {}]   ;;  %s8530_s6 = inlined_call_operand.vmem [shape: f32[32,16], index: 6, kind: input, shape index: {}]   ;;  %s8531_s7 = inlined_call_operand.vmem [shape: f32[4,128], index: 7, kind: output, shape index: {}]  }
   0x1   :  { %6502 = vmatprep.subr.mxu1 %v6995_v0  ;;  %v67_v1 = vld [vmem:[%s8524_s1 + $0x18] sm:$0xff]  ;;  %v66_v3 = vld [vmem:[%s8524_s1 + $0x10] sm:$0xff]  ;;  %6510 = vmatprep.mubr.msk.f32.mxu1 %vm6996_vm0, %v6995_v0  ;;  %v65_v5 = vld [vmem:[%s8524_s1 + $0x8] sm:$0xff]  ;;  %s7000_s23 = smov 124   ;;  %s7001_s24 = smov 112   ;;  %vm401_vm3 = vcmask 31744  }
   0x2   :  { %v7059_v2 = vld [vmem:[%s8525_s2 + $0x18] sm:$0xff]  ;;  %6488 = vmatprep.subr.mxu0 %v67_v1  ;;  %v7070_v4 = vld [vmem:[%s8525_s2 + $0x10] sm:$0xff]  ;;  %v7079_v6 = vld [vmem:[%s8525_s2 + $0x8] sm:$0xff]  ;;  %s7002_s25 = smov 116   ;;  %s7003_s26 = smov 104   ;;  %vm436_vm4 = vcmask 1041409  }
   0x3   :  { %6503 = vmatpush3.msra.mxu1 %v7059_v2  ;;  %6489 = vmatpush3.msra.mxu0 %v67_v1  ;;  %v64_v7 = vld [vmem:[%s8524_s1] sm:$0xff]  ;;  %v61_v10 = vld [vmem:[%s8526_s0 + $0x8] sm:$0xff]  ;;  %s6997_s1 = smov 64   ;;  %s7004_s27 = smov 108   ;;  %v7006_v1 = vmov 1983009808  }
   0x4   :  { %6504 = vmatprep.subr.mxu1 %v6995_v0  ;;  %6490 = vmatprep.subr.mxu0 %v66_v3  ;;  %v7089_v8 = vld [vmem:[%s8525_s2] sm:$0xff]  ;;  %s7005_s28 = smov 100   ;;  %vm438_vm5 = vcmask 1042434   ;;  %vm440_vm6 = vcmask 1043459   ;;  %vm442_vm7 = vcmask 64512   ;;  %s7008_s14 = smov 32  }
   0x5   :  { %6505 = vmatpush3.msra.mxu1 %v7070_v4  ;;  %6491 = vmatpush3.msra.mxu0 %v66_v3  ;;  %v60_v9 = vld [vmem:[%s8526_s0] sm:$0xff]  ;;  %v335_v3 = vunpack.c.l.s4 %v7006_v1  ;;  %v7186_v1 = vld [vmem:[%s8528_s3 + $0x30] sm:$0xff]  ;;  %vm6287_vm8 = vcmask 130048   ;;  %vm6290_vm9 = vcmask 392192   ;;  %vm6292_vm10 = vcmask 523264  }
   0x6   :  { %6506 = vmatprep.subr.mxu1 %v6995_v0  ;;  %6492 = vmatprep.subr.mxu0 %v65_v5  ;;  %vm6294_vm11 = vcmask 654336   ;;  %vm6296_vm12 = vcmask 785408   ;;  %vm6298_vm13 = vcmask 916480  }
   0x7   :  { %6507 = vmatpush3.msra.mxu1 %v7079_v6  ;;  %6493 = vmatpush3.msra.mxu0 %v65_v5  ;;  %v337_v5 = vlaneseq }
   0x8   :  { %6508 = vmatprep.subr.mxu1 %v6995_v0  ;;  %6494 = vmatprep.subr.mxu0 %v64_v7 }
   0x9   :  { %6509 = vmatpush3.msra.mxu1 %v7089_v8  ;;  %6495 = vmatpush3.msra.mxu0 %v64_v7 }
   0xa   :  { %6496 = vmatprep.mubr.msk.f32.mxu0 %vm68_vm1, %v60_v9  ;;  %6511 = vmatmul.mubr.f32.vlgmr.msra.gmra.mxu1 %v6995_v0 }
   0xb   :  { %6497 = vmatmul.mubr.msk.f32.vlgmr.msra.gmra.mxu0 %vm68_vm1, %v61_v10  ;;  %6513 = vmatprep.subr.mxu1 %v6995_v0  ;;  %v336_v10 = vunpack.c.0.s8 %v335_v3  ;;  %v7192_v3 = vld [vmem:[%s8528_s3 + $0x28] sm:$0xff] }
   0xc   :  { %6515 = vmatprep.mubr.msk.f32.mxu1 %vm6996_vm0, %v6995_v0 }
  0xca   :  { %v235_v11 = vpop.f32.mrf.mxu1 }
  0xcb   :  { %247 = vrot.lane.b32.xlu0 %v235_v11, %s6997_s1  ;;  %v7107_v13 = vpop.f32.mrf.mxu0 }
  0xcc   :  { %v6512_v12 = vpop.f32.mrf.mxu1 }
  0xcd   :  { %v7109_v14 = vpop.f32.mrf.mxu0 }
  0xce   :  { %v239_v15 = vadd.f32 %v235_v11, %v7109_v14  ;;  %v338_v11 = vshrl.u32 %v337_v5, 7 }
  0xd0   :  { %v6313_v16 = vmul.f32 -1.442695, %v239_v15  ;;  %v7007_v15 = vmov 1934713408  }
  0xd2   :  { %6775 = vpow2.f32 %v6313_v16  ;;  %v368_v16 = vunpack.c.l.s4 %v7007_v15 }
  0xdf   :  { %v6776_v17 = vpop.eup %6775 }
  0xe0   :  { %v243_v18 = vadd.f32 1.0, %v6776_v17 }
  0xe2   :  { %6777 = vrcp.f32 %v243_v18 }
  0xef   :  { %v6778_v19 = vpop.eup %6777 }
  0xf0   :  { %v257_v25 = vsub.f32 1.0, %v6778_v19  ;;  %v263_v27 = vmul.f32 0.0, %v6778_v19 }
 0x13d   :  { %v248_v20 = vpop.permute.xlu0 %247 }
 0x13e   :  { %v250_v21 = vmul.f32 %v6778_v19, %v248_v20  ;;  %v7137_v19 = vsub.s32 %v336_v10, %v338_v11  ;;  %v7218_v10 = vld [vmem:[%s8528_s3 + $0x8] sm:$0xff] }
 0x140   :  { %252 = vrot.lane.b32.xlu0 %v250_v21, %s6997_s1 }
 0x1b2   :  { %v253_v22 = vpop.permute.xlu0 %252 }
 0x1b3   :  { %v255_v23 = vadd.f32 %v253_v22, %v7109_v14 }
 0x1b5   :  { %6779 = vtanh.f32 %v255_v23  ;;  %v369_v23 = vunpack.c.0.s8 %v368_v16 }
 0x1c2   :  { %v6780_v24 = vpop.eup %6779 }
 0x1c3   :  { %259 = vrot.lane.b32.xlu1 %v6780_v24, %s6998_s21 }
 0x1c7   :  { %266 = vrot.lane.b32.xlu1 %v7109_v14, %s6997_s1 }
 0x235   :  { %v260_v26 = vpop.permute.xlu1 %259 }
 0x236   :  { %v262_v28 = vmul.f32 %v260_v26, %v257_v25 }
 0x238   :  { %v264_v29 = vadd.f32 %v263_v27, %v262_v28 }
 0x239   :  { %v7117_v30 = vpop.permute.xlu1 %266 }
 0x23a   :  { %v269_v31 = vadd.f32 %v7117_v30, %v264_v29 }
 0x23c   :  { %v271_v32 = vsel %vm270_vm2, %v269_v31, 0.0 }
 0x23d   :  { %v272_v33 = vrot.slane %v271_v32, 4 }
 0x23f   :  { %v273_v34 = vadd.f32 %v272_v33, %v271_v32 }
 0x241   :  { %v274_v35 = vrot.slane %v273_v34, 2 }
 0x243   :  { %v275_v36 = vadd.f32 %v274_v35, %v273_v34 }
 0x245   :  { %v276_v37 = vrot.slane %v275_v36, 1 }
 0x247   :  { %v277_v38 = vadd.f32 %v276_v37, %v275_v36 }
 0x249   :  { %v279_v39 = vmul.f32 0.25, %v277_v38 }
 0x24b   :  { %v280_v40 = vsub.f32 %v269_v31, %v279_v39  ;;  %v7143_v31 = vsub.s32 %v369_v23, %v338_v11 }
 0x24d   :  { %v281_v41 = vmul.f32 %v280_v40, %v280_v40 }
 0x24f   :  { %v282_v42 = vsel %vm270_vm2, %v281_v41, 0.0 }
 0x250   :  { %v283_v43 = vrot.slane %v282_v42, 4 }
 0x252   :  { %v284_v44 = vadd.f32 %v283_v43, %v282_v42 }
 0x254   :  { %v285_v45 = vrot.slane %v284_v44, 2 }
 0x256   :  { %v286_v46 = vadd.f32 %v285_v45, %v284_v44 }
 0x258   :  { %v287_v47 = vrot.slane %v286_v46, 1 }
 0x25a   :  { %v288_v48 = vadd.f32 %v287_v47, %v286_v46  ;;  %v7156_v47 = vld [vmem:[%s8527_s4] sm:$0xff] }
 0x25b   :  { %6514 = vmatpush3.msra.mxu1 %v7156_v47 }
 0x25c   :  { %v289_v49 = vmul.f32 0.25, %v288_v48  ;;  %6518 = vmatprep.subr.mxu1 %v6995_v0  ;;  %v419_v48 = vand.u32 127, %v337_v5  ;;  %v7199_v5 = vld [vmem:[%s8528_s3 + $0x20] sm:$0xff] }
 0x25e   :  { %v290_v50 = vadd.f32 1e-05, %v289_v49  ;;  %v7160_v49 = vsub.s32 %v419_v48, %v338_v11  ;;  %v7224_v11 = vld [vmem:[%s8528_s3] sm:$0xff] }
 0x260   :  { %6781 = vrsqrt.f32 %v290_v50 }
 0x26d   :  { %v6782_v51 = vpop.eup %6781 }
 0x26e   :  { %v292_v52 = vmul.f32 %v6782_v51, %v280_v40 }
 0x270   :  { %v293_v53 = vmax.f32 %v292_v52, 0.0 }
 0x272   :  { %297 = vrot.lane.b32.xlu1 %v293_v53, %s6999_s22  ;;  %295 = vrot.lane.b32.xlu0 %v293_v53, %s7000_s23 }
 0x276   :  { %301 = vrot.lane.b32.xlu1 %v293_v53, %s7001_s24  ;;  %299 = vrot.lane.b32.xlu0 %v293_v53, %s7002_s25 }
 0x27a   :  { %305 = vrot.lane.b32.xlu1 %v293_v53, %s7003_s26  ;;  %303 = vrot.lane.b32.xlu0 %v293_v53, %s7004_s27 }
 0x27e   :  { %309 = vrot.lane.b32.xlu1 %v293_v53, %s6998_s21  ;;  %307 = vrot.lane.b32.xlu0 %v293_v53, %s7005_s28 }
 0x2e4   :  { %v298_v54 = vpop.permute.xlu1 %297  ;;  %v296_v55 = vpop.permute.xlu0 %295 }
 0x2e5   :  { %313 = vrot.lane.b32.xlu1 %v298_v54, %s6998_s21  ;;  %311 = vrot.lane.b32.xlu0 %v296_v55, %s6998_s21 }
 0x2e8   :  { %v302_v56 = vpop.permute.xlu1 %301  ;;  %v300_v57 = vpop.permute.xlu0 %299 }
 0x2e9   :  { %317 = vrot.lane.b32.xlu1 %v302_v56, %s6998_s21  ;;  %315 = vrot.lane.b32.xlu0 %v300_v57, %s6998_s21 }
 0x2ec   :  { %v306_v58 = vpop.permute.xlu1 %305  ;;  %v304_v59 = vpop.permute.xlu0 %303 }
 0x2ed   :  { %321 = vrot.lane.b32.xlu1 %v306_v58, %s6998_s21  ;;  %319 = vrot.lane.b32.xlu0 %v304_v59, %s6998_s21 }
 0x2f0   :  { %v308_v60 = vpop.permute.xlu0 %307  ;;  %v310_v61 = vpop.permute.xlu1 %309 }
 0x2f1   :  { %323 = vrot.lane.b32.xlu0 %v308_v60, %s6998_s21 }
 0x357   :  { %v314_v62 = vpop.permute.xlu1 %313  ;;  %v312_v63 = vpop.permute.xlu0 %311 }
 0x358   :  { %v333_v20 = vcombine.low %v310_v61, %v314_v62  ;;  %v62_v61 = vld [vmem:[%s8526_s0 + $0x10] sm:$0xff]  ;;  %v63_v62 = vld [vmem:[%s8526_s0 + $0x18] sm:$0xff] }
 0x359   :  { %6499 = vmatprep.mubr.msk.f32.mxu0 %vm68_vm1, %v62_v61 }
 0x35a   :  { %v340_v25 = vrot.slane %v333_v20, %v7137_v19  ;;  %6500 = vmatmul.mubr.msk.f32.gmra.mxu0 %vm68_vm1, %v63_v62 }
 0x35b   :  { %v318_v7 = vpop.permute.xlu1 %317  ;;  %v316_v9 = vpop.permute.xlu0 %315  ;;  %583 = vmatprep.mubr.f32.mxu0 %v6995_v0 }
 0x35c   :  { %v341_v12 = vcombine.low %v312_v63, %v316_v9  ;;  %v7181_v63 = vld [vmem:[%s8528_s3 + $0x38] sm:$0xff]  ;;  %v7212_v9 = vld [vmem:[%s8528_s3 + $0x10] sm:$0xff] }
 0x35d   :  { %543 = vmatprep.subr.mxu0 %v7181_v63 }
 0x35e   :  { %v348_v21 = vrot.slane %v341_v12, %v7137_v19  ;;  %544 = vmatpush1.msra.mxu0 %v7186_v1  ;;  %v7233_v12 = vld [vmem:[%s8529_s5] ss:$0 sm:$0xff] }
 0x35f   :  { %v322_v17 = vpop.permute.xlu1 %321  ;;  %v320_v18 = vpop.permute.xlu0 %319  ;;  %545 = vmatprep.subr.mxu0 %v7192_v3 }
 0x360   :  { %v349_v22 = vcombine.low %v318_v7, %v322_v17  ;;  %v365_v27 = vcombine.low %v340_v25, %v348_v21  ;;  %v366_v32 = vcombine.high %v340_v25, %v348_v21  ;;  %v7205_v7 = vld [vmem:[%s8528_s3 + $0x18] sm:$0xff]  ;;  %546 = vmatpush1.msra.mxu0 %v7199_v5 }
 0x361   :  { %547 = vmatprep.subr.mxu0 %v7205_v7 }
 0x362   :  { %v356_v28 = vrot.slane %v349_v22, %v7137_v19  ;;  %v373_v35 = vrot.slane %v365_v27, %v7143_v31  ;;  %v380_v40 = vrot.slane %v366_v32, %v7143_v31  ;;  %548 = vmatpush1.msra.mxu0 %v7212_v9 }
 0x363   :  { %v324_v24 = vpop.permute.xlu0 %323  ;;  %549 = vmatprep.subr.mxu0 %v7218_v10 }
 0x364   :  { %v357_v26 = vcombine.low %v320_v18, %v324_v24  ;;  %550 = vmatpush1.msra.mxu0 %v7224_v11 }
 0x365   :  { %6523 = vmatprep.subr.mxu0 %v6995_v0 }
 0x366   :  { %v364_v29 = vrot.slane %v357_v26, %v7137_v19 }
 0x368   :  { %v381_v33 = vcombine.low %v356_v28, %v364_v29  ;;  %v382_v34 = vcombine.high %v356_v28, %v364_v29 }
 0x36a   :  { %v389_v36 = vrot.slane %v381_v33, %v7143_v31  ;;  %v396_v37 = vrot.slane %v382_v34, %v7143_v31 }
 0x36c   :  { %v398_v38 = vcombine.high %v373_v35, %v389_v36  ;;  %v397_v39 = vcombine.low %v373_v35, %v389_v36  ;;  %v399_v43 = vcombine.low %v380_v40, %v396_v37  ;;  %v400_v44 = vcombine.high %v380_v40, %v396_v37 }
 0x36e   :  { %v405_v41 = vsel %vm401_vm3, %v398_v38, -inf  ;;  %v402_v42 = vsel %vm401_vm3, %v397_v39, -inf  ;;  %v408_v45 = vsel %vm401_vm3, %v399_v43, -inf  ;;  %v411_v46 = vsel %vm401_vm3, %v400_v44, -inf }
 0x36f   :  { %406 = vmax.xlane.f32.xlu0 %v405_v41  ;;  %403 = vmax.xlane.f32.xlu1 %v402_v42 }
 0x373   :  { %409 = vmax.xlane.f32.xlu0 %v408_v45  ;;  %412 = vmax.xlane.f32.xlu1 %v411_v46 }
 0x3f8   :  { %v407_v50 = vpop.xlane.xlu0 %406  ;;  %v404_v51 = vpop.xlane.xlu1 %403 }
 0x3f9   :  { %v427_v52 = vrot.slane %v407_v50, %v7160_v49  ;;  %v423_v53 = vrot.slane %v404_v51, %v7160_v49 }
 0x3fb   :  { %v437_v58 = vsel %vm436_vm4, %v427_v52, %v423_v53 }
 0x3fc   :  { %v410_v54 = vpop.xlane.xlu0 %409  ;;  %v413_v55 = vpop.xlane.xlu1 %412 }
 0x3fd   :  { %v431_v56 = vrot.slane %v410_v54, %v7160_v49  ;;  %v435_v57 = vrot.slane %v413_v55, %v7160_v49 }
 0x3ff   :  { %v439_v59 = vsel %vm438_vm5, %v431_v56, %v437_v58 }
 0x400   :  { %v441_v60 = vsel %vm440_vm6, %v435_v57, %v439_v59 }
 0x401   :  { %6516 = vmatmul.mubr.msk.f32.vlgmr.msra.gmra.mxu1 %vm442_vm7, %v441_v60 }
 0x402   :  { %6520 = vmatprep.mubr.msk.f32.mxu1 %vm6996_vm0, %v6995_v0 }
 0x41a   :  { %v7239_v20 = vpop.f32.mrf.mxu0 }
 0x41c   :  { %v7241_v21 = vpop.f32.mrf.mxu0 }
 0x4c1   :  { %v511_v15 = vpop.f32.mrf.mxu1 }
 0x4c2   :  { %v512_v16 = vadd.f32 %v7233_v12, %v511_v15 }
 0x4c3   :  { %v6517_v17 = vpop.f32.mrf.mxu1 }
 0x4c4   :  { %6783 = vtanh.f32 %v512_v16 }
 0x4d1   :  { %v6784_v18 = vpop.eup %6783 }
 0x4d2   :  { %6315 = vmatmul.mubr.msk.f32.vlgmr.msra.gmra.mxu0 %vm68_vm1, %v6784_v18 }
 0x4d3   :  { %6531 = vmatprep.mubr.msk.f32.mxu0 %vm6996_vm0, %v6995_v0 }
 0x592   :  { %v585_v22 = vpop.f32.mrf.mxu0 }
 0x593   :  { %v6316_v23 = vmul.f32 -1.442695, %v585_v22 }
 0x594   :  { %v587_v27 = vpop.f32.mrf.mxu0 }
 0x595   :  { %6785 = vpow2.f32 %v6316_v23 }
 0x5a2   :  { %v6786_v24 = vpop.eup %6785 }
 0x5a3   :  { %v593_v25 = vadd.f32 1.0, %v6786_v24 }
 0x5a5   :  { %6787 = vrcp.f32 %v593_v25 }
 0x5b2   :  { %v6788_v26 = vpop.eup %6787 }
 0x5b3   :  { %v596_v28 = vmul.f32 %v6788_v26, %v587_v27  ;;  %v603_v35 = vsub.f32 1.0, %v6788_v26 }
 0x5b5   :  { %598 = vrot.lane.b32.xlu0 %v596_v28, %s6997_s1 }
 0x5b9   :  { %615 = vrot.lane.b32.xlu0 %v585_v22, %s6997_s1 }
 0x627   :  { %v599_v29 = vpop.permute.xlu0 %598 }
 0x628   :  { %v601_v32 = vadd.f32 %v599_v29, %v585_v22 }
 0x62a   :  { %6789 = vtanh.f32 %v601_v32 }
 0x62b   :  { %v616_v40 = vpop.permute.xlu0 %615 }
 0x637   :  { %v6790_v33 = vpop.eup %6789 }
 0x638   :  { %605 = vrot.lane.b32.xlu1 %v6790_v33, %s6998_s21 }
 0x63c   :  { %609 = vrot.lane.b32.xlu1 %v6784_v18, %s7008_s14 }
 0x6aa   :  { %v606_v34 = vpop.permute.xlu1 %605 }
 0x6ab   :  { %v608_v37 = vmul.f32 %v606_v34, %v603_v35 }
 0x6ae   :  { %v610_v36 = vpop.permute.xlu1 %609 }
 0x6af   :  { %v612_v38 = vmul.f32 %v6788_v26, %v610_v36 }
 0x6b1   :  { %v613_v39 = vadd.f32 %v612_v38, %v608_v37 }
 0x6b3   :  { %v618_v41 = vadd.f32 %v616_v40, %v613_v39 }
 0x6b5   :  { %v619_v42 = vsel %vm270_vm2, %v618_v41, 0.0 }
 0x6b6   :  { %v620_v43 = vrot.slane %v619_v42, 4 }
 0x6b8   :  { %v621_v44 = vadd.f32 %v620_v43, %v619_v42 }
 0x6ba   :  { %v622_v45 = vrot.slane %v621_v44, 2 }
 0x6bc   :  { %v623_v46 = vadd.f32 %v622_v45, %v621_v44 }
 0x6be   :  { %v624_v48 = vrot.slane %v623_v46, 1 }
 0x6c0   :  { %v625_v50 = vadd.f32 %v624_v48, %v623_v46 }
 0x6c2   :  { %v626_v51 = vmul.f32 0.25, %v625_v50 }
 0x6c4   :  { %v627_v52 = vsub.f32 %v618_v41, %v626_v51 }
 0x6c6   :  { %v628_v53 = vmul.f32 %v627_v52, %v627_v52 }
 0x6c8   :  { %v629_v54 = vsel %vm270_vm2, %v628_v53, 0.0 }
 0x6c9   :  { %v630_v55 = vrot.slane %v629_v54, 4 }
 0x6cb   :  { %v631_v56 = vadd.f32 %v630_v55, %v629_v54 }
 0x6cd   :  { %v632_v57 = vrot.slane %v631_v56, 2 }
 0x6cf   :  { %v633_v58 = vadd.f32 %v632_v57, %v631_v56 }
 0x6d1   :  { %v634_v59 = vrot.slane %v633_v58, 1 }
 0x6d3   :  { %v635_v60 = vadd.f32 %v634_v59, %v633_v58 }
 0x6d5   :  { %v636_v61 = vmul.f32 0.25, %v635_v60 }
 0x6d7   :  { %v637_v62 = vadd.f32 1e-05, %v636_v61 }
 0x6d9   :  { %6791 = vrsqrt.f32 %v637_v62 }
 0x6e6   :  { %v6792_v15 = vpop.eup %6791 }
 0x6e7   :  { %v639_v16 = vmul.f32 %v6792_v15, %v627_v52 }
 0x6e9   :  { %v640_v17 = vmax.f32 %v639_v16, 0.0  ;;  %v7279_v16 = vld [vmem:[%s8527_s4 + $0x8] sm:$0xff] }
 0x6ea   :  { %6519 = vmatpush3.msra.mxu1 %v7279_v16 }
 0x6eb   :  { %644 = vrot.lane.b32.xlu0 %v640_v17, %s6999_s22  ;;  %642 = vrot.lane.b32.xlu1 %v640_v17, %s7000_s23 }
 0x6ec   :  { %6534 = vmatprep.subr.mxu1 %v6995_v0 }
 0x6ef   :  { %648 = vrot.lane.b32.xlu0 %v640_v17, %s7001_s24  ;;  %646 = vrot.lane.b32.xlu1 %v640_v17, %s7002_s25 }
 0x6f3   :  { %652 = vrot.lane.b32.xlu0 %v640_v17, %s7003_s26  ;;  %650 = vrot.lane.b32.xlu1 %v640_v17, %s7004_s27 }
 0x6f7   :  { %656 = vrot.lane.b32.xlu0 %v640_v17, %s6998_s21  ;;  %654 = vrot.lane.b32.xlu1 %v640_v17, %s7005_s28 }
 0x75d   :  { %v645_v18 = vpop.permute.xlu0 %644  ;;  %v643_v22 = vpop.permute.xlu1 %642 }
 0x75e   :  { %660 = vrot.lane.b32.xlu0 %v645_v18, %s6998_s21  ;;  %658 = vrot.lane.b32.xlu1 %v643_v22, %s6998_s21 }
 0x761   :  { %v649_v23 = vpop.permute.xlu0 %648  ;;  %v647_v24 = vpop.permute.xlu1 %646 }
 0x762   :  { %664 = vrot.lane.b32.xlu0 %v649_v23, %s6998_s21  ;;  %662 = vrot.lane.b32.xlu1 %v647_v24, %s6998_s21 }
 0x765   :  { %v653_v25 = vpop.permute.xlu0 %652  ;;  %v651_v26 = vpop.permute.xlu1 %650 }
 0x766   :  { %668 = vrot.lane.b32.xlu0 %v653_v25, %s6998_s21  ;;  %666 = vrot.lane.b32.xlu1 %v651_v26, %s6998_s21 }
 0x769   :  { %v655_v27 = vpop.permute.xlu1 %654  ;;  %v657_v28 = vpop.permute.xlu0 %656 }
 0x76a   :  { %670 = vrot.lane.b32.xlu1 %v655_v27, %s6998_s21 }
 0x7d0   :  { %v661_v29 = vpop.permute.xlu0 %660  ;;  %v659_v32 = vpop.permute.xlu1 %658 }
 0x7d1   :  { %v680_v38 = vcombine.low %v657_v28, %v661_v29 }
 0x7d3   :  { %v687_v42 = vrot.slane %v680_v38, %v7137_v19 }
 0x7d4   :  { %v665_v33 = vpop.permute.xlu0 %664  ;;  %v663_v34 = vpop.permute.xlu1 %662 }
 0x7d5   :  { %v688_v35 = vcombine.low %v659_v32, %v663_v34 }
 0x7d7   :  { %v695_v39 = vrot.slane %v688_v35, %v7137_v19 }
 0x7d8   :  { %v669_v36 = vpop.permute.xlu0 %668  ;;  %v667_v37 = vpop.permute.xlu1 %666 }
 0x7d9   :  { %v696_v40 = vcombine.low %v665_v33, %v669_v36  ;;  %v712_v44 = vcombine.low %v687_v42, %v695_v39  ;;  %v713_v48 = vcombine.high %v687_v42, %v695_v39  ;;  %v7309_v33 = vld [vmem:[%s8530_s6 + $0x10] sm:$0xff] }
 0x7db   :  { %v703_v45 = vrot.slane %v696_v40, %v7137_v19  ;;  %v720_v52 = vrot.slane %v712_v44, %v7143_v31  ;;  %v727_v57 = vrot.slane %v713_v48, %v7143_v31 }
 0x7dc   :  { %v671_v41 = vpop.permute.xlu1 %670 }
 0x7dd   :  { %v704_v43 = vcombine.low %v667_v37, %v671_v41 }
 0x7df   :  { %v711_v46 = vrot.slane %v704_v43, %v7137_v19 }
 0x7e1   :  { %v728_v50 = vcombine.low %v703_v45, %v711_v46  ;;  %v729_v51 = vcombine.high %v703_v45, %v711_v46 }
 0x7e3   :  { %v736_v53 = vrot.slane %v728_v50, %v7143_v31  ;;  %v743_v54 = vrot.slane %v729_v51, %v7143_v31 }
 0x7e5   :  { %v745_v55 = vcombine.high %v720_v52, %v736_v53  ;;  %v744_v56 = vcombine.low %v720_v52, %v736_v53  ;;  %v746_v60 = vcombine.low %v727_v57, %v743_v54  ;;  %v747_v62 = vcombine.high %v727_v57, %v743_v54 }
 0x7e7   :  { %v751_v58 = vsel %vm401_vm3, %v745_v55, -inf  ;;  %v748_v59 = vsel %vm401_vm3, %v744_v56, -inf  ;;  %v754_v61 = vsel %vm401_vm3, %v746_v60, -inf  ;;  %v757_v15 = vsel %vm401_vm3, %v747_v62, -inf }
 0x7e8   :  { %752 = vmax.xlane.f32.xlu1 %v751_v58  ;;  %749 = vmax.xlane.f32.xlu0 %v748_v59 }
 0x7ec   :  { %755 = vmax.xlane.f32.xlu0 %v754_v61 }
 0x7f0   :  { %758 = vmax.xlane.f32.xlu0 %v757_v15 }
 0x871   :  { %v750_v17 = vpop.xlane.xlu0 %749  ;;  %v753_v18 = vpop.xlane.xlu1 %752 }
 0x872   :  { %v771_v23 = vrot.slane %v753_v18, %v7160_v49  ;;  %v767_v24 = vrot.slane %v750_v17, %v7160_v49 }
 0x874   :  { %v780_v27 = vsel %vm436_vm4, %v771_v23, %v767_v24 }
 0x875   :  { %v756_v22 = vpop.xlane.xlu0 %755 }
 0x876   :  { %v775_v25 = vrot.slane %v756_v22, %v7160_v49 }
 0x878   :  { %v781_v29 = vsel %vm438_vm5, %v775_v25, %v780_v27 }
 0x879   :  { %v759_v26 = vpop.xlane.xlu0 %758 }
 0x87a   :  { %v779_v28 = vrot.slane %v759_v26, %v7160_v49 }
 0x87c   :  { %v782_v32 = vsel %vm440_vm6, %v779_v28, %v781_v29 }
 0x87d   :  { %6521 = vmatmul.mubr.msk.f32.vlgmr.msra.gmra.mxu1 %vm442_vm7, %v782_v32 }
 0x87e   :  { %6535 = vmatpush3.msra.mxu1 %v7059_v2  ;;  %6542 = vmatprep.mubr.msk.f32.mxu1 %vm6996_vm0, %v6995_v0  ;;  %v7304_v2 = vld [vmem:[%s8530_s6 + $0x18] sm:$0xff] }
 0x87f   :  { %6536 = vmatprep.subr.mxu1 %v6995_v0  ;;  %6524 = vmatpush3.msra.mxu0 %v7304_v2 }
 0x880   :  { %6537 = vmatpush3.msra.mxu1 %v7070_v4  ;;  %6525 = vmatprep.subr.mxu0 %v6995_v0  ;;  %v7316_v4 = vld [vmem:[%s8530_s6 + $0x8] sm:$0xff] }
 0x881   :  { %6538 = vmatprep.subr.mxu1 %v6995_v0  ;;  %6526 = vmatpush3.msra.mxu0 %v7309_v33 }
 0x882   :  { %6539 = vmatpush3.msra.mxu1 %v7079_v6  ;;  %6527 = vmatprep.subr.mxu0 %v6995_v0  ;;  %v7323_v6 = vld [vmem:[%s8530_s6] sm:$0xff] }
 0x883   :  { %6540 = vmatprep.subr.mxu1 %v6995_v0  ;;  %6528 = vmatpush3.msra.mxu0 %v7316_v4 }
 0x884   :  { %6541 = vmatpush3.msra.mxu1 %v7089_v8  ;;  %6529 = vmatprep.subr.mxu0 %v6995_v0  ;;  %v7332_v8 = vld [vmem:[%s8529_s5 + $0x1] ss:$0 sm:$0xff] }
 0x885   :  { %6545 = vmatprep.subr.mxu1 %v6995_v0  ;;  %6530 = vmatpush3.msra.mxu0 %v7323_v6 }
 0x886   :  { %6550 = vmatprep.subr.mxu0 %v6995_v0 }
 0x93d   :  { %v851_v34 = vpop.f32.mrf.mxu1 }
 0x93e   :  { %v852_v35 = vadd.f32 %v7332_v8, %v851_v34 }
 0x93f   :  { %v6522_v36 = vpop.f32.mrf.mxu1 }
 0x940   :  { %6793 = vtanh.f32 %v852_v35 }
 0x94d   :  { %v6794_v37 = vpop.eup %6793 }
 0x94e   :  { %6532 = vmatmul.mubr.msk.f32.vlgmr.msra.gmra.mxu0 %vm68_vm1, %v6794_v37  ;;  %6543 = vmatmul.mubr.msk.f32.vlgmr.msra.gmra.mxu1 %vm68_vm1, %v6794_v37  ;;  %v1025_v55 = vrot.slane %v6794_v37, 4 }
 0x94f   :  { %6546 = vmatpush3.msra.mxu1 %v7156_v47  ;;  %6547 = vmatprep.mubr.msk.f32.mxu1 %vm6996_vm0, %v6995_v0 }
 0x950   :  { %1310 = vmatprep.subr.mxu1 %v7181_v63  ;;  %6551 = vmatpush3.msra.mxu0 %v7279_v16 }
 0x951   :  { %6552 = vmatprep.mubr.msk.f32.mxu0 %vm6996_vm0, %v6995_v0  ;;  %6555 = vmatprep.subr.mxu0 %v6995_v0 }
 0xa0e   :  { %v7345_v38 = vpop.f32.mrf.mxu0  ;;  %v995_v39 = vpop.f32.mrf.mxu1 }
 0xa0f   :  { %v1000_v40 = vrot.slane %v995_v39, 4 }
 0xa10   :  { %v6533_v41 = vpop.f32.mrf.mxu0  ;;  %v6544_v42 = vpop.f32.mrf.mxu1 }
 0xa11   :  { %1009 = vrot.lane.b32.xlu1 %v1000_v40, %s6997_s1  ;;  %v1002_v43 = vadd.f32 %v1000_v40, %v7109_v14 }
 0xa13   :  { %v6320_v44 = vmul.f32 -1.442695, %v1002_v43 }
 0xa15   :  { %6795 = vpow2.f32 %v6320_v44 }
 0xa22   :  { %v6796_v45 = vpop.eup %6795 }
 0xa23   :  { %v1006_v46 = vadd.f32 1.0, %v6796_v45 }
 0xa25   :  { %6797 = vrcp.f32 %v1006_v46 }
 0xa32   :  { %v6798_v48 = vpop.eup %6797 }
 0xa33   :  { %v1019_v57 = vsub.f32 1.0, %v6798_v48 }
 0xa83   :  { %v1010_v50 = vpop.permute.xlu1 %1009 }
 0xa84   :  { %v1012_v51 = vmul.f32 %v6798_v48, %v1010_v50 }
 0xa86   :  { %1014 = vrot.lane.b32.xlu0 %v1012_v51, %s6997_s1 }
 0xaf8   :  { %v1015_v52 = vpop.permute.xlu0 %1014 }
 0xaf9   :  { %v1017_v53 = vadd.f32 %v1015_v52, %v7109_v14 }
 0xafb   :  { %6799 = vtanh.f32 %v1017_v53 }
 0xb08   :  { %v6800_v54 = vpop.eup %6799 }
 0xb09   :  { %1021 = vrot.lane.b32.xlu1 %v6800_v54, %s6998_s21 }
 0xb0d   :  { %1026 = vrot.lane.b32.xlu1 %v1025_v55, %s7008_s14 }
 0xb7b   :  { %v1022_v56 = vpop.permute.xlu1 %1021 }
 0xb7c   :  { %v1024_v59 = vmul.f32 %v1022_v56, %v1019_v57 }
 0xb7f   :  { %v1027_v58 = vpop.permute.xlu1 %1026 }
 0xb80   :  { %v1029_v60 = vmul.f32 %v6798_v48, %v1027_v58 }
 0xb82   :  { %v1030_v61 = vadd.f32 %v1029_v60, %v1024_v59 }
 0xb84   :  { %v1031_v62 = vadd.f32 %v1030_v61, %v7117_v30 }
 0xb86   :  { %v1033_v15 = vrot.slane %v1031_v62, 4 }
 0xb88   :  { %v1035_v17 = vsel %vm270_vm2, %v1033_v15, 0.0 }
 0xb89   :  { %v1036_v18 = vrot.slane %v1035_v17, 4 }
 0xb8b   :  { %v1037_v14 = vadd.f32 %v1036_v18, %v1035_v17 }
 0xb8d   :  { %v1038_v22 = vrot.slane %v1037_v14, 2 }
 0xb8f   :  { %v1039_v23 = vadd.f32 %v1038_v22, %v1037_v14 }
 0xb91   :  { %v1040_v24 = vrot.slane %v1039_v23, 1 }
 0xb93   :  { %v1041_v25 = vadd.f32 %v1040_v24, %v1039_v23 }
 0xb95   :  { %v1042_v26 = vmul.f32 0.25, %v1041_v25 }
 0xb97   :  { %v1043_v27 = vsub.f32 %v1031_v62, %v1042_v26 }
 0xb99   :  { %v1044_v28 = vmul.f32 %v1043_v27, %v1043_v27 }
 0xb9b   :  { %v1046_v29 = vrot.slane %v1044_v28, 4 }
 0xb9d   :  { %v1048_v32 = vsel %vm270_vm2, %v1046_v29, 0.0 }
 0xb9e   :  { %v1049_v34 = vrot.slane %v1048_v32, 4 }
 0xba0   :  { %v1050_v35 = vadd.f32 %v1049_v34, %v1048_v32 }
 0xba2   :  { %v1051_v36 = vrot.slane %v1050_v35, 2 }
 0xba4   :  { %v1052_v37 = vadd.f32 %v1051_v36, %v1050_v35 }
 0xba6   :  { %v1053_v30 = vrot.slane %v1052_v37, 1 }
 0xba8   :  { %v1054_v39 = vadd.f32 %v1053_v30, %v1052_v37 }
 0xbaa   :  { %v1055_v40 = vmul.f32 0.25, %v1054_v39 }
 0xbac   :  { %v1056_v41 = vadd.f32 1e-05, %v1055_v40 }
 0xbae   :  { %6801 = vrsqrt.f32 %v1056_v41 }
 0xbbb   :  { %v6802_v42 = vpop.eup %6801 }
 0xbbc   :  { %v1058_v43 = vmul.f32 %v6802_v42, %v1043_v27 }
 0xbbe   :  { %v1059_v44 = vmax.f32 %v1058_v43, 0.0 }
 0xbc0   :  { %1063 = vrot.lane.b32.xlu1 %v1059_v44, %s6999_s22  ;;  %1061 = vrot.lane.b32.xlu0 %v1059_v44, %s7000_s23  ;;  %v1075_v45 = vrot.slane %v1059_v44, 4 }
 0xbc4   :  { %1067 = vrot.lane.b32.xlu1 %v1059_v44, %s7001_s24  ;;  %1065 = vrot.lane.b32.xlu0 %v1059_v44, %s7002_s25 }
 0xbc8   :  { %1071 = vrot.lane.b32.xlu1 %v1059_v44, %s7003_s26  ;;  %1069 = vrot.lane.b32.xlu0 %v1059_v44, %s7004_s27 }
 0xbcc   :  { %1073 = vrot.lane.b32.xlu0 %v1059_v44, %s7005_s28  ;;  %1083 = vrot.lane.b32.xlu1 %v1075_v45, %s6998_s21 }
 0xc32   :  { %v1064_v46 = vpop.permute.xlu1 %1063  ;;  %v1062_v48 = vpop.permute.xlu0 %1061 }
 0xc33   :  { %v1077_v50 = vrot.slane %v1064_v46, 4  ;;  %v1076_v51 = vrot.slane %v1062_v48, 4 }
 0xc35   :  { %1085 = vrot.lane.b32.xlu0 %v1076_v51, %s6998_s21  ;;  %1087 = vrot.lane.b32.xlu1 %v1077_v50, %s6998_s21 }
 0xc36   :  { %v1068_v52 = vpop.permute.xlu1 %1067  ;;  %v1066_v53 = vpop.permute.xlu0 %1065 }
 0xc37   :  { %v1079_v54 = vrot.slane %v1068_v52, 4  ;;  %v1078_v55 = vrot.slane %v1066_v53, 4 }
 0xc39   :  { %1089 = vrot.lane.b32.xlu0 %v1078_v55, %s6998_s21  ;;  %1091 = vrot.lane.b32.xlu1 %v1079_v54, %s6998_s21 }
 0xc3a   :  { %v1072_v56 = vpop.permute.xlu1 %1071  ;;  %v1070_v57 = vpop.permute.xlu0 %1069 }
 0xc3b   :  { %v1081_v58 = vrot.slane %v1072_v56, 4  ;;  %v1080_v59 = vrot.slane %v1070_v57, 4 }
 0xc3d   :  { %1093 = vrot.lane.b32.xlu0 %v1080_v59, %s6998_s21  ;;  %1095 = vrot.lane.b32.xlu1 %v1081_v58, %s6998_s21 }
 0xc3e   :  { %v1074_v60 = vpop.permute.xlu0 %1073  ;;  %v1084_v62 = vpop.permute.xlu1 %1083 }
 0xc3f   :  { %v1082_v61 = vrot.slane %v1074_v60, 4 }
 0xc41   :  { %1097 = vrot.lane.b32.xlu0 %v1082_v61, %s6998_s21 }
 0xca7   :  { %v1086_v15 = vpop.permute.xlu0 %1085  ;;  %v1088_v17 = vpop.permute.xlu1 %1087 }
 0xca8   :  { %v1107_v25 = vcombine.low %v1084_v62, %v1088_v17 }
 0xcaa   :  { %v1114_v29 = vrot.slane %v1107_v25, %v7137_v19  ;;  %v7421_v25 = vld [vmem:[%s8525_s2 + $0x8] sm:$0xff] }
 0xcab   :  { %v1090_v18 = vpop.permute.xlu0 %1089  ;;  %v1092_v14 = vpop.permute.xlu1 %1091 }
 0xcac   :  { %v1115_v22 = vcombine.low %v1086_v15, %v1090_v18 }
 0xcae   :  { %v1122_v26 = vrot.slane %v1115_v22, %v7137_v19 }
 0xcaf   :  { %v1094_v23 = vpop.permute.xlu0 %1093  ;;  %v1096_v24 = vpop.permute.xlu1 %1095 }
 0xcb0   :  { %v1123_v27 = vcombine.low %v1092_v14, %v1096_v24  ;;  %v1139_v34 = vcombine.low %v1114_v29, %v1122_v26  ;;  %v1140_v37 = vcombine.high %v1114_v29, %v1122_v26  ;;  %v7405_v24 = vld [vmem:[%s8525_s2 + $0x18] sm:$0xff]  ;;  %v7428_v26 = vld [vmem:[%s8525_s2] sm:$0xff] }
 0xcb2   :  { %v1130_v35 = vrot.slane %v1123_v27, %v7137_v19  ;;  %v1147_v40 = vrot.slane %v1139_v34, %v7143_v31  ;;  %v1154_v45 = vrot.slane %v1140_v37, %v7143_v31 }
 0xcb3   :  { %v1098_v28 = vpop.permute.xlu0 %1097 }
 0xcb4   :  { %v1131_v32 = vcombine.low %v1094_v23, %v1098_v28 }
 0xcb6   :  { %v1138_v36 = vrot.slane %v1131_v32, %v7137_v19 }
 0xcb8   :  { %v1155_v30 = vcombine.low %v1130_v35, %v1138_v36  ;;  %v1156_v39 = vcombine.high %v1130_v35, %v1138_v36 }
 0xcba   :  { %v1163_v41 = vrot.slane %v1155_v30, %v7143_v31  ;;  %v1170_v42 = vrot.slane %v1156_v39, %v7143_v31 }
 0xcbc   :  { %v1172_v43 = vcombine.high %v1147_v40, %v1163_v41  ;;  %v1171_v44 = vcombine.low %v1147_v40, %v1163_v41  ;;  %v1173_v50 = vcombine.low %v1154_v45, %v1170_v42  ;;  %v1174_v51 = vcombine.high %v1154_v45, %v1170_v42 }
 0xcbe   :  { %v1178_v46 = vsel %vm401_vm3, %v1172_v43, -inf  ;;  %v1175_v48 = vsel %vm401_vm3, %v1171_v44, -inf  ;;  %v1181_v52 = vsel %vm401_vm3, %v1173_v50, -inf  ;;  %v1184_v53 = vsel %vm401_vm3, %v1174_v51, -inf }
 0xcbf   :  { %1179 = vmax.xlane.f32.xlu0 %v1178_v46  ;;  %1176 = vmax.xlane.f32.xlu1 %v1175_v48 }
 0xcc3   :  { %1182 = vmax.xlane.f32.xlu0 %v1181_v52  ;;  %1185 = vmax.xlane.f32.xlu1 %v1184_v53 }
 0xd48   :  { %v1180_v54 = vpop.xlane.xlu0 %1179  ;;  %v1177_v55 = vpop.xlane.xlu1 %1176 }
 0xd49   :  { %v1198_v56 = vrot.slane %v1180_v54, %v7160_v49  ;;  %v1194_v57 = vrot.slane %v1177_v55, %v7160_v49 }
 0xd4b   :  { %v1207_v62 = vsel %vm436_vm4, %v1198_v56, %v1194_v57 }
 0xd4c   :  { %v1183_v58 = vpop.xlane.xlu0 %1182  ;;  %v1186_v59 = vpop.xlane.xlu1 %1185 }
 0xd4d   :  { %v1202_v60 = vrot.slane %v1183_v58, %v7160_v49  ;;  %v1206_v61 = vrot.slane %v1186_v59, %v7160_v49 }
 0xd4f   :  { %v1208_v15 = vsel %vm438_vm5, %v1202_v60, %v1207_v62 }
 0xd50   :  { %v1209_v17 = vsel %vm440_vm6, %v1206_v61, %v1208_v15 }
 0xd51   :  { %6548 = vmatmul.mubr.msk.f32.vlgmr.msra.gmra.mxu1 %vm442_vm7, %v1209_v17 }
 0xd52   :  { %1311 = vmatpush1.msra.mxu1 %v7186_v1  ;;  %1350 = vmatprep.mubr.f32.mxu1 %v6995_v0 }
 0xd53   :  { %1312 = vmatprep.subr.mxu1 %v7192_v3 }
 0xd54   :  { %1313 = vmatpush1.msra.mxu1 %v7199_v5 }
 0xd55   :  { %1314 = vmatprep.subr.mxu1 %v7205_v7 }
 0xd56   :  { %1315 = vmatpush1.msra.mxu1 %v7212_v9 }
 0xd57   :  { %1316 = vmatprep.subr.mxu1 %v7218_v10 }
 0xd58   :  { %1317 = vmatpush1.msra.mxu1 %v7224_v11 }
 0xd59   :  { %6566 = vmatprep.subr.mxu1 %v6995_v0 }
 0xe11   :  { %v1278_v18 = vpop.f32.mrf.mxu1 }
 0xe12   :  { %v1279_v14 = vadd.f32 %v7233_v12, %v1278_v18  ;;  %v7414_v12 = vld [vmem:[%s8525_s2 + $0x10] sm:$0xff] }
 0xe13   :  { %v6549_v22 = vpop.f32.mrf.mxu1 }
 0xe14   :  { %6803 = vtanh.f32 %v1279_v14 }
 0xe21   :  { %v6804_v23 = vpop.eup %6803 }
 0xe22   :  { %6322 = vmatmul.mubr.msk.f32.vlgmr.msra.gmra.mxu1 %vm68_vm1, %v6804_v23 }
 0xe23   :  { %6567 = vmatpush3.msra.mxu1 %v7405_v24  ;;  %6574 = vmatprep.mubr.msk.f32.mxu1 %vm6996_vm0, %v6995_v0 }
 0xe24   :  { %6568 = vmatprep.subr.mxu1 %v6995_v0 }
 0xe25   :  { %6569 = vmatpush3.msra.mxu1 %v7414_v12 }
 0xe26   :  { %6570 = vmatprep.subr.mxu1 %v6995_v0 }
 0xe27   :  { %6571 = vmatpush3.msra.mxu1 %v7421_v25 }
 0xe28   :  { %6572 = vmatprep.subr.mxu1 %v6995_v0 }
 0xe29   :  { %6573 = vmatpush3.msra.mxu1 %v7428_v26 }
 0xe2a   :  { %2064 = vmatprep.subr.mxu1 %v7181_v63 }
 0xee2   :  { %v1352_v27 = vpop.f32.mrf.mxu1 }
 0xee3   :  { %v6323_v28 = vmul.f32 -1.442695, %v1352_v27 }
 0xee4   :  { %v1354_v35 = vpop.f32.mrf.mxu1 }
 0xee5   :  { %6805 = vpow2.f32 %v6323_v28 }
 0xef2   :  { %v6806_v29 = vpop.eup %6805 }
 0xef3   :  { %v1360_v32 = vadd.f32 1.0, %v6806_v29 }
 0xef5   :  { %6807 = vrcp.f32 %v1360_v32 }
 0xf02   :  { %v6808_v34 = vpop.eup %6807 }
 0xf03   :  { %v1363_v36 = vmul.f32 %v6808_v34, %v1354_v35  ;;  %v1370_v40 = vsub.f32 1.0, %v6808_v34 }
 0xf05   :  { %1365 = vrot.lane.b32.xlu0 %v1363_v36, %s6997_s1 }
 0xf09   :  { %1382 = vrot.lane.b32.xlu0 %v1352_v27, %s6997_s1 }
 0xf77   :  { %v1366_v37 = vpop.permute.xlu0 %1365 }
 0xf78   :  { %v1368_v30 = vadd.f32 %v1366_v37, %v1352_v27 }
 0xf7a   :  { %6809 = vtanh.f32 %v1368_v30 }
 0xf7b   :  { %v1383_v45 = vpop.permute.xlu0 %1382 }
 0xf87   :  { %v6810_v39 = vpop.eup %6809 }
 0xf88   :  { %1372 = vrot.lane.b32.xlu1 %v6810_v39, %s6998_s21 }
 0xf8c   :  { %1376 = vrot.lane.b32.xlu1 %v6804_v23, %s7008_s14 }
 0xffa   :  { %v1373_v63 = vpop.permute.xlu1 %1372 }
 0xffb   :  { %v1375_v42 = vmul.f32 %v1373_v63, %v1370_v40 }
 0xffe   :  { %v1377_v41 = vpop.permute.xlu1 %1376 }
 0xfff   :  { %v1379_v43 = vmul.f32 %v6808_v34, %v1377_v41 }
0x1001   :  { %v1380_v44 = vadd.f32 %v1379_v43, %v1375_v42 }
0x1003   :  { %v1385_v46 = vadd.f32 %v1383_v45, %v1380_v44 }
0x1005   :  { %v1386_v48 = vsel %vm270_vm2, %v1385_v46, 0.0 }
0x1006   :  { %v1387_v50 = vrot.slane %v1386_v48, 4 }
0x1008   :  { %v1388_v51 = vadd.f32 %v1387_v50, %v1386_v48 }
0x100a   :  { %v1389_v52 = vrot.slane %v1388_v51, 2 }
0x100c   :  { %v1390_v53 = vadd.f32 %v1389_v52, %v1388_v51 }
0x100e   :  { %v1391_v54 = vrot.slane %v1390_v53, 1 }
0x1010   :  { %v1392_v55 = vadd.f32 %v1391_v54, %v1390_v53 }
0x1012   :  { %v1393_v56 = vmul.f32 0.25, %v1392_v55 }
0x1014   :  { %v1394_v57 = vsub.f32 %v1385_v46, %v1393_v56 }
0x1016   :  { %v1395_v58 = vmul.f32 %v1394_v57, %v1394_v57 }
0x1018   :  { %v1396_v59 = vsel %vm270_vm2, %v1395_v58, 0.0 }
0x1019   :  { %v1397_v60 = vrot.slane %v1396_v59, 4 }
0x101b   :  { %v1398_v61 = vadd.f32 %v1397_v60, %v1396_v59 }
0x101d   :  { %v1399_v62 = vrot.slane %v1398_v61, 2 }
0x101f   :  { %v1400_v15 = vadd.f32 %v1399_v62, %v1398_v61 }
0x1021   :  { %v1401_v17 = vrot.slane %v1400_v15, 1 }
0x1023   :  { %v1402_v18 = vadd.f32 %v1401_v17, %v1400_v15 }
0x1025   :  { %v1403_v14 = vmul.f32 0.25, %v1402_v18 }
0x1027   :  { %v1404_v22 = vadd.f32 1e-05, %v1403_v14 }
0x1029   :  { %6811 = vrsqrt.f32 %v1404_v22 }
0x1036   :  { %v6812_v23 = vpop.eup %6811 }
0x1037   :  { %v1406_v27 = vmul.f32 %v6812_v23, %v1394_v57 }
0x1039   :  { %v1407_v28 = vmax.f32 %v1406_v27, 0.0 }
0x103b   :  { %1411 = vrot.lane.b32.xlu0 %v1407_v28, %s6999_s22  ;;  %1409 = vrot.lane.b32.xlu1 %v1407_v28, %s7000_s23 }
0x103f   :  { %1415 = vrot.lane.b32.xlu0 %v1407_v28, %s7001_s24  ;;  %1413 = vrot.lane.b32.xlu1 %v1407_v28, %s7002_s25 }
0x1043   :  { %1419 = vrot.lane.b32.xlu0 %v1407_v28, %s7003_s26  ;;  %1417 = vrot.lane.b32.xlu1 %v1407_v28, %s7004_s27 }
0x1047   :  { %1423 = vrot.lane.b32.xlu0 %v1407_v28, %s6998_s21  ;;  %1421 = vrot.lane.b32.xlu1 %v1407_v28, %s7005_s28 }
0x10ad   :  { %v1412_v29 = vpop.permute.xlu0 %1411  ;;  %v1410_v32 = vpop.permute.xlu1 %1409 }
0x10ae   :  { %1427 = vrot.lane.b32.xlu0 %v1412_v29, %s6998_s21  ;;  %1425 = vrot.lane.b32.xlu1 %v1410_v32, %s6998_s21 }
0x10b1   :  { %v1416_v34 = vpop.permute.xlu0 %1415  ;;  %v1414_v35 = vpop.permute.xlu1 %1413 }
0x10b2   :  { %1431 = vrot.lane.b32.xlu0 %v1416_v34, %s6998_s21  ;;  %1429 = vrot.lane.b32.xlu1 %v1414_v35, %s6998_s21 }
0x10b5   :  { %v1420_v36 = vpop.permute.xlu0 %1419  ;;  %v1418_v37 = vpop.permute.xlu1 %1417 }
0x10b6   :  { %1435 = vrot.lane.b32.xlu0 %v1420_v36, %s6998_s21  ;;  %1433 = vrot.lane.b32.xlu1 %v1418_v37, %s6998_s21 }
0x10b9   :  { %v1422_v30 = vpop.permute.xlu1 %1421  ;;  %v1424_v39 = vpop.permute.xlu0 %1423 }
0x10ba   :  { %1437 = vrot.lane.b32.xlu1 %v1422_v30, %s6998_s21 }
0x1120   :  { %v1428_v63 = vpop.permute.xlu0 %1427  ;;  %v1426_v40 = vpop.permute.xlu1 %1425 }
0x1121   :  { %v1447_v46 = vcombine.low %v1424_v39, %v1428_v63 }
0x1123   :  { %v1454_v52 = vrot.slane %v1447_v46, %v7137_v19 }
0x1124   :  { %v1432_v41 = vpop.permute.xlu0 %1431  ;;  %v1430_v42 = vpop.permute.xlu1 %1429 }
0x1125   :  { %v1455_v43 = vcombine.low %v1426_v40, %v1430_v42 }
0x1127   :  { %v1462_v48 = vrot.slane %v1455_v43, %v7137_v19 }
0x1128   :  { %v1436_v44 = vpop.permute.xlu0 %1435  ;;  %v1434_v45 = vpop.permute.xlu1 %1433 }
0x1129   :  { %v1463_v50 = vcombine.low %v1432_v41, %v1436_v44  ;;  %v1479_v54 = vcombine.low %v1454_v52, %v1462_v48  ;;  %v1480_v57 = vcombine.high %v1454_v52, %v1462_v48 }
0x112b   :  { %v1470_v55 = vrot.slane %v1463_v50, %v7137_v19  ;;  %v1487_v60 = vrot.slane %v1479_v54, %v7143_v31  ;;  %v1494_v18 = vrot.slane %v1480_v57, %v7143_v31 }
0x112c   :  { %v1438_v51 = vpop.permute.xlu1 %1437 }
0x112d   :  { %v1471_v53 = vcombine.low %v1434_v45, %v1438_v51 }
0x112f   :  { %v1478_v56 = vrot.slane %v1471_v53, %v7137_v19 }
0x1131   :  { %v1495_v58 = vcombine.low %v1470_v55, %v1478_v56  ;;  %v1496_v59 = vcombine.high %v1470_v55, %v1478_v56 }
0x1133   :  { %v1503_v61 = vrot.slane %v1495_v58, %v7143_v31  ;;  %v1510_v62 = vrot.slane %v1496_v59, %v7143_v31 }
0x1135   :  { %v1512_v15 = vcombine.high %v1487_v60, %v1503_v61  ;;  %v1511_v17 = vcombine.low %v1487_v60, %v1503_v61  ;;  %v1513_v23 = vcombine.low %v1494_v18, %v1510_v62  ;;  %v1514_v28 = vcombine.high %v1494_v18, %v1510_v62 }
0x1137   :  { %v1518_v14 = vsel %vm401_vm3, %v1512_v15, -inf  ;;  %v1515_v22 = vsel %vm401_vm3, %v1511_v17, -inf  ;;  %v1521_v27 = vsel %vm401_vm3, %v1513_v23, -inf  ;;  %v1524_v29 = vsel %vm401_vm3, %v1514_v28, -inf }
0x1138   :  { %1519 = vmax.xlane.f32.xlu1 %v1518_v14  ;;  %1516 = vmax.xlane.f32.xlu0 %v1515_v22 }
0x113c   :  { %1522 = vmax.xlane.f32.xlu0 %v1521_v27 }
0x1140   :  { %1525 = vmax.xlane.f32.xlu0 %v1524_v29 }
0x11c1   :  { %v1517_v32 = vpop.xlane.xlu0 %1516  ;;  %v1520_v34 = vpop.xlane.xlu1 %1519 }
0x11c2   :  { %v1538_v36 = vrot.slane %v1520_v34, %v7160_v49  ;;  %v1534_v37 = vrot.slane %v1517_v32, %v7160_v49 }
0x11c4   :  { %v1547_v63 = vsel %vm436_vm4, %v1538_v36, %v1534_v37 }
0x11c5   :  { %v1523_v35 = vpop.xlane.xlu0 %1522 }
0x11c6   :  { %v1542_v30 = vrot.slane %v1523_v35, %v7160_v49 }
0x11c8   :  { %v1548_v41 = vsel %vm438_vm5, %v1542_v30, %v1547_v63 }
0x11c9   :  { %v1526_v39 = vpop.xlane.xlu0 %1525 }
0x11ca   :  { %v1546_v40 = vrot.slane %v1526_v39, %v7160_v49 }
0x11cc   :  { %v1549_v42 = vsel %vm440_vm6, %v1546_v40, %v1548_v41 }
0x11cd   :  { %6553 = vmatmul.mubr.msk.f32.vlgmr.msra.gmra.mxu0 %vm442_vm7, %v1549_v42 }
0x11ce   :  { %6556 = vmatpush3.msra.mxu0 %v7304_v2  ;;  %6563 = vmatprep.mubr.msk.f32.mxu0 %vm6996_vm0, %v6995_v0 }
0x11cf   :  { %6557 = vmatprep.subr.mxu0 %v6995_v0 }
0x11d0   :  { %6558 = vmatpush3.msra.mxu0 %v7309_v33 }
0x11d1   :  { %6559 = vmatprep.subr.mxu0 %v6995_v0 }
0x11d2   :  { %6560 = vmatpush3.msra.mxu0 %v7316_v4 }
0x11d3   :  { %6561 = vmatprep.subr.mxu0 %v6995_v0 }
0x11d4   :  { %6562 = vmatpush3.msra.mxu0 %v7323_v6 }
0x11d5   :  { %6577 = vmatprep.subr.mxu0 %v6995_v0 }
0x128d   :  { %v1618_v43 = vpop.f32.mrf.mxu0 }
0x128e   :  { %v1619_v2 = vadd.f32 %v7332_v8, %v1618_v43 }
0x128f   :  { %v6554_v44 = vpop.f32.mrf.mxu0 }
0x1290   :  { %6813 = vtanh.f32 %v1619_v2 }
0x129d   :  { %v6814_v45 = vpop.eup %6813 }
0x129e   :  { %6564 = vmatmul.mubr.msk.f32.vlgmr.msra.gmra.mxu0 %vm68_vm1, %v6814_v45  ;;  %6575 = vmatmul.mubr.msk.f32.vlgmr.msra.gmra.mxu1 %vm68_vm1, %v6814_v45 }
0x129f   :  { %6578 = vmatpush3.msra.mxu0 %v7156_v47  ;;  %6579 = vmatprep.mubr.msk.f32.mxu0 %vm6996_vm0, %v6995_v0 }
0x12a0   :  { %2065 = vmatpush1.msra.mxu1 %v7186_v1  ;;  %2104 = vmatprep.mubr.f32.mxu1 %v6995_v0 }
0x12a1   :  { %2066 = vmatprep.subr.mxu1 %v7192_v3  ;;  %6582 = vmatprep.subr.mxu0 %v6995_v0 }
0x12a2   :  { %2067 = vmatpush1.msra.mxu1 %v7199_v5 }
0x12a3   :  { %2068 = vmatprep.subr.mxu1 %v7205_v7 }
0x12a4   :  { %2069 = vmatpush1.msra.mxu1 %v7212_v9 }
0x12a5   :  { %2070 = vmatprep.subr.mxu1 %v7218_v10 }
0x12a6   :  { %2071 = vmatpush1.msra.mxu1 %v7224_v11 }
0x12a7   :  { %6598 = vmatprep.subr.mxu1 %v6995_v0 }
0x135e   :  { %v7499_v47 = vpop.f32.mrf.mxu0  ;;  %v1762_v1 = vpop.f32.mrf.mxu1 }
0x135f   :  { %1774 = vrot.lane.b32.xlu1 %v1762_v1, %s6997_s1  ;;  %v1766_v4 = vadd.f32 %v7107_v13, %v1762_v1 }
0x1360   :  { %v6565_v3 = vpop.f32.mrf.mxu0  ;;  %v6576_v33 = vpop.f32.mrf.mxu1 }
0x1361   :  { %v6327_v5 = vmul.f32 -1.442695, %v1766_v4 }
0x1363   :  { %6815 = vpow2.f32 %v6327_v5 }
0x1370   :  { %v6816_v7 = vpop.eup %6815 }
0x1371   :  { %v1770_v6 = vadd.f32 1.0, %v6816_v7 }
0x1373   :  { %6817 = vrcp.f32 %v1770_v6 }
0x1380   :  { %v6818_v9 = vpop.eup %6817 }
0x1381   :  { %v1784_v51 = vsub.f32 1.0, %v6818_v9 }
0x13d1   :  { %v1775_v10 = vpop.permute.xlu1 %1774 }
0x13d2   :  { %v1777_v8 = vmul.f32 %v6818_v9, %v1775_v10 }
0x13d4   :  { %1779 = vrot.lane.b32.xlu0 %v1777_v8, %s6997_s1 }
0x13d8   :  { %1796 = vrot.lane.b32.xlu0 %v7107_v13, %s6997_s1 }
0x1446   :  { %v1780_v11 = vpop.permute.xlu0 %1779 }
0x1447   :  { %v1782_v46 = vadd.f32 %v7107_v13, %v1780_v11 }
0x1449   :  { %6819 = vtanh.f32 %v1782_v46 }
0x144a   :  { %v7509_v56 = vpop.permute.xlu0 %1796 }
0x1456   :  { %v6820_v48 = vpop.eup %6819 }
0x1457   :  { %1786 = vrot.lane.b32.xlu1 %v6820_v48, %s6998_s21 }
0x145b   :  { %1790 = vrot.lane.b32.xlu1 %v6814_v45, %s7008_s14 }
0x14c9   :  { %v1787_v50 = vpop.permute.xlu1 %1786 }
0x14ca   :  { %v1789_v53 = vmul.f32 %v1787_v50, %v1784_v51 }
0x14cd   :  { %v1791_v52 = vpop.permute.xlu1 %1790 }
0x14ce   :  { %v1793_v54 = vmul.f32 %v6818_v9, %v1791_v52 }
0x14d0   :  { %v1794_v55 = vadd.f32 %v1793_v54, %v1789_v53 }
0x14d2   :  { %v1799_v57 = vadd.f32 %v7509_v56, %v1794_v55 }
0x14d4   :  { %v1800_v58 = vsel %vm270_vm2, %v1799_v57, 0.0 }
0x14d5   :  { %v1801_v59 = vrot.slane %v1800_v58, 4 }
0x14d7   :  { %v1802_v60 = vadd.f32 %v1801_v59, %v1800_v58 }
0x14d9   :  { %v1803_v61 = vrot.slane %v1802_v60, 2 }
0x14db   :  { %v1804_v62 = vadd.f32 %v1803_v61, %v1802_v60 }
0x14dd   :  { %v1805_v15 = vrot.slane %v1804_v62, 1 }
0x14df   :  { %v1806_v17 = vadd.f32 %v1805_v15, %v1804_v62 }
0x14e1   :  { %v1807_v18 = vmul.f32 0.25, %v1806_v17 }
0x14e3   :  { %v1808_v14 = vsub.f32 %v1799_v57, %v1807_v18 }
0x14e5   :  { %v1809_v22 = vmul.f32 %v1808_v14, %v1808_v14 }
0x14e7   :  { %v1810_v23 = vsel %vm270_vm2, %v1809_v22, 0.0 }
0x14e8   :  { %v1811_v27 = vrot.slane %v1810_v23, 4 }
0x14ea   :  { %v1812_v28 = vadd.f32 %v1811_v27, %v1810_v23 }
0x14ec   :  { %v1813_v29 = vrot.slane %v1812_v28, 2 }
0x14ee   :  { %v1814_v32 = vadd.f32 %v1813_v29, %v1812_v28 }
0x14f0   :  { %v1815_v34 = vrot.slane %v1814_v32, 1 }
0x14f2   :  { %v1816_v35 = vadd.f32 %v1815_v34, %v1814_v32 }
0x14f4   :  { %v1817_v36 = vmul.f32 0.25, %v1816_v35 }
0x14f6   :  { %v1818_v37 = vadd.f32 1e-05, %v1817_v36 }
0x14f8   :  { %6821 = vrsqrt.f32 %v1818_v37 }
0x1505   :  { %v6822_v30 = vpop.eup %6821 }
0x1506   :  { %v1820_v39 = vmul.f32 %v6822_v30, %v1808_v14 }
0x1508   :  { %v1821_v63 = vmax.f32 %v1820_v39, 0.0 }
0x150a   :  { %1825 = vrot.lane.b32.xlu0 %v1821_v63, %s6999_s22  ;;  %1823 = vrot.lane.b32.xlu1 %v1821_v63, %s7000_s23 }
0x150e   :  { %1829 = vrot.lane.b32.xlu0 %v1821_v63, %s7001_s24  ;;  %1827 = vrot.lane.b32.xlu1 %v1821_v63, %s7002_s25 }
0x1512   :  { %1833 = vrot.lane.b32.xlu0 %v1821_v63, %s7003_s26  ;;  %1831 = vrot.lane.b32.xlu1 %v1821_v63, %s7004_s27 }
0x1516   :  { %1837 = vrot.lane.b32.xlu0 %v1821_v63, %s6998_s21  ;;  %1835 = vrot.lane.b32.xlu1 %v1821_v63, %s7005_s28 }
0x157c   :  { %v1826_v40 = vpop.permute.xlu0 %1825  ;;  %v1824_v41 = vpop.permute.xlu1 %1823 }
0x157d   :  { %1841 = vrot.lane.b32.xlu0 %v1826_v40, %s6998_s21  ;;  %1839 = vrot.lane.b32.xlu1 %v1824_v41, %s6998_s21 }
0x1580   :  { %v1830_v42 = vpop.permute.xlu0 %1829  ;;  %v1828_v43 = vpop.permute.xlu1 %1827 }
0x1581   :  { %1845 = vrot.lane.b32.xlu0 %v1830_v42, %s6998_s21  ;;  %1843 = vrot.lane.b32.xlu1 %v1828_v43, %s6998_s21  ;;  %v7556_v42 = vld [vmem:[%s8529_s5] ss:$0 sm:$0xff] }
0x1584   :  { %v1834_v2 = vpop.permute.xlu0 %1833  ;;  %v1832_v44 = vpop.permute.xlu1 %1831 }
0x1585   :  { %1849 = vrot.lane.b32.xlu0 %v1834_v2, %s6998_s21  ;;  %1847 = vrot.lane.b32.xlu1 %v1832_v44, %s6998_s21 }
0x1588   :  { %v1836_v45 = vpop.permute.xlu1 %1835  ;;  %v1838_v1 = vpop.permute.xlu0 %1837 }
0x1589   :  { %1851 = vrot.lane.b32.xlu1 %v1836_v45, %s6998_s21 }
0x15ef   :  { %v1842_v3 = vpop.permute.xlu0 %1841  ;;  %v1840_v33 = vpop.permute.xlu1 %1839 }
0x15f0   :  { %v1861_v10 = vcombine.low %v1838_v1, %v1842_v3 }
0x15f2   :  { %v1868_v48 = vrot.slane %v1861_v10, %v7137_v19 }
0x15f3   :  { %v1846_v4 = vpop.permute.xlu0 %1845  ;;  %v1844_v5 = vpop.permute.xlu1 %1843 }
0x15f4   :  { %v1869_v7 = vcombine.low %v1840_v33, %v1844_v5 }
0x15f6   :  { %v1876_v8 = vrot.slane %v1869_v7, %v7137_v19 }
0x15f7   :  { %v1850_v6 = vpop.permute.xlu0 %1849  ;;  %v1848_v9 = vpop.permute.xlu1 %1847 }
0x15f8   :  { %v1877_v11 = vcombine.low %v1846_v4, %v1850_v6  ;;  %v1893_v51 = vcombine.low %v1868_v48, %v1876_v8  ;;  %v1894_v54 = vcombine.high %v1868_v48, %v1876_v8 }
0x15fa   :  { %v1884_v52 = vrot.slane %v1877_v11, %v7137_v19  ;;  %v1901_v58 = vrot.slane %v1893_v51, %v7143_v31  ;;  %v1908_v15 = vrot.slane %v1894_v54, %v7143_v31 }
0x15fb   :  { %v1852_v46 = vpop.permute.xlu1 %1851 }
0x15fc   :  { %v1885_v50 = vcombine.low %v1848_v9, %v1852_v46 }
0x15fe   :  { %v1892_v53 = vrot.slane %v1885_v50, %v7137_v19 }
0x1600   :  { %v1909_v55 = vcombine.low %v1884_v52, %v1892_v53  ;;  %v1910_v57 = vcombine.high %v1884_v52, %v1892_v53 }
0x1602   :  { %v1917_v59 = vrot.slane %v1909_v55, %v7143_v31  ;;  %v1924_v60 = vrot.slane %v1910_v57, %v7143_v31 }
0x1604   :  { %v1926_v61 = vcombine.high %v1901_v58, %v1917_v59  ;;  %v1925_v62 = vcombine.low %v1901_v58, %v1917_v59  ;;  %v1927_v14 = vcombine.low %v1908_v15, %v1924_v60  ;;  %v1928_v23 = vcombine.high %v1908_v15, %v1924_v60 }
0x1606   :  { %v1932_v17 = vsel %vm401_vm3, %v1926_v61, -inf  ;;  %v1929_v18 = vsel %vm401_vm3, %v1925_v62, -inf  ;;  %v1935_v22 = vsel %vm401_vm3, %v1927_v14, -inf  ;;  %v1938_v27 = vsel %vm401_vm3, %v1928_v23, -inf }
0x1607   :  { %1933 = vmax.xlane.f32.xlu1 %v1932_v17  ;;  %1930 = vmax.xlane.f32.xlu0 %v1929_v18 }
0x160b   :  { %1936 = vmax.xlane.f32.xlu0 %v1935_v22 }
0x160f   :  { %1939 = vmax.xlane.f32.xlu0 %v1938_v27 }
0x1690   :  { %v1931_v28 = vpop.xlane.xlu0 %1930  ;;  %v1934_v29 = vpop.xlane.xlu1 %1933 }
0x1691   :  { %v1952_v34 = vrot.slane %v1934_v29, %v7160_v49  ;;  %v1948_v35 = vrot.slane %v1931_v28, %v7160_v49 }
0x1693   :  { %v1961_v30 = vsel %vm436_vm4, %v1952_v34, %v1948_v35 }
0x1694   :  { %v1937_v32 = vpop.xlane.xlu0 %1936 }
0x1695   :  { %v1956_v36 = vrot.slane %v1937_v32, %v7160_v49 }
0x1697   :  { %v1962_v63 = vsel %vm438_vm5, %v1956_v36, %v1961_v30 }
0x1698   :  { %v1940_v37 = vpop.xlane.xlu0 %1939 }
0x1699   :  { %v1960_v39 = vrot.slane %v1940_v37, %v7160_v49 }
0x169b   :  { %v1963_v40 = vsel %vm440_vm6, %v1960_v39, %v1962_v63 }
0x169c   :  { %6580 = vmatmul.mubr.msk.f32.vlgmr.msra.gmra.mxu0 %vm442_vm7, %v1963_v40 }
0x169d   :  { %6583 = vmatpush3.msra.mxu0 %v7279_v16  ;;  %6584 = vmatprep.mubr.msk.f32.mxu0 %vm6996_vm0, %v6995_v0  ;;  %v7572_v16 = vld [vmem:[%s8528_s3 + $0x38] sm:$0xff] }
0x169e   :  { %6587 = vmatprep.subr.mxu0 %v6995_v0 }
0x175c   :  { %v2032_v41 = vpop.f32.mrf.mxu0 }
0x175d   :  { %v2033_v43 = vadd.f32 %v7556_v42, %v2032_v41 }
0x175e   :  { %v6581_v2 = vpop.f32.mrf.mxu0 }
0x175f   :  { %6823 = vtanh.f32 %v2033_v43 }
0x176c   :  { %v6824_v44 = vpop.eup %6823 }
0x176d   :  { %6329 = vmatmul.mubr.msk.f32.vlgmr.msra.gmra.mxu1 %vm68_vm1, %v6824_v44 }
0x176e   :  { %6599 = vmatpush3.msra.mxu1 %v7405_v24  ;;  %6606 = vmatprep.mubr.msk.f32.mxu1 %vm6996_vm0, %v6995_v0 }
0x176f   :  { %6600 = vmatprep.subr.mxu1 %v6995_v0 }
0x1770   :  { %6601 = vmatpush3.msra.mxu1 %v7414_v12 }
0x1771   :  { %6602 = vmatprep.subr.mxu1 %v6995_v0 }
0x1772   :  { %6603 = vmatpush3.msra.mxu1 %v7421_v25 }
0x1773   :  { %6604 = vmatprep.subr.mxu1 %v6995_v0 }
0x1774   :  { %6605 = vmatpush3.msra.mxu1 %v7428_v26 }
0x1775   :  { %2831 = vmatprep.subr.mxu1 %v7572_v16 }
0x182d   :  { %v2106_v24 = vpop.f32.mrf.mxu1 }
0x182e   :  { %v6330_v45 = vmul.f32 -1.442695, %v2106_v24 }
0x182f   :  { %v2108_v33 = vpop.f32.mrf.mxu1 }
0x1830   :  { %6825 = vpow2.f32 %v6330_v45 }
0x183d   :  { %v6826_v1 = vpop.eup %6825 }
0x183e   :  { %v2114_v12 = vadd.f32 1.0, %v6826_v1 }
0x1840   :  { %6827 = vrcp.f32 %v2114_v12 }
0x184d   :  { %v6828_v3 = vpop.eup %6827 }
0x184e   :  { %v2117_v25 = vmul.f32 %v6828_v3, %v2108_v33  ;;  %v2124_v6 = vsub.f32 1.0, %v6828_v3 }
0x1850   :  { %2119 = vrot.lane.b32.xlu1 %v2117_v25, %s6997_s1 }
0x1854   :  { %2130 = vrot.lane.b32.xlu1 %v6824_v44, %s7008_s14 }
0x1858   :  { %2136 = vrot.lane.b32.xlu1 %v2106_v24, %s6997_s1 }
0x18c2   :  { %v2120_v26 = vpop.permute.xlu1 %2119 }
0x18c3   :  { %v2122_v4 = vadd.f32 %v2120_v26, %v2106_v24 }
0x18c5   :  { %6829 = vtanh.f32 %v2122_v4 }
0x18c6   :  { %v2131_v7 = vpop.permute.xlu1 %2130 }
0x18c7   :  { %v2133_v10 = vmul.f32 %v6828_v3, %v2131_v7 }
0x18ca   :  { %v2137_v46 = vpop.permute.xlu1 %2136 }
0x18d2   :  { %v6830_v5 = vpop.eup %6829 }
0x18d3   :  { %2126 = vrot.lane.b32.xlu0 %v6830_v5, %s6998_s21 }
0x1945   :  { %v2127_v9 = vpop.permute.xlu0 %2126 }
0x1946   :  { %v2129_v8 = vmul.f32 %v2127_v9, %v2124_v6 }
0x1948   :  { %v2134_v11 = vadd.f32 %v2133_v10, %v2129_v8 }
0x194a   :  { %v2139_v48 = vadd.f32 %v2137_v46, %v2134_v11 }
0x194c   :  { %v2140_v50 = vsel %vm270_vm2, %v2139_v48, 0.0 }
0x194d   :  { %v2141_v51 = vrot.slane %v2140_v50, 4 }
0x194f   :  { %v2142_v52 = vadd.f32 %v2141_v51, %v2140_v50 }
0x1951   :  { %v2143_v53 = vrot.slane %v2142_v52, 2 }
0x1953   :  { %v2144_v54 = vadd.f32 %v2143_v53, %v2142_v52 }
0x1955   :  { %v2145_v55 = vrot.slane %v2144_v54, 1 }
0x1957   :  { %v2146_v57 = vadd.f32 %v2145_v55, %v2144_v54 }
0x1959   :  { %v2147_v58 = vmul.f32 0.25, %v2146_v57 }
0x195b   :  { %v2148_v59 = vsub.f32 %v2139_v48, %v2147_v58 }
0x195d   :  { %v2149_v60 = vmul.f32 %v2148_v59, %v2148_v59 }
0x195f   :  { %v2150_v61 = vsel %vm270_vm2, %v2149_v60, 0.0 }
0x1960   :  { %v2151_v62 = vrot.slane %v2150_v61, 4 }
0x1962   :  { %v2152_v15 = vadd.f32 %v2151_v62, %v2150_v61 }
0x1964   :  { %v2153_v17 = vrot.slane %v2152_v15, 2 }
0x1966   :  { %v2154_v18 = vadd.f32 %v2153_v17, %v2152_v15 }
0x1968   :  { %v2155_v14 = vrot.slane %v2154_v18, 1 }
0x196a   :  { %v2156_v22 = vadd.f32 %v2155_v14, %v2154_v18 }
0x196c   :  { %v2157_v23 = vmul.f32 0.25, %v2156_v22 }
0x196e   :  { %v2158_v27 = vadd.f32 1e-05, %v2157_v23 }
0x1970   :  { %6831 = vrsqrt.f32 %v2158_v27 }
0x197d   :  { %v6832_v28 = vpop.eup %6831 }
0x197e   :  { %v2160_v29 = vmul.f32 %v6832_v28, %v2148_v59 }
0x1980   :  { %v2161_v32 = vmax.f32 %v2160_v29, 0.0  ;;  %v7619_v29 = vld [vmem:[%s8530_s6 + $0x18] sm:$0xff] }
0x1982   :  { %2165 = vrot.lane.b32.xlu1 %v2161_v32, %s6999_s22  ;;  %2163 = vrot.lane.b32.xlu0 %v2161_v32, %s7000_s23 }
0x1986   :  { %2169 = vrot.lane.b32.xlu1 %v2161_v32, %s7001_s24  ;;  %2167 = vrot.lane.b32.xlu0 %v2161_v32, %s7002_s25 }
0x198a   :  { %2173 = vrot.lane.b32.xlu1 %v2161_v32, %s7003_s26  ;;  %2171 = vrot.lane.b32.xlu0 %v2161_v32, %s7004_s27 }
0x198e   :  { %2177 = vrot.lane.b32.xlu1 %v2161_v32, %s6998_s21  ;;  %2175 = vrot.lane.b32.xlu0 %v2161_v32, %s7005_s28  ;;  %v7628_v32 = vld [vmem:[%s8530_s6 + $0x10] sm:$0xff] }
0x19f4   :  { %v2166_v34 = vpop.permute.xlu1 %2165  ;;  %v2164_v35 = vpop.permute.xlu0 %2163 }
0x19f5   :  { %2181 = vrot.lane.b32.xlu1 %v2166_v34, %s6998_s21  ;;  %2179 = vrot.lane.b32.xlu0 %v2164_v35, %s6998_s21  ;;  %v7635_v34 = vld [vmem:[%s8530_s6 + $0x8] sm:$0xff]  ;;  %v7642_v35 = vld [vmem:[%s8530_s6] sm:$0xff] }
0x19f8   :  { %v2170_v36 = vpop.permute.xlu1 %2169  ;;  %v2168_v37 = vpop.permute.xlu0 %2167 }
0x19f9   :  { %2185 = vrot.lane.b32.xlu1 %v2170_v36, %s6998_s21  ;;  %2183 = vrot.lane.b32.xlu0 %v2168_v37, %s6998_s21  ;;  %v7649_v37 = vld [vmem:[%s8529_s5 + $0x1] ss:$0 sm:$0xff] }
0x19fc   :  { %v2174_v30 = vpop.permute.xlu1 %2173  ;;  %v2172_v39 = vpop.permute.xlu0 %2171 }
0x19fd   :  { %2189 = vrot.lane.b32.xlu1 %v2174_v30, %s6998_s21  ;;  %2187 = vrot.lane.b32.xlu0 %v2172_v39, %s6998_s21 }
0x1a00   :  { %v2176_v63 = vpop.permute.xlu0 %2175  ;;  %v2178_v40 = vpop.permute.xlu1 %2177 }
0x1a01   :  { %2191 = vrot.lane.b32.xlu0 %v2176_v63, %s6998_s21 }
0x1a67   :  { %v2182_v41 = vpop.permute.xlu1 %2181  ;;  %v2180_v43 = vpop.permute.xlu0 %2179 }
0x1a68   :  { %v2201_v12 = vcombine.low %v2178_v40, %v2182_v41  ;;  %v7657_v40 = vld [vmem:[%s8527_s4] sm:$0xff]  ;;  %v7665_v41 = vld [vmem:[%s8528_s3 + $0x30] sm:$0xff] }
0x1a6a   :  { %v2208_v26 = vrot.slane %v2201_v12, %v7137_v19 }
0x1a6b   :  { %v2186_v2 = vpop.permute.xlu1 %2185  ;;  %v2184_v44 = vpop.permute.xlu0 %2183 }
0x1a6c   :  { %v2209_v24 = vcombine.low %v2180_v43, %v2184_v44  ;;  %v7672_v43 = vld [vmem:[%s8528_s3 + $0x28] sm:$0xff]  ;;  %v7685_v44 = vld [vmem:[%s8528_s3 + $0x18] sm:$0xff] }
0x1a6e   :  { %v2216_v3 = vrot.slane %v2209_v24, %v7137_v19  ;;  %v7691_v24 = vld [vmem:[%s8528_s3 + $0x10] sm:$0xff] }
0x1a6f   :  { %v2190_v45 = vpop.permute.xlu1 %2189  ;;  %v2188_v1 = vpop.permute.xlu0 %2187 }
0x1a70   :  { %v2217_v33 = vcombine.low %v2186_v2, %v2190_v45  ;;  %v2233_v5 = vcombine.low %v2208_v26, %v2216_v3  ;;  %v2234_v9 = vcombine.high %v2208_v26, %v2216_v3  ;;  %v7679_v2 = vld [vmem:[%s8528_s3 + $0x20] sm:$0xff]  ;;  %v7697_v45 = vld [vmem:[%s8528_s3 + $0x8] sm:$0xff] }
0x1a72   :  { %v2224_v7 = vrot.slane %v2217_v33, %v7137_v19  ;;  %v2241_v11 = vrot.slane %v2233_v5, %v7143_v31  ;;  %v2248_v52 = vrot.slane %v2234_v9, %v7143_v31 }
0x1a73   :  { %v2192_v25 = vpop.permute.xlu0 %2191 }
0x1a74   :  { %v2225_v4 = vcombine.low %v2188_v1, %v2192_v25  ;;  %v7703_v1 = vld [vmem:[%s8528_s3] sm:$0xff] }
0x1a76   :  { %v2232_v6 = vrot.slane %v2225_v4, %v7137_v19 }
0x1a78   :  { %v2249_v10 = vcombine.low %v2224_v7, %v2232_v6  ;;  %v2250_v8 = vcombine.high %v2224_v7, %v2232_v6 }
0x1a7a   :  { %v2257_v46 = vrot.slane %v2249_v10, %v7143_v31  ;;  %v2264_v48 = vrot.slane %v2250_v8, %v7143_v31 }
0x1a7c   :  { %v2266_v50 = vcombine.high %v2241_v11, %v2257_v46  ;;  %v2265_v51 = vcombine.low %v2241_v11, %v2257_v46  ;;  %v2267_v55 = vcombine.low %v2248_v52, %v2264_v48  ;;  %v2268_v57 = vcombine.high %v2248_v52, %v2264_v48 }
0x1a7e   :  { %v2272_v53 = vsel %vm401_vm3, %v2266_v50, -inf  ;;  %v2269_v54 = vsel %vm401_vm3, %v2265_v51, -inf  ;;  %v2275_v58 = vsel %vm401_vm3, %v2267_v55, -inf  ;;  %v2278_v59 = vsel %vm401_vm3, %v2268_v57, -inf }
0x1a7f   :  { %2273 = vmax.xlane.f32.xlu0 %v2272_v53  ;;  %2270 = vmax.xlane.f32.xlu1 %v2269_v54 }
0x1a83   :  { %2276 = vmax.xlane.f32.xlu0 %v2275_v58  ;;  %2279 = vmax.xlane.f32.xlu1 %v2278_v59 }
0x1b08   :  { %v2274_v60 = vpop.xlane.xlu0 %2273  ;;  %v2271_v61 = vpop.xlane.xlu1 %2270 }
0x1b09   :  { %v2292_v62 = vrot.slane %v2274_v60, %v7160_v49  ;;  %v2288_v15 = vrot.slane %v2271_v61, %v7160_v49 }
0x1b0b   :  { %v2301_v23 = vsel %vm436_vm4, %v2292_v62, %v2288_v15 }
0x1b0c   :  { %v2277_v17 = vpop.xlane.xlu0 %2276  ;;  %v2280_v18 = vpop.xlane.xlu1 %2279 }
0x1b0d   :  { %v2296_v14 = vrot.slane %v2277_v17, %v7160_v49  ;;  %v2300_v22 = vrot.slane %v2280_v18, %v7160_v49 }
0x1b0f   :  { %v2302_v27 = vsel %vm438_vm5, %v2296_v14, %v2301_v23 }
0x1b10   :  { %v2303_v28 = vsel %vm440_vm6, %v2300_v22, %v2302_v27 }
0x1b11   :  { %6585 = vmatmul.mubr.msk.f32.vlgmr.msra.gmra.mxu0 %vm442_vm7, %v2303_v28 }
0x1b12   :  { %6588 = vmatpush3.msra.mxu0 %v7619_v29  ;;  %6595 = vmatprep.mubr.msk.f32.mxu0 %vm6996_vm0, %v6995_v0 }
0x1b13   :  { %6589 = vmatprep.subr.mxu0 %v6995_v0 }
0x1b14   :  { %6590 = vmatpush3.msra.mxu0 %v7628_v32 }
0x1b15   :  { %6591 = vmatprep.subr.mxu0 %v6995_v0 }
0x1b16   :  { %6592 = vmatpush3.msra.mxu0 %v7635_v34 }
0x1b17   :  { %6593 = vmatprep.subr.mxu0 %v6995_v0 }
0x1b18   :  { %6594 = vmatpush3.msra.mxu0 %v7642_v35 }
0x1b19   :  { %6609 = vmatprep.subr.mxu0 %v6995_v0 }
0x1bd1   :  { %v2372_v36 = vpop.f32.mrf.mxu0 }
0x1bd2   :  { %v2373_v30 = vadd.f32 %v7649_v37, %v2372_v36 }
0x1bd3   :  { %v6586_v39 = vpop.f32.mrf.mxu0 }
0x1bd4   :  { %6833 = vtanh.f32 %v2373_v30 }
0x1be1   :  { %v6834_v63 = vpop.eup %6833 }
0x1be2   :  { %6596 = vmatmul.mubr.msk.f32.vlgmr.msra.gmra.mxu0 %vm68_vm1, %v6834_v63  ;;  %6607 = vmatmul.mubr.msk.f32.vlgmr.msra.gmra.mxu1 %vm68_vm1, %v6834_v63  ;;  %v2546_v4 = vrot.slane %v6834_v63, 4 }
0x1be3   :  { %6610 = vmatpush3.msra.mxu0 %v7657_v40  ;;  %6611 = vmatprep.mubr.msk.f32.mxu0 %vm6996_vm0, %v6995_v0 }
0x1be4   :  { %2832 = vmatpush1.msra.mxu1 %v7665_v41  ;;  %2871 = vmatprep.mubr.f32.mxu1 %v6995_v0 }
0x1be5   :  { %2833 = vmatprep.subr.mxu1 %v7672_v43  ;;  %6614 = vmatprep.subr.mxu0 %v6995_v0 }
0x1be6   :  { %2834 = vmatpush1.msra.mxu1 %v7679_v2 }
0x1be7   :  { %2835 = vmatprep.subr.mxu1 %v7685_v44 }
0x1be8   :  { %2836 = vmatpush1.msra.mxu1 %v7691_v24 }
0x1be9   :  { %2837 = vmatprep.subr.mxu1 %v7697_v45 }
0x1bea   :  { %2838 = vmatpush1.msra.mxu1 %v7703_v1 }
0x1beb   :  { %6630 = vmatprep.subr.mxu1 %v6995_v0 }
0x1ca2   :  { %v7707_v12 = vpop.f32.mrf.mxu0  ;;  %v2516_v3 = vpop.f32.mrf.mxu1 }
0x1ca3   :  { %v2521_v33 = vrot.slane %v2516_v3, 4 }
0x1ca4   :  { %v6597_v25 = vpop.f32.mrf.mxu0  ;;  %v6608_v26 = vpop.f32.mrf.mxu1 }
0x1ca5   :  { %2530 = vrot.lane.b32.xlu0 %v2521_v33, %s6997_s1  ;;  %v2523_v5 = vadd.f32 %v7107_v13, %v2521_v33 }
0x1ca7   :  { %v6334_v7 = vmul.f32 -1.442695, %v2523_v5 }
0x1ca9   :  { %2547 = vrot.lane.b32.xlu0 %v2546_v4, %s7008_s14  ;;  %6835 = vpow2.f32 %v6334_v7 }
0x1cb6   :  { %v6836_v6 = vpop.eup %6835 }
0x1cb7   :  { %v2527_v9 = vadd.f32 1.0, %v6836_v6 }
0x1cb9   :  { %6837 = vrcp.f32 %v2527_v9 }
0x1cc6   :  { %v6838_v10 = vpop.eup %6837 }
0x1cc7   :  { %v2540_v52 = vsub.f32 1.0, %v6838_v10 }
0x1d17   :  { %v2531_v8 = vpop.permute.xlu0 %2530 }
0x1d18   :  { %v2533_v11 = vmul.f32 %v6838_v10, %v2531_v8 }
0x1d1a   :  { %2535 = vrot.lane.b32.xlu1 %v2533_v11, %s6997_s1 }
0x1d1b   :  { %v2548_v51 = vpop.permute.xlu0 %2547 }
0x1d1c   :  { %v2550_v54 = vmul.f32 %v6838_v10, %v2548_v51 }
0x1d8c   :  { %v2536_v46 = vpop.permute.xlu1 %2535 }
0x1d8d   :  { %v2538_v48 = vadd.f32 %v7107_v13, %v2536_v46 }
0x1d8f   :  { %6839 = vtanh.f32 %v2538_v48 }
0x1d9c   :  { %v6840_v50 = vpop.eup %6839 }
0x1d9d   :  { %2542 = vrot.lane.b32.xlu1 %v6840_v50, %s6998_s21 }
0x1e0f   :  { %v2543_v53 = vpop.permute.xlu1 %2542 }
0x1e10   :  { %v2545_v55 = vmul.f32 %v2543_v53, %v2540_v52 }
0x1e12   :  { %v2551_v57 = vadd.f32 %v2550_v54, %v2545_v55 }
0x1e14   :  { %v2552_v58 = vadd.f32 %v2551_v57, %v7509_v56 }
0x1e16   :  { %v2554_v59 = vrot.slane %v2552_v58, 4 }
0x1e18   :  { %v2556_v60 = vsel %vm270_vm2, %v2554_v59, 0.0 }
0x1e19   :  { %v2557_v61 = vrot.slane %v2556_v60, 4 }
0x1e1b   :  { %v2558_v62 = vadd.f32 %v2557_v61, %v2556_v60 }
0x1e1d   :  { %v2559_v15 = vrot.slane %v2558_v62, 2 }
0x1e1f   :  { %v2560_v17 = vadd.f32 %v2559_v15, %v2558_v62 }
0x1e21   :  { %v2561_v13 = vrot.slane %v2560_v17, 1 }
0x1e23   :  { %v2562_v18 = vadd.f32 %v2561_v13, %v2560_v17 }
0x1e25   :  { %v2563_v14 = vmul.f32 0.25, %v2562_v18 }
0x1e27   :  { %v2564_v22 = vsub.f32 %v2552_v58, %v2563_v14 }
0x1e29   :  { %v2565_v23 = vmul.f32 %v2564_v22, %v2564_v22 }
0x1e2b   :  { %v2567_v27 = vrot.slane %v2565_v23, 4 }
0x1e2d   :  { %v2569_v28 = vsel %vm270_vm2, %v2567_v27, 0.0 }
0x1e2e   :  { %v2570_v36 = vrot.slane %v2569_v28, 4 }
0x1e30   :  { %v2571_v30 = vadd.f32 %v2570_v36, %v2569_v28 }
0x1e32   :  { %v2572_v39 = vrot.slane %v2571_v30, 2 }
0x1e34   :  { %v2573_v63 = vadd.f32 %v2572_v39, %v2571_v30 }
0x1e36   :  { %v2574_v56 = vrot.slane %v2573_v63, 1 }
0x1e38   :  { %v2575_v3 = vadd.f32 %v2574_v56, %v2573_v63 }
0x1e3a   :  { %v2576_v33 = vmul.f32 0.25, %v2575_v3 }
0x1e3c   :  { %v2577_v25 = vadd.f32 1e-05, %v2576_v33 }
0x1e3e   :  { %6841 = vrsqrt.f32 %v2577_v25 }
0x1e4b   :  { %v6842_v26 = vpop.eup %6841 }
0x1e4c   :  { %v2579_v4 = vmul.f32 %v6842_v26, %v2564_v22 }
0x1e4e   :  { %v2580_v5 = vmax.f32 %v2579_v4, 0.0 }
0x1e50   :  { %2584 = vrot.lane.b32.xlu0 %v2580_v5, %s6999_s22  ;;  %2582 = vrot.lane.b32.xlu1 %v2580_v5, %s7000_s23  ;;  %v2596_v7 = vrot.slane %v2580_v5, 4 }
0x1e54   :  { %2588 = vrot.lane.b32.xlu0 %v2580_v5, %s7001_s24  ;;  %2586 = vrot.lane.b32.xlu1 %v2580_v5, %s7002_s25 }
0x1e58   :  { %2592 = vrot.lane.b32.xlu0 %v2580_v5, %s7003_s26  ;;  %2590 = vrot.lane.b32.xlu1 %v2580_v5, %s7004_s27 }
0x1e5c   :  { %2594 = vrot.lane.b32.xlu1 %v2580_v5, %s7005_s28  ;;  %2604 = vrot.lane.b32.xlu0 %v2596_v7, %s6998_s21 }
0x1ec2   :  { %v2585_v6 = vpop.permute.xlu0 %2584  ;;  %v2583_v9 = vpop.permute.xlu1 %2582 }
0x1ec3   :  { %v2598_v10 = vrot.slane %v2585_v6, 4  ;;  %v2597_v8 = vrot.slane %v2583_v9, 4 }
0x1ec5   :  { %2606 = vrot.lane.b32.xlu1 %v2597_v8, %s6998_s21  ;;  %2608 = vrot.lane.b32.xlu0 %v2598_v10, %s6998_s21 }
0x1ec6   :  { %v2589_v11 = vpop.permute.xlu0 %2588  ;;  %v2587_v46 = vpop.permute.xlu1 %2586 }
0x1ec7   :  { %v2600_v48 = vrot.slane %v2589_v11, 4  ;;  %v2599_v50 = vrot.slane %v2587_v46, 4 }
0x1ec9   :  { %2610 = vrot.lane.b32.xlu1 %v2599_v50, %s6998_s21  ;;  %2612 = vrot.lane.b32.xlu0 %v2600_v48, %s6998_s21 }
0x1eca   :  { %v2593_v51 = vpop.permute.xlu0 %2592  ;;  %v2591_v52 = vpop.permute.xlu1 %2590 }
0x1ecb   :  { %v2602_v53 = vrot.slane %v2593_v51, 4  ;;  %v2601_v54 = vrot.slane %v2591_v52, 4 }
0x1ecd   :  { %2614 = vrot.lane.b32.xlu1 %v2601_v54, %s6998_s21  ;;  %2616 = vrot.lane.b32.xlu0 %v2602_v53, %s6998_s21 }
0x1ece   :  { %v2595_v55 = vpop.permute.xlu1 %2594  ;;  %v2605_v58 = vpop.permute.xlu0 %2604 }
0x1ecf   :  { %v2603_v57 = vrot.slane %v2595_v55, 4 }
0x1ed1   :  { %2618 = vrot.lane.b32.xlu1 %v2603_v57, %s6998_s21 }
0x1f37   :  { %v2607_v59 = vpop.permute.xlu1 %2606  ;;  %v2609_v60 = vpop.permute.xlu0 %2608 }
0x1f38   :  { %v2628_v18 = vcombine.low %v2605_v58, %v2609_v60 }
0x1f3a   :  { %v2635_v27 = vrot.slane %v2628_v18, %v7137_v19  ;;  %v7767_v18 = vld [vmem:[%s8525_s2 + $0x18] sm:$0xff] }
0x1f3b   :  { %v2611_v61 = vpop.permute.xlu1 %2610  ;;  %v2613_v62 = vpop.permute.xlu0 %2612 }
0x1f3c   :  { %v2636_v15 = vcombine.low %v2607_v59, %v2611_v61  ;;  %v7756_v61 = vld [vmem:[%s8527_s4 + $0x8] sm:$0xff] }
0x1f3e   :  { %v2643_v14 = vrot.slane %v2636_v15, %v7137_v19 }
0x1f3f   :  { %v2615_v17 = vpop.permute.xlu1 %2614  ;;  %v2617_v13 = vpop.permute.xlu0 %2616 }
0x1f40   :  { %v2644_v22 = vcombine.low %v2613_v62, %v2617_v13  ;;  %v2660_v36 = vcombine.low %v2635_v27, %v2643_v14  ;;  %v2661_v63 = vcombine.high %v2635_v27, %v2643_v14  ;;  %v7783_v14 = vld [vmem:[%s8525_s2 + $0x8] sm:$0xff] }
0x1f42   :  { %v2651_v30 = vrot.slane %v2644_v22, %v7137_v19  ;;  %v2668_v33 = vrot.slane %v2660_v36, %v7143_v31  ;;  %v2675_v7 = vrot.slane %v2661_v63, %v7143_v31  ;;  %v7790_v22 = vld [vmem:[%s8525_s2] sm:$0xff] }
0x1f43   :  { %v2619_v23 = vpop.permute.xlu1 %2618 }
0x1f44   :  { %v2652_v28 = vcombine.low %v2615_v17, %v2619_v23 }
0x1f46   :  { %v2659_v39 = vrot.slane %v2652_v28, %v7137_v19 }
0x1f48   :  { %v2676_v56 = vcombine.low %v2651_v30, %v2659_v39  ;;  %v2677_v3 = vcombine.high %v2651_v30, %v2659_v39 }
0x1f4a   :  { %v2684_v25 = vrot.slane %v2676_v56, %v7143_v31  ;;  %v2691_v26 = vrot.slane %v2677_v3, %v7143_v31 }
0x1f4c   :  { %v2693_v4 = vcombine.high %v2668_v33, %v2684_v25  ;;  %v2692_v5 = vcombine.low %v2668_v33, %v2684_v25  ;;  %v2694_v10 = vcombine.low %v2675_v7, %v2691_v26  ;;  %v2695_v11 = vcombine.high %v2675_v7, %v2691_v26 }
0x1f4e   :  { %v2699_v6 = vsel %vm401_vm3, %v2693_v4, -inf  ;;  %v2696_v9 = vsel %vm401_vm3, %v2692_v5, -inf  ;;  %v2702_v8 = vsel %vm401_vm3, %v2694_v10, -inf  ;;  %v2705_v46 = vsel %vm401_vm3, %v2695_v11, -inf }
0x1f4f   :  { %2700 = vmax.xlane.f32.xlu1 %v2699_v6  ;;  %2697 = vmax.xlane.f32.xlu0 %v2696_v9 }
0x1f53   :  { %2703 = vmax.xlane.f32.xlu0 %v2702_v8 }
0x1f57   :  { %2706 = vmax.xlane.f32.xlu0 %v2705_v46 }
0x1fd8   :  { %v2698_v48 = vpop.xlane.xlu0 %2697  ;;  %v2701_v50 = vpop.xlane.xlu1 %2700 }
0x1fd9   :  { %v2719_v52 = vrot.slane %v2701_v50, %v7160_v49  ;;  %v2715_v53 = vrot.slane %v2698_v48, %v7160_v49 }
0x1fdb   :  { %v2728_v57 = vsel %vm436_vm4, %v2719_v52, %v2715_v53 }
0x1fdc   :  { %v2704_v51 = vpop.xlane.xlu0 %2703 }
0x1fdd   :  { %v2723_v54 = vrot.slane %v2704_v51, %v7160_v49 }
0x1fdf   :  { %v2729_v59 = vsel %vm438_vm5, %v2723_v54, %v2728_v57 }
0x1fe0   :  { %v2707_v55 = vpop.xlane.xlu0 %2706 }
0x1fe1   :  { %v2727_v58 = vrot.slane %v2707_v55, %v7160_v49 }
0x1fe3   :  { %v2730_v60 = vsel %vm440_vm6, %v2727_v58, %v2729_v59 }
0x1fe4   :  { %6612 = vmatmul.mubr.msk.f32.vlgmr.msra.gmra.mxu0 %vm442_vm7, %v2730_v60 }
0x1fe5   :  { %6615 = vmatpush3.msra.mxu0 %v7756_v61  ;;  %6616 = vmatprep.mubr.msk.f32.mxu0 %vm6996_vm0, %v6995_v0 }
0x1fe6   :  { %6619 = vmatprep.subr.mxu0 %v6995_v0 }
0x20a4   :  { %v2799_v62 = vpop.f32.mrf.mxu0 }
0x20a5   :  { %v2800_v15 = vadd.f32 %v7556_v42, %v2799_v62  ;;  %v7776_v42 = vld [vmem:[%s8525_s2 + $0x10] sm:$0xff] }
0x20a6   :  { %v6613_v17 = vpop.f32.mrf.mxu0 }
0x20a7   :  { %6843 = vtanh.f32 %v2800_v15 }
0x20b4   :  { %v6844_v13 = vpop.eup %6843 }
0x20b5   :  { %6336 = vmatmul.mubr.msk.f32.vlgmr.msra.gmra.mxu1 %vm68_vm1, %v6844_v13 }
0x20b6   :  { %6631 = vmatpush3.msra.mxu1 %v7767_v18  ;;  %6638 = vmatprep.mubr.msk.f32.mxu1 %vm6996_vm0, %v6995_v0 }
0x20b7   :  { %6632 = vmatprep.subr.mxu1 %v6995_v0 }
0x20b8   :  { %6633 = vmatpush3.msra.mxu1 %v7776_v42 }
0x20b9   :  { %6634 = vmatprep.subr.mxu1 %v6995_v0 }
0x20ba   :  { %6635 = vmatpush3.msra.mxu1 %v7783_v14 }
0x20bb   :  { %6636 = vmatprep.subr.mxu1 %v6995_v0 }
0x20bc   :  { %6637 = vmatpush3.msra.mxu1 %v7790_v22 }
0x20bd   :  { %3585 = vmatprep.subr.mxu1 %v7572_v16 }
0x2175   :  { %v2873_v23 = vpop.f32.mrf.mxu1 }
0x2176   :  { %v6337_v27 = vmul.f32 -1.442695, %v2873_v23 }
0x2177   :  { %v2875_v39 = vpop.f32.mrf.mxu1 }
0x2178   :  { %6845 = vpow2.f32 %v6337_v27 }
0x2185   :  { %v6846_v28 = vpop.eup %6845 }
0x2186   :  { %v2881_v36 = vadd.f32 1.0, %v6846_v28 }
0x2188   :  { %6847 = vrcp.f32 %v2881_v36 }
0x2195   :  { %v6848_v30 = vpop.eup %6847 }
0x2196   :  { %v2884_v63 = vmul.f32 %v6848_v30, %v2875_v39  ;;  %v2891_v25 = vsub.f32 1.0, %v6848_v30 }
0x2198   :  { %2886 = vrot.lane.b32.xlu1 %v2884_v63, %s6997_s1 }
0x219c   :  { %2897 = vrot.lane.b32.xlu1 %v6844_v13, %s7008_s14 }
0x21a0   :  { %2903 = vrot.lane.b32.xlu1 %v2873_v23, %s6997_s1 }
0x220a   :  { %v2887_v56 = vpop.permute.xlu1 %2886 }
0x220b   :  { %v2889_v3 = vadd.f32 %v2887_v56, %v2873_v23 }
0x220d   :  { %6849 = vtanh.f32 %v2889_v3 }
0x220e   :  { %v2898_v16 = vpop.permute.xlu1 %2897 }
0x220f   :  { %v2900_v4 = vmul.f32 %v6848_v30, %v2898_v16 }
0x2212   :  { %v2904_v6 = vpop.permute.xlu1 %2903 }
0x221a   :  { %v6850_v33 = vpop.eup %6849 }
0x221b   :  { %2893 = vrot.lane.b32.xlu0 %v6850_v33, %s6998_s21 }
0x228d   :  { %v2894_v26 = vpop.permute.xlu0 %2893 }
0x228e   :  { %v2896_v5 = vmul.f32 %v2894_v26, %v2891_v25 }
0x2290   :  { %v2901_v7 = vadd.f32 %v2900_v4, %v2896_v5 }
0x2292   :  { %v2906_v9 = vadd.f32 %v2904_v6, %v2901_v7 }
0x2294   :  { %v2907_v10 = vsel %vm270_vm2, %v2906_v9, 0.0 }
0x2295   :  { %v2908_v8 = vrot.slane %v2907_v10, 4 }
0x2297   :  { %v2909_v11 = vadd.f32 %v2908_v8, %v2907_v10 }
0x2299   :  { %v2910_v46 = vrot.slane %v2909_v11, 2 }
0x229b   :  { %v2911_v48 = vadd.f32 %v2910_v46, %v2909_v11 }
0x229d   :  { %v2912_v50 = vrot.slane %v2911_v48, 1 }
0x229f   :  { %v2913_v51 = vadd.f32 %v2912_v50, %v2911_v48 }
0x22a1   :  { %v2914_v52 = vmul.f32 0.25, %v2913_v51 }
0x22a3   :  { %v2915_v53 = vsub.f32 %v2906_v9, %v2914_v52 }
0x22a5   :  { %v2916_v54 = vmul.f32 %v2915_v53, %v2915_v53 }
0x22a7   :  { %v2917_v55 = vsel %vm270_vm2, %v2916_v54, 0.0 }
0x22a8   :  { %v2918_v57 = vrot.slane %v2917_v55, 4 }
0x22aa   :  { %v2919_v58 = vadd.f32 %v2918_v57, %v2917_v55 }
0x22ac   :  { %v2920_v59 = vrot.slane %v2919_v58, 2 }
0x22ae   :  { %v2921_v60 = vadd.f32 %v2920_v59, %v2919_v58 }
0x22b0   :  { %v2922_v62 = vrot.slane %v2921_v60, 1 }
0x22b2   :  { %v2923_v15 = vadd.f32 %v2922_v62, %v2921_v60 }
0x22b4   :  { %v2924_v17 = vmul.f32 0.25, %v2923_v15 }
0x22b6   :  { %v2925_v13 = vadd.f32 1e-05, %v2924_v17 }
0x22b8   :  { %6851 = vrsqrt.f32 %v2925_v13 }
0x22c5   :  { %v6852_v23 = vpop.eup %6851 }
0x22c6   :  { %v2927_v27 = vmul.f32 %v6852_v23, %v2915_v53 }
0x22c8   :  { %v2928_v28 = vmax.f32 %v2927_v27, 0.0 }
0x22ca   :  { %2932 = vrot.lane.b32.xlu1 %v2928_v28, %s6999_s22  ;;  %2930 = vrot.lane.b32.xlu0 %v2928_v28, %s7000_s23 }
0x22ce   :  { %2936 = vrot.lane.b32.xlu1 %v2928_v28, %s7001_s24  ;;  %2934 = vrot.lane.b32.xlu0 %v2928_v28, %s7002_s25 }
0x22d2   :  { %2940 = vrot.lane.b32.xlu1 %v2928_v28, %s7003_s26  ;;  %2938 = vrot.lane.b32.xlu0 %v2928_v28, %s7004_s27 }
0x22d6   :  { %2944 = vrot.lane.b32.xlu1 %v2928_v28, %s6998_s21  ;;  %2942 = vrot.lane.b32.xlu0 %v2928_v28, %s7005_s28 }
0x233c   :  { %v2933_v36 = vpop.permute.xlu1 %2932  ;;  %v2931_v30 = vpop.permute.xlu0 %2930 }
0x233d   :  { %2948 = vrot.lane.b32.xlu1 %v2933_v36, %s6998_s21  ;;  %2946 = vrot.lane.b32.xlu0 %v2931_v30, %s6998_s21 }
0x2340   :  { %v2937_v39 = vpop.permute.xlu1 %2936  ;;  %v2935_v63 = vpop.permute.xlu0 %2934 }
0x2341   :  { %2952 = vrot.lane.b32.xlu1 %v2937_v39, %s6998_s21  ;;  %2950 = vrot.lane.b32.xlu0 %v2935_v63, %s6998_s21 }
0x2344   :  { %v2941_v56 = vpop.permute.xlu1 %2940  ;;  %v2939_v3 = vpop.permute.xlu0 %2938 }
0x2345   :  { %2956 = vrot.lane.b32.xlu1 %v2941_v56, %s6998_s21  ;;  %2954 = vrot.lane.b32.xlu0 %v2939_v3, %s6998_s21 }
0x2348   :  { %v2943_v33 = vpop.permute.xlu0 %2942  ;;  %v2945_v16 = vpop.permute.xlu1 %2944 }
0x2349   :  { %2958 = vrot.lane.b32.xlu0 %v2943_v33, %s6998_s21 }
0x23af   :  { %v2949_v25 = vpop.permute.xlu1 %2948  ;;  %v2947_v26 = vpop.permute.xlu0 %2946 }
0x23b0   :  { %v2968_v10 = vcombine.low %v2945_v16, %v2949_v25 }
0x23b2   :  { %v2975_v48 = vrot.slane %v2968_v10, %v7137_v19 }
0x23b3   :  { %v2953_v4 = vpop.permute.xlu1 %2952  ;;  %v2951_v5 = vpop.permute.xlu0 %2950 }
0x23b4   :  { %v2976_v7 = vcombine.low %v2947_v26, %v2951_v5 }
0x23b6   :  { %v2983_v8 = vrot.slane %v2976_v7, %v7137_v19 }
0x23b7   :  { %v2957_v6 = vpop.permute.xlu1 %2956  ;;  %v2955_v9 = vpop.permute.xlu0 %2954 }
0x23b8   :  { %v2984_v11 = vcombine.low %v2953_v4, %v2957_v6  ;;  %v3000_v51 = vcombine.low %v2975_v48, %v2983_v8  ;;  %v3001_v54 = vcombine.high %v2975_v48, %v2983_v8 }
0x23ba   :  { %v2991_v52 = vrot.slane %v2984_v11, %v7137_v19  ;;  %v3008_v58 = vrot.slane %v3000_v51, %v7143_v31  ;;  %v3015_v17 = vrot.slane %v3001_v54, %v7143_v31 }
0x23bb   :  { %v2959_v46 = vpop.permute.xlu0 %2958 }
0x23bc   :  { %v2992_v50 = vcombine.low %v2955_v9, %v2959_v46 }
0x23be   :  { %v2999_v53 = vrot.slane %v2992_v50, %v7137_v19 }
0x23c0   :  { %v3016_v55 = vcombine.low %v2991_v52, %v2999_v53  ;;  %v3017_v57 = vcombine.high %v2991_v52, %v2999_v53 }
0x23c2   :  { %v3024_v59 = vrot.slane %v3016_v55, %v7143_v31  ;;  %v3031_v60 = vrot.slane %v3017_v57, %v7143_v31 }
0x23c4   :  { %v3033_v62 = vcombine.high %v3008_v58, %v3024_v59  ;;  %v3032_v15 = vcombine.low %v3008_v58, %v3024_v59  ;;  %v3034_v27 = vcombine.low %v3015_v17, %v3031_v60  ;;  %v3035_v28 = vcombine.high %v3015_v17, %v3031_v60 }
0x23c6   :  { %v3039_v13 = vsel %vm401_vm3, %v3033_v62, -inf  ;;  %v3036_v23 = vsel %vm401_vm3, %v3032_v15, -inf  ;;  %v3042_v36 = vsel %vm401_vm3, %v3034_v27, -inf  ;;  %v3045_v30 = vsel %vm401_vm3, %v3035_v28, -inf }
0x23c7   :  { %3040 = vmax.xlane.f32.xlu0 %v3039_v13  ;;  %3037 = vmax.xlane.f32.xlu1 %v3036_v23 }
0x23cb   :  { %3043 = vmax.xlane.f32.xlu0 %v3042_v36  ;;  %3046 = vmax.xlane.f32.xlu1 %v3045_v30 }
0x2450   :  { %v3041_v39 = vpop.xlane.xlu0 %3040  ;;  %v3038_v63 = vpop.xlane.xlu1 %3037 }
0x2451   :  { %v3059_v56 = vrot.slane %v3041_v39, %v7160_v49  ;;  %v3055_v3 = vrot.slane %v3038_v63, %v7160_v49 }
0x2453   :  { %v3068_v4 = vsel %vm436_vm4, %v3059_v56, %v3055_v3 }
0x2454   :  { %v3044_v33 = vpop.xlane.xlu0 %3043  ;;  %v3047_v16 = vpop.xlane.xlu1 %3046 }
0x2455   :  { %v3063_v25 = vrot.slane %v3044_v33, %v7160_v49  ;;  %v3067_v26 = vrot.slane %v3047_v16, %v7160_v49 }
0x2457   :  { %v3069_v5 = vsel %vm438_vm5, %v3063_v25, %v3068_v4 }
0x2458   :  { %v3070_v7 = vsel %vm440_vm6, %v3067_v26, %v3069_v5 }
0x2459   :  { %6617 = vmatmul.mubr.msk.f32.vlgmr.msra.gmra.mxu0 %vm442_vm7, %v3070_v7 }
0x245a   :  { %6620 = vmatpush3.msra.mxu0 %v7619_v29  ;;  %6627 = vmatprep.mubr.msk.f32.mxu0 %vm6996_vm0, %v6995_v0 }
0x245b   :  { %6621 = vmatprep.subr.mxu0 %v6995_v0 }
0x245c   :  { %6622 = vmatpush3.msra.mxu0 %v7628_v32 }
0x245d   :  { %6623 = vmatprep.subr.mxu0 %v6995_v0 }
0x245e   :  { %6624 = vmatpush3.msra.mxu0 %v7635_v34 }
0x245f   :  { %6625 = vmatprep.subr.mxu0 %v6995_v0 }
0x2460   :  { %6626 = vmatpush3.msra.mxu0 %v7642_v35 }
0x2461   :  { %6641 = vmatprep.subr.mxu0 %v6995_v0 }
0x2519   :  { %v3139_v6 = vpop.f32.mrf.mxu0 }
0x251a   :  { %v3140_v29 = vadd.f32 %v7649_v37, %v3139_v6 }
0x251b   :  { %v6618_v9 = vpop.f32.mrf.mxu0 }
0x251c   :  { %6853 = vtanh.f32 %v3140_v29 }
0x2529   :  { %v6854_v10 = vpop.eup %6853 }
0x252a   :  { %6628 = vmatmul.mubr.msk.f32.vlgmr.msra.gmra.mxu0 %vm68_vm1, %v6854_v10  ;;  %6639 = vmatmul.mubr.msk.f32.vlgmr.msra.gmra.mxu1 %vm68_vm1, %v6854_v10 }
0x252b   :  { %6642 = vmatpush3.msra.mxu0 %v7657_v40  ;;  %6643 = vmatprep.mubr.msk.f32.mxu0 %vm6996_vm0, %v6995_v0 }
0x252c   :  { %3586 = vmatpush1.msra.mxu1 %v7665_v41  ;;  %3625 = vmatprep.mubr.f32.mxu1 %v6995_v0 }
0x252d   :  { %3587 = vmatprep.subr.mxu1 %v7672_v43  ;;  %6646 = vmatprep.subr.mxu0 %v6995_v0 }
0x252e   :  { %3588 = vmatpush1.msra.mxu1 %v7679_v2 }
0x252f   :  { %3589 = vmatprep.subr.mxu1 %v7685_v44 }
0x2530   :  { %3590 = vmatpush1.msra.mxu1 %v7691_v24 }
0x2531   :  { %3591 = vmatprep.subr.mxu1 %v7697_v45 }
0x2532   :  { %3592 = vmatpush1.msra.mxu1 %v7703_v1 }
0x2533   :  { %6662 = vmatprep.subr.mxu1 %v6995_v0 }
0x25ea   :  { %v7861_v32 = vpop.f32.mrf.mxu0  ;;  %v3283_v34 = vpop.f32.mrf.mxu1 }
0x25eb   :  { %3295 = vrot.lane.b32.xlu0 %v3283_v34, %s6997_s1  ;;  %v3287_v40 = vadd.f32 %v3283_v34, %v7241_v21 }
0x25ec   :  { %v6629_v35 = vpop.f32.mrf.mxu0  ;;  %v6640_v37 = vpop.f32.mrf.mxu1 }
0x25ed   :  { %v6341_v41 = vmul.f32 -1.442695, %v3287_v40 }
0x25ef   :  { %3311 = vrot.lane.b32.xlu0 %v6854_v10, %s7008_s14  ;;  %6855 = vpow2.f32 %v6341_v41 }
0x25fc   :  { %v6856_v43 = vpop.eup %6855 }
0x25fd   :  { %v3291_v2 = vadd.f32 1.0, %v6856_v43 }
0x25ff   :  { %6857 = vrcp.f32 %v3291_v2 }
0x260c   :  { %v6858_v44 = vpop.eup %6857 }
0x260d   :  { %v3305_v48 = vsub.f32 1.0, %v6858_v44 }
0x265d   :  { %v3296_v24 = vpop.permute.xlu0 %3295 }
0x265e   :  { %v3298_v45 = vmul.f32 %v6858_v44, %v3296_v24 }
0x2660   :  { %3300 = vrot.lane.b32.xlu1 %v3298_v45, %s6997_s1 }
0x2661   :  { %v3312_v46 = vpop.permute.xlu0 %3311 }
0x2662   :  { %v3314_v51 = vmul.f32 %v6858_v44, %v3312_v46 }
0x26d2   :  { %v3301_v1 = vpop.permute.xlu1 %3300 }
0x26d3   :  { %v3303_v8 = vadd.f32 %v3301_v1, %v7241_v21 }
0x26d5   :  { %6859 = vtanh.f32 %v3303_v8 }
0x26e2   :  { %v6860_v11 = vpop.eup %6859 }
0x26e3   :  { %3307 = vrot.lane.b32.xlu1 %v6860_v11, %s6998_s21 }
0x26e7   :  { %3317 = vrot.lane.b32.xlu1 %v7241_v21, %s6997_s1 }
0x2755   :  { %v3308_v50 = vpop.permute.xlu1 %3307 }
0x2756   :  { %v3310_v52 = vmul.f32 %v3308_v50, %v3305_v48 }
0x2758   :  { %v3315_v53 = vadd.f32 %v3314_v51, %v3310_v52 }
0x2759   :  { %v7871_v54 = vpop.permute.xlu1 %3317 }
0x275a   :  { %v3320_v55 = vadd.f32 %v7871_v54, %v3315_v53 }
0x275c   :  { %v3321_v57 = vsel %vm270_vm2, %v3320_v55, 0.0 }
0x275d   :  { %v3322_v58 = vrot.slane %v3321_v57, 4 }
0x275f   :  { %v3323_v59 = vadd.f32 %v3322_v58, %v3321_v57 }
0x2761   :  { %v3324_v60 = vrot.slane %v3323_v59, 2 }
0x2763   :  { %v3325_v62 = vadd.f32 %v3324_v60, %v3323_v59 }
0x2765   :  { %v3326_v15 = vrot.slane %v3325_v62, 1 }
0x2767   :  { %v3327_v17 = vadd.f32 %v3326_v15, %v3325_v62 }
0x2769   :  { %v3328_v13 = vmul.f32 0.25, %v3327_v17 }
0x276b   :  { %v3329_v23 = vsub.f32 %v3320_v55, %v3328_v13 }
0x276d   :  { %v3330_v27 = vmul.f32 %v3329_v23, %v3329_v23 }
0x276f   :  { %v3331_v28 = vsel %vm270_vm2, %v3330_v27, 0.0 }
0x2770   :  { %v3332_v36 = vrot.slane %v3331_v28, 4 }
0x2772   :  { %v3333_v30 = vadd.f32 %v3332_v36, %v3331_v28 }
0x2774   :  { %v3334_v39 = vrot.slane %v3333_v30, 2 }
0x2776   :  { %v3335_v63 = vadd.f32 %v3334_v39, %v3333_v30 }
0x2778   :  { %v3336_v56 = vrot.slane %v3335_v63, 1 }
0x277a   :  { %v3337_v3 = vadd.f32 %v3336_v56, %v3335_v63 }
0x277c   :  { %v3338_v33 = vmul.f32 0.25, %v3337_v3 }
0x277e   :  { %v3339_v16 = vadd.f32 1e-05, %v3338_v33 }
0x2780   :  { %6861 = vrsqrt.f32 %v3339_v16 }
0x278d   :  { %v6862_v25 = vpop.eup %6861 }
0x278e   :  { %v3341_v26 = vmul.f32 %v6862_v25, %v3329_v23 }
0x2790   :  { %v3342_v4 = vmax.f32 %v3341_v26, 0.0 }
0x2792   :  { %3346 = vrot.lane.b32.xlu1 %v3342_v4, %s6999_s22  ;;  %3344 = vrot.lane.b32.xlu0 %v3342_v4, %s7000_s23 }
0x2796   :  { %3350 = vrot.lane.b32.xlu1 %v3342_v4, %s7001_s24  ;;  %3348 = vrot.lane.b32.xlu0 %v3342_v4, %s7002_s25 }
0x279a   :  { %3354 = vrot.lane.b32.xlu1 %v3342_v4, %s7003_s26  ;;  %3352 = vrot.lane.b32.xlu0 %v3342_v4, %s7004_s27 }
0x279e   :  { %3358 = vrot.lane.b32.xlu1 %v3342_v4, %s6998_s21  ;;  %3356 = vrot.lane.b32.xlu0 %v3342_v4, %s7005_s28 }
0x2804   :  { %v3347_v5 = vpop.permute.xlu1 %3346  ;;  %v3345_v7 = vpop.permute.xlu0 %3344 }
0x2805   :  { %3362 = vrot.lane.b32.xlu1 %v3347_v5, %s6998_s21  ;;  %3360 = vrot.lane.b32.xlu0 %v3345_v7, %s6998_s21 }
0x2808   :  { %v3351_v6 = vpop.permute.xlu1 %3350  ;;  %v3349_v29 = vpop.permute.xlu0 %3348 }
0x2809   :  { %3366 = vrot.lane.b32.xlu1 %v3351_v6, %s6998_s21  ;;  %3364 = vrot.lane.b32.xlu0 %v3349_v29, %s6998_s21  ;;  %v7918_v29 = vld [vmem:[%s8529_s5] ss:$0 sm:$0xff] }
0x280c   :  { %v3355_v9 = vpop.permute.xlu1 %3354  ;;  %v3353_v10 = vpop.permute.xlu0 %3352 }
0x280d   :  { %3370 = vrot.lane.b32.xlu1 %v3355_v9, %s6998_s21  ;;  %3368 = vrot.lane.b32.xlu0 %v3353_v10, %s6998_s21 }
0x2810   :  { %v3357_v34 = vpop.permute.xlu0 %3356  ;;  %v3359_v35 = vpop.permute.xlu1 %3358 }
0x2811   :  { %3372 = vrot.lane.b32.xlu0 %v3357_v34, %s6998_s21 }
0x2877   :  { %v3363_v37 = vpop.permute.xlu1 %3362  ;;  %v3361_v40 = vpop.permute.xlu0 %3360 }
0x2878   :  { %v3382_v45 = vcombine.low %v3359_v35, %v3363_v37 }
0x287a   :  { %v3389_v46 = vrot.slane %v3382_v45, %v7137_v19 }
0x287b   :  { %v3367_v41 = vpop.permute.xlu1 %3366  ;;  %v3365_v43 = vpop.permute.xlu0 %3364 }
0x287c   :  { %v3390_v2 = vcombine.low %v3361_v40, %v3365_v43 }
0x287e   :  { %v3397_v1 = vrot.slane %v3390_v2, %v7137_v19 }
0x287f   :  { %v3371_v44 = vpop.permute.xlu1 %3370  ;;  %v3369_v24 = vpop.permute.xlu0 %3368 }
0x2880   :  { %v3398_v8 = vcombine.low %v3367_v41, %v3371_v44  ;;  %v3414_v50 = vcombine.low %v3389_v46, %v3397_v1  ;;  %v3415_v53 = vcombine.high %v3389_v46, %v3397_v1 }
0x2882   :  { %v3405_v51 = vrot.slane %v3398_v8, %v7137_v19  ;;  %v3422_v58 = vrot.slane %v3414_v50, %v7143_v31  ;;  %v3429_v17 = vrot.slane %v3415_v53, %v7143_v31 }
0x2883   :  { %v3373_v11 = vpop.permute.xlu0 %3372 }
0x2884   :  { %v3406_v48 = vcombine.low %v3369_v24, %v3373_v11 }
0x2886   :  { %v3413_v52 = vrot.slane %v3406_v48, %v7137_v19 }
0x2888   :  { %v3430_v55 = vcombine.low %v3405_v51, %v3413_v52  ;;  %v3431_v57 = vcombine.high %v3405_v51, %v3413_v52 }
0x288a   :  { %v3438_v59 = vrot.slane %v3430_v55, %v7143_v31  ;;  %v3445_v60 = vrot.slane %v3431_v57, %v7143_v31 }
0x288c   :  { %v3447_v62 = vcombine.high %v3422_v58, %v3438_v59  ;;  %v3446_v15 = vcombine.low %v3422_v58, %v3438_v59  ;;  %v3448_v27 = vcombine.low %v3429_v17, %v3445_v60  ;;  %v3449_v28 = vcombine.high %v3429_v17, %v3445_v60 }
0x288e   :  { %v3453_v13 = vsel %vm401_vm3, %v3447_v62, -inf  ;;  %v3450_v23 = vsel %vm401_vm3, %v3446_v15, -inf  ;;  %v3456_v36 = vsel %vm401_vm3, %v3448_v27, -inf  ;;  %v3459_v30 = vsel %vm401_vm3, %v3449_v28, -inf }
0x288f   :  { %3454 = vmax.xlane.f32.xlu0 %v3453_v13  ;;  %3451 = vmax.xlane.f32.xlu1 %v3450_v23 }
0x2893   :  { %3457 = vmax.xlane.f32.xlu0 %v3456_v36  ;;  %3460 = vmax.xlane.f32.xlu1 %v3459_v30 }
0x2918   :  { %v3455_v39 = vpop.xlane.xlu0 %3454  ;;  %v3452_v63 = vpop.xlane.xlu1 %3451 }
0x2919   :  { %v3473_v56 = vrot.slane %v3455_v39, %v7160_v49  ;;  %v3469_v3 = vrot.slane %v3452_v63, %v7160_v49 }
0x291b   :  { %v3482_v4 = vsel %vm436_vm4, %v3473_v56, %v3469_v3 }
0x291c   :  { %v3458_v33 = vpop.xlane.xlu0 %3457  ;;  %v3461_v16 = vpop.xlane.xlu1 %3460 }
0x291d   :  { %v3477_v25 = vrot.slane %v3458_v33, %v7160_v49  ;;  %v3481_v26 = vrot.slane %v3461_v16, %v7160_v49 }
0x291f   :  { %v3483_v5 = vsel %vm438_vm5, %v3477_v25, %v3482_v4 }
0x2920   :  { %v3484_v7 = vsel %vm440_vm6, %v3481_v26, %v3483_v5 }
0x2921   :  { %6644 = vmatmul.mubr.msk.f32.vlgmr.msra.gmra.mxu0 %vm442_vm7, %v3484_v7 }
0x2922   :  { %6647 = vmatpush3.msra.mxu0 %v7756_v61  ;;  %6648 = vmatprep.mubr.msk.f32.mxu0 %vm6996_vm0, %v6995_v0  ;;  %v7934_v61 = vld [vmem:[%s8528_s3 + $0x38] sm:$0xff] }
0x2923   :  { %6651 = vmatprep.subr.mxu0 %v6995_v0 }
0x29e1   :  { %v3553_v6 = vpop.f32.mrf.mxu0 }
0x29e2   :  { %v3554_v9 = vadd.f32 %v7918_v29, %v3553_v6 }
0x29e3   :  { %v6645_v10 = vpop.f32.mrf.mxu0 }
0x29e4   :  { %6863 = vtanh.f32 %v3554_v9 }
0x29f1   :  { %v6864_v34 = vpop.eup %6863 }
0x29f2   :  { %6343 = vmatmul.mubr.msk.f32.vlgmr.msra.gmra.mxu1 %vm68_vm1, %v6864_v34 }
0x29f3   :  { %6663 = vmatpush3.msra.mxu1 %v7767_v18  ;;  %6670 = vmatprep.mubr.msk.f32.mxu1 %vm6996_vm0, %v6995_v0 }
0x29f4   :  { %6664 = vmatprep.subr.mxu1 %v6995_v0 }
0x29f5   :  { %6665 = vmatpush3.msra.mxu1 %v7776_v42 }
0x29f6   :  { %6666 = vmatprep.subr.mxu1 %v6995_v0 }
0x29f7   :  { %6667 = vmatpush3.msra.mxu1 %v7783_v14 }
0x29f8   :  { %6668 = vmatprep.subr.mxu1 %v6995_v0 }
0x29f9   :  { %6669 = vmatpush3.msra.mxu1 %v7790_v22 }
0x29fa   :  { %4352 = vmatprep.subr.mxu1 %v7934_v61 }
0x2ab2   :  { %v3627_v18 = vpop.f32.mrf.mxu1 }
0x2ab3   :  { %v6344_v35 = vmul.f32 -1.442695, %v3627_v18 }
0x2ab4   :  { %v3629_v41 = vpop.f32.mrf.mxu1 }
0x2ab5   :  { %6865 = vpow2.f32 %v6344_v35 }
0x2ac2   :  { %v6866_v37 = vpop.eup %6865 }
0x2ac3   :  { %v3635_v42 = vadd.f32 1.0, %v6866_v37 }
0x2ac5   :  { %6867 = vrcp.f32 %v3635_v42 }
0x2ad2   :  { %v6868_v40 = vpop.eup %6867 }
0x2ad3   :  { %v3638_v14 = vmul.f32 %v6868_v40, %v3629_v41  ;;  %v3645_v24 = vsub.f32 1.0, %v6868_v40 }
0x2ad5   :  { %3640 = vrot.lane.b32.xlu0 %v3638_v14, %s6997_s1 }
0x2ad9   :  { %3657 = vrot.lane.b32.xlu0 %v3627_v18, %s6997_s1 }
0x2b47   :  { %v3641_v22 = vpop.permute.xlu0 %3640 }
0x2b48   :  { %v3643_v43 = vadd.f32 %v3641_v22, %v3627_v18 }
0x2b4a   :  { %6869 = vtanh.f32 %v3643_v43 }
0x2b4b   :  { %v3658_v46 = vpop.permute.xlu0 %3657 }
0x2b57   :  { %v6870_v2 = vpop.eup %6869 }
0x2b58   :  { %3647 = vrot.lane.b32.xlu1 %v6870_v2, %s6998_s21 }
0x2b5c   :  { %3651 = vrot.lane.b32.xlu1 %v6864_v34, %s7008_s14 }
0x2bca   :  { %v3648_v44 = vpop.permute.xlu1 %3647 }
0x2bcb   :  { %v3650_v1 = vmul.f32 %v3648_v44, %v3645_v24 }
0x2bce   :  { %v3652_v45 = vpop.permute.xlu1 %3651 }
0x2bcf   :  { %v3654_v8 = vmul.f32 %v6868_v40, %v3652_v45 }
0x2bd1   :  { %v3655_v11 = vadd.f32 %v3654_v8, %v3650_v1 }
0x2bd3   :  { %v3660_v48 = vadd.f32 %v3658_v46, %v3655_v11 }
0x2bd5   :  { %v3661_v50 = vsel %vm270_vm2, %v3660_v48, 0.0 }
0x2bd6   :  { %v3662_v51 = vrot.slane %v3661_v50, 4 }
0x2bd8   :  { %v3663_v52 = vadd.f32 %v3662_v51, %v3661_v50 }
0x2bda   :  { %v3664_v53 = vrot.slane %v3663_v52, 2 }
0x2bdc   :  { %v3665_v55 = vadd.f32 %v3664_v53, %v3663_v52 }
0x2bde   :  { %v3666_v57 = vrot.slane %v3665_v55, 1 }
0x2be0   :  { %v3667_v58 = vadd.f32 %v3666_v57, %v3665_v55 }
0x2be2   :  { %v3668_v59 = vmul.f32 0.25, %v3667_v58 }
0x2be4   :  { %v3669_v60 = vsub.f32 %v3660_v48, %v3668_v59 }
0x2be6   :  { %v3670_v62 = vmul.f32 %v3669_v60, %v3669_v60 }
0x2be8   :  { %v3671_v15 = vsel %vm270_vm2, %v3670_v62, 0.0 }
0x2be9   :  { %v3672_v17 = vrot.slane %v3671_v15, 4 }
0x2beb   :  { %v3673_v13 = vadd.f32 %v3672_v17, %v3671_v15 }
0x2bed   :  { %v3674_v23 = vrot.slane %v3673_v13, 2 }
0x2bef   :  { %v3675_v27 = vadd.f32 %v3674_v23, %v3673_v13 }
0x2bf1   :  { %v3676_v28 = vrot.slane %v3675_v27, 1 }
0x2bf3   :  { %v3677_v36 = vadd.f32 %v3676_v28, %v3675_v27 }
0x2bf5   :  { %v3678_v30 = vmul.f32 0.25, %v3677_v36 }
0x2bf7   :  { %v3679_v39 = vadd.f32 1e-05, %v3678_v30 }
0x2bf9   :  { %6871 = vrsqrt.f32 %v3679_v39 }
0x2c06   :  { %v6872_v63 = vpop.eup %6871 }
0x2c07   :  { %v3681_v56 = vmul.f32 %v6872_v63, %v3669_v60 }
0x2c09   :  { %v3682_v3 = vmax.f32 %v3681_v56, 0.0 }
0x2c0b   :  { %3686 = vrot.lane.b32.xlu0 %v3682_v3, %s6999_s22  ;;  %3684 = vrot.lane.b32.xlu1 %v3682_v3, %s7000_s23 }
0x2c0f   :  { %3690 = vrot.lane.b32.xlu0 %v3682_v3, %s7001_s24  ;;  %3688 = vrot.lane.b32.xlu1 %v3682_v3, %s7002_s25 }
0x2c13   :  { %3694 = vrot.lane.b32.xlu0 %v3682_v3, %s7003_s26  ;;  %3692 = vrot.lane.b32.xlu1 %v3682_v3, %s7004_s27 }
0x2c17   :  { %3698 = vrot.lane.b32.xlu0 %v3682_v3, %s6998_s21  ;;  %3696 = vrot.lane.b32.xlu1 %v3682_v3, %s7005_s28  ;;  %v7981_v3 = vld [vmem:[%s8530_s6 + $0x18] sm:$0xff] }
0x2c7d   :  { %v3687_v33 = vpop.permute.xlu0 %3686  ;;  %v3685_v16 = vpop.permute.xlu1 %3684 }
0x2c7e   :  { %3702 = vrot.lane.b32.xlu0 %v3687_v33, %s6998_s21  ;;  %3700 = vrot.lane.b32.xlu1 %v3685_v16, %s6998_s21  ;;  %v7990_v33 = vld [vmem:[%s8530_s6 + $0x10] sm:$0xff]  ;;  %v7997_v16 = vld [vmem:[%s8530_s6 + $0x8] sm:$0xff] }
0x2c81   :  { %v3691_v25 = vpop.permute.xlu0 %3690  ;;  %v3689_v26 = vpop.permute.xlu1 %3688 }
0x2c82   :  { %3706 = vrot.lane.b32.xlu0 %v3691_v25, %s6998_s21  ;;  %3704 = vrot.lane.b32.xlu1 %v3689_v26, %s6998_s21  ;;  %v8004_v25 = vld [vmem:[%s8530_s6] sm:$0xff] }
0x2c85   :  { %v3695_v4 = vpop.permute.xlu0 %3694  ;;  %v3693_v5 = vpop.permute.xlu1 %3692 }
0x2c86   :  { %3710 = vrot.lane.b32.xlu0 %v3695_v4, %s6998_s21  ;;  %3708 = vrot.lane.b32.xlu1 %v3693_v5, %s6998_s21  ;;  %v8011_v4 = vld [vmem:[%s8529_s5 + $0x1] ss:$0 sm:$0xff] }
0x2c89   :  { %v3697_v7 = vpop.permute.xlu1 %3696  ;;  %v3699_v6 = vpop.permute.xlu0 %3698 }
0x2c8a   :  { %3712 = vrot.lane.b32.xlu1 %v3697_v7, %s6998_s21 }
0x2cf0   :  { %v3703_v9 = vpop.permute.xlu0 %3702  ;;  %v3701_v10 = vpop.permute.xlu1 %3700 }
0x2cf1   :  { %v3722_v40 = vcombine.low %v3699_v6, %v3703_v9  ;;  %v8019_v9 = vld [vmem:[%s8527_s4] sm:$0xff] }
0x2cf3   :  { %v3729_v43 = vrot.slane %v3722_v40, %v7137_v19  ;;  %v8065_v40 = vld [vmem:[%s8528_s3] sm:$0xff] }
0x2cf4   :  { %v3707_v34 = vpop.permute.xlu0 %3706  ;;  %v3705_v18 = vpop.permute.xlu1 %3704 }
0x2cf5   :  { %v3730_v35 = vcombine.low %v3701_v10, %v3705_v18  ;;  %v8027_v10 = vld [vmem:[%s8528_s3 + $0x30] sm:$0xff]  ;;  %v8041_v18 = vld [vmem:[%s8528_s3 + $0x20] sm:$0xff] }
0x2cf7   :  { %v3737_v41 = vrot.slane %v3730_v35, %v7137_v19  ;;  %v8047_v35 = vld [vmem:[%s8528_s3 + $0x18] sm:$0xff] }
0x2cf8   :  { %v3711_v37 = vpop.permute.xlu0 %3710  ;;  %v3709_v42 = vpop.permute.xlu1 %3708 }
0x2cf9   :  { %v3738_v14 = vcombine.low %v3707_v34, %v3711_v37  ;;  %v3754_v44 = vcombine.low %v3729_v43, %v3737_v41  ;;  %v3755_v1 = vcombine.high %v3729_v43, %v3737_v41  ;;  %v8034_v34 = vld [vmem:[%s8528_s3 + $0x28] sm:$0xff]  ;;  %v8053_v37 = vld [vmem:[%s8528_s3 + $0x10] sm:$0xff] }
0x2cfb   :  { %v3745_v24 = vrot.slane %v3738_v14, %v7137_v19  ;;  %v3762_v46 = vrot.slane %v3754_v44, %v7143_v31  ;;  %v3769_v53 = vrot.slane %v3755_v1, %v7143_v31 }
0x2cfc   :  { %v3713_v22 = vpop.permute.xlu1 %3712 }
0x2cfd   :  { %v3746_v2 = vcombine.low %v3709_v42, %v3713_v22  ;;  %v8059_v42 = vld [vmem:[%s8528_s3 + $0x8] sm:$0xff] }
0x2cff   :  { %v3753_v45 = vrot.slane %v3746_v2, %v7137_v19 }
0x2d01   :  { %v3770_v8 = vcombine.low %v3745_v24, %v3753_v45  ;;  %v3771_v11 = vcombine.high %v3745_v24, %v3753_v45 }
0x2d03   :  { %v3778_v48 = vrot.slane %v3770_v8, %v7143_v31  ;;  %v3785_v50 = vrot.slane %v3771_v11, %v7143_v31 }
0x2d05   :  { %v3787_v51 = vcombine.high %v3762_v46, %v3778_v48  ;;  %v3786_v52 = vcombine.low %v3762_v46, %v3778_v48  ;;  %v3788_v58 = vcombine.low %v3769_v53, %v3785_v50  ;;  %v3789_v60 = vcombine.high %v3769_v53, %v3785_v50 }
0x2d07   :  { %v3793_v55 = vsel %vm401_vm3, %v3787_v51, -inf  ;;  %v3790_v57 = vsel %vm401_vm3, %v3786_v52, -inf  ;;  %v3796_v59 = vsel %vm401_vm3, %v3788_v58, -inf  ;;  %v3799_v62 = vsel %vm401_vm3, %v3789_v60, -inf }
0x2d08   :  { %3794 = vmax.xlane.f32.xlu1 %v3793_v55  ;;  %3791 = vmax.xlane.f32.xlu0 %v3790_v57 }
0x2d0c   :  { %3797 = vmax.xlane.f32.xlu0 %v3796_v59 }
0x2d10   :  { %3800 = vmax.xlane.f32.xlu0 %v3799_v62 }
0x2d91   :  { %v3792_v15 = vpop.xlane.xlu0 %3791  ;;  %v3795_v17 = vpop.xlane.xlu1 %3794 }
0x2d92   :  { %v3813_v23 = vrot.slane %v3795_v17, %v7160_v49  ;;  %v3809_v27 = vrot.slane %v3792_v15, %v7160_v49 }
0x2d94   :  { %v3822_v30 = vsel %vm436_vm4, %v3813_v23, %v3809_v27 }
0x2d95   :  { %v3798_v13 = vpop.xlane.xlu0 %3797 }
0x2d96   :  { %v3817_v28 = vrot.slane %v3798_v13, %v7160_v49 }
0x2d98   :  { %v3823_v63 = vsel %vm438_vm5, %v3817_v28, %v3822_v30 }
0x2d99   :  { %v3801_v36 = vpop.xlane.xlu0 %3800 }
0x2d9a   :  { %v3821_v39 = vrot.slane %v3801_v36, %v7160_v49 }
0x2d9c   :  { %v3824_v56 = vsel %vm440_vm6, %v3821_v39, %v3823_v63 }
0x2d9d   :  { %6649 = vmatmul.mubr.msk.f32.vlgmr.msra.gmra.mxu0 %vm442_vm7, %v3824_v56 }
0x2d9e   :  { %6652 = vmatpush3.msra.mxu0 %v7981_v3  ;;  %6659 = vmatprep.mubr.msk.f32.mxu0 %vm6996_vm0, %v6995_v0 }
0x2d9f   :  { %6653 = vmatprep.subr.mxu0 %v6995_v0 }
0x2da0   :  { %6654 = vmatpush3.msra.mxu0 %v7990_v33 }
0x2da1   :  { %6655 = vmatprep.subr.mxu0 %v6995_v0 }
0x2da2   :  { %6656 = vmatpush3.msra.mxu0 %v7997_v16 }
0x2da3   :  { %6657 = vmatprep.subr.mxu0 %v6995_v0 }
0x2da4   :  { %6658 = vmatpush3.msra.mxu0 %v8004_v25 }
0x2da5   :  { %6673 = vmatprep.subr.mxu0 %v6995_v0 }
0x2e5d   :  { %v3893_v26 = vpop.f32.mrf.mxu0 }
0x2e5e   :  { %v3894_v5 = vadd.f32 %v8011_v4, %v3893_v26 }
0x2e5f   :  { %v6650_v7 = vpop.f32.mrf.mxu0 }
0x2e60   :  { %6873 = vtanh.f32 %v3894_v5 }
0x2e6d   :  { %v6874_v6 = vpop.eup %6873 }
0x2e6e   :  { %6660 = vmatmul.mubr.msk.f32.vlgmr.msra.gmra.mxu0 %vm68_vm1, %v6874_v6  ;;  %6671 = vmatmul.mubr.msk.f32.vlgmr.msra.gmra.mxu1 %vm68_vm1, %v6874_v6  ;;  %v4067_v52 = vrot.slane %v6874_v6, 4 }
0x2e6f   :  { %6674 = vmatpush3.msra.mxu0 %v8019_v9  ;;  %6675 = vmatprep.mubr.msk.f32.mxu0 %vm6996_vm0, %v6995_v0 }
0x2e70   :  { %4353 = vmatpush1.msra.mxu1 %v8027_v10  ;;  %4392 = vmatprep.mubr.f32.mxu1 %v6995_v0 }
0x2e71   :  { %4354 = vmatprep.subr.mxu1 %v8034_v34  ;;  %6678 = vmatprep.subr.mxu0 %v6995_v0 }
0x2e72   :  { %4355 = vmatpush1.msra.mxu1 %v8041_v18 }
0x2e73   :  { %4356 = vmatprep.subr.mxu1 %v8047_v35 }
0x2e74   :  { %4357 = vmatpush1.msra.mxu1 %v8053_v37 }
0x2e75   :  { %4358 = vmatprep.subr.mxu1 %v8059_v42 }
0x2e76   :  { %4359 = vmatpush1.msra.mxu1 %v8065_v40 }
0x2e77   :  { %6694 = vmatprep.subr.mxu1 %v6995_v0 }
0x2f2e   :  { %v8069_v41 = vpop.f32.mrf.mxu0  ;;  %v4037_v14 = vpop.f32.mrf.mxu1 }
0x2f2f   :  { %v4042_v22 = vrot.slane %v4037_v14, 4 }
0x2f30   :  { %v6661_v43 = vpop.f32.mrf.mxu0  ;;  %v6672_v2 = vpop.f32.mrf.mxu1 }
0x2f31   :  { %4051 = vrot.lane.b32.xlu1 %v4042_v22, %s6997_s1  ;;  %v4044_v44 = vadd.f32 %v4042_v22, %v7241_v21 }
0x2f33   :  { %v6348_v24 = vmul.f32 -1.442695, %v4044_v44 }
0x2f35   :  { %6875 = vpow2.f32 %v6348_v24 }
0x2f42   :  { %v6876_v45 = vpop.eup %6875 }
0x2f43   :  { %v4048_v1 = vadd.f32 1.0, %v6876_v45 }
0x2f45   :  { %6877 = vrcp.f32 %v4048_v1 }
0x2f52   :  { %v6878_v8 = vpop.eup %6877 }
0x2f53   :  { %v4061_v55 = vsub.f32 1.0, %v6878_v8 }
0x2fa3   :  { %v4052_v11 = vpop.permute.xlu1 %4051 }
0x2fa4   :  { %v4054_v46 = vmul.f32 %v6878_v8, %v4052_v11 }
0x2fa6   :  { %4056 = vrot.lane.b32.xlu0 %v4054_v46, %s6997_s1 }
0x3018   :  { %v4057_v48 = vpop.permute.xlu0 %4056 }
0x3019   :  { %v4059_v50 = vadd.f32 %v4057_v48, %v7241_v21 }
0x301b   :  { %6879 = vtanh.f32 %v4059_v50 }
0x3028   :  { %v6880_v51 = vpop.eup %6879 }
0x3029   :  { %4063 = vrot.lane.b32.xlu1 %v6880_v51, %s6998_s21 }
0x302d   :  { %4068 = vrot.lane.b32.xlu1 %v4067_v52, %s7008_s14 }
0x309b   :  { %v4064_v53 = vpop.permute.xlu1 %4063 }
0x309c   :  { %v4066_v58 = vmul.f32 %v4064_v53, %v4061_v55 }
0x309f   :  { %v4069_v57 = vpop.permute.xlu1 %4068 }
0x30a0   :  { %v4071_v59 = vmul.f32 %v6878_v8, %v4069_v57 }
0x30a2   :  { %v4072_v60 = vadd.f32 %v4071_v59, %v4066_v58 }
0x30a4   :  { %v4073_v62 = vadd.f32 %v4072_v60, %v7871_v54 }
0x30a6   :  { %v4075_v15 = vrot.slane %v4073_v62, 4 }
0x30a8   :  { %v4077_v17 = vsel %vm270_vm2, %v4075_v15, 0.0 }
0x30a9   :  { %v4078_v13 = vrot.slane %v4077_v17, 4 }
0x30ab   :  { %v4079_v21 = vadd.f32 %v4078_v13, %v4077_v17 }
0x30ad   :  { %v4080_v23 = vrot.slane %v4079_v21, 2 }
0x30af   :  { %v4081_v27 = vadd.f32 %v4080_v23, %v4079_v21 }
0x30b1   :  { %v4082_v28 = vrot.slane %v4081_v27, 1 }
0x30b3   :  { %v4083_v36 = vadd.f32 %v4082_v28, %v4081_v27 }
0x30b5   :  { %v4084_v30 = vmul.f32 0.25, %v4083_v36 }
0x30b7   :  { %v4085_v39 = vsub.f32 %v4073_v62, %v4084_v30 }
0x30b9   :  { %v4086_v63 = vmul.f32 %v4085_v39, %v4085_v39 }
0x30bb   :  { %v4088_v56 = vrot.slane %v4086_v63, 4 }
0x30bd   :  { %v4090_v26 = vsel %vm270_vm2, %v4088_v56, 0.0 }
0x30be   :  { %v4091_v5 = vrot.slane %v4090_v26, 4 }
0x30c0   :  { %v4092_v7 = vadd.f32 %v4091_v5, %v4090_v26 }
0x30c2   :  { %v4093_v6 = vrot.slane %v4092_v7, 2 }
0x30c4   :  { %v4094_v14 = vadd.f32 %v4093_v6, %v4092_v7 }
0x30c6   :  { %v4095_v54 = vrot.slane %v4094_v14, 1 }
0x30c8   :  { %v4096_v22 = vadd.f32 %v4095_v54, %v4094_v14 }
0x30ca   :  { %v4097_v43 = vmul.f32 0.25, %v4096_v22 }
0x30cc   :  { %v4098_v2 = vadd.f32 1e-05, %v4097_v43 }
0x30ce   :  { %6881 = vrsqrt.f32 %v4098_v2 }
0x30db   :  { %v6882_v44 = vpop.eup %6881 }
0x30dc   :  { %v4100_v24 = vmul.f32 %v6882_v44, %v4085_v39 }
0x30de   :  { %v4101_v45 = vmax.f32 %v4100_v24, 0.0 }
0x30e0   :  { %4105 = vrot.lane.b32.xlu1 %v4101_v45, %s6999_s22  ;;  %4103 = vrot.lane.b32.xlu0 %v4101_v45, %s7000_s23  ;;  %v4117_v1 = vrot.slane %v4101_v45, 4 }
0x30e4   :  { %4109 = vrot.lane.b32.xlu1 %v4101_v45, %s7001_s24  ;;  %4107 = vrot.lane.b32.xlu0 %v4101_v45, %s7002_s25 }
0x30e8   :  { %4113 = vrot.lane.b32.xlu1 %v4101_v45, %s7003_s26  ;;  %4111 = vrot.lane.b32.xlu0 %v4101_v45, %s7004_s27 }
0x30ec   :  { %4115 = vrot.lane.b32.xlu0 %v4101_v45, %s7005_s28  ;;  %4125 = vrot.lane.b32.xlu1 %v4117_v1, %s6998_s21 }
0x3152   :  { %v4106_v8 = vpop.permute.xlu1 %4105  ;;  %v4104_v11 = vpop.permute.xlu0 %4103 }
0x3153   :  { %v4119_v46 = vrot.slane %v4106_v8, 4  ;;  %v4118_v48 = vrot.slane %v4104_v11, 4 }
0x3155   :  { %4127 = vrot.lane.b32.xlu0 %v4118_v48, %s6998_s21  ;;  %4129 = vrot.lane.b32.xlu1 %v4119_v46, %s6998_s21 }
0x3156   :  { %v4110_v50 = vpop.permute.xlu1 %4109  ;;  %v4108_v51 = vpop.permute.xlu0 %4107 }
0x3157   :  { %v4121_v52 = vrot.slane %v4110_v50, 4  ;;  %v4120_v53 = vrot.slane %v4108_v51, 4 }
0x3159   :  { %4131 = vrot.lane.b32.xlu0 %v4120_v53, %s6998_s21  ;;  %4133 = vrot.lane.b32.xlu1 %v4121_v52, %s6998_s21 }
0x315a   :  { %v4114_v55 = vpop.permute.xlu1 %4113  ;;  %v4112_v57 = vpop.permute.xlu0 %4111 }
0x315b   :  { %v4123_v58 = vrot.slane %v4114_v55, 4  ;;  %v4122_v59 = vrot.slane %v4112_v57, 4 }
0x315d   :  { %4135 = vrot.lane.b32.xlu0 %v4122_v59, %s6998_s21  ;;  %4137 = vrot.lane.b32.xlu1 %v4123_v58, %s6998_s21 }
0x315e   :  { %v4116_v60 = vpop.permute.xlu0 %4115  ;;  %v4126_v15 = vpop.permute.xlu1 %4125 }
0x315f   :  { %v4124_v62 = vrot.slane %v4116_v60, 4 }
0x3161   :  { %4139 = vrot.lane.b32.xlu0 %v4124_v62, %s6998_s21 }
0x31c7   :  { %v4128_v17 = vpop.permute.xlu0 %4127  ;;  %v4130_v13 = vpop.permute.xlu1 %4129 }
0x31c8   :  { %v4149_v30 = vcombine.low %v4126_v15, %v4130_v13 }
0x31ca   :  { %v4156_v26 = vrot.slane %v4149_v30, %v7137_v19 }
0x31cb   :  { %v4132_v21 = vpop.permute.xlu0 %4131  ;;  %v4134_v23 = vpop.permute.xlu1 %4133 }
0x31cc   :  { %v4157_v27 = vcombine.low %v4128_v17, %v4132_v21 }
0x31ce   :  { %v4164_v39 = vrot.slane %v4157_v27, %v7137_v19 }
0x31cf   :  { %v4136_v28 = vpop.permute.xlu0 %4135  ;;  %v4138_v36 = vpop.permute.xlu1 %4137 }
0x31d0   :  { %v4165_v63 = vcombine.low %v4134_v23, %v4138_v36  ;;  %v4181_v7 = vcombine.low %v4156_v26, %v4164_v39  ;;  %v4182_v54 = vcombine.high %v4156_v26, %v4164_v39  ;;  %v8118_v23 = vld [vmem:[%s8527_s4 + $0x8] sm:$0xff]  ;;  %v8129_v39 = vld [vmem:[%s8525_s2 + $0x18] sm:$0xff] }
0x31d2   :  { %v4172_v6 = vrot.slane %v4165_v63, %v7137_v19  ;;  %v4189_v2 = vrot.slane %v4181_v7, %v7143_v31  ;;  %v4196_v8 = vrot.slane %v4182_v54, %v7143_v31  ;;  %v8145_v63 = vld [vmem:[%s8525_s2 + $0x8] sm:$0xff] }
0x31d3   :  { %v4140_v56 = vpop.permute.xlu0 %4139 }
0x31d4   :  { %v4173_v5 = vcombine.low %v4136_v28, %v4140_v56  ;;  %v8152_v56 = vld [vmem:[%s8525_s2] sm:$0xff] }
0x31d6   :  { %v4180_v14 = vrot.slane %v4173_v5, %v7137_v19 }
0x31d8   :  { %v4197_v22 = vcombine.low %v4172_v6, %v4180_v14  ;;  %v4198_v43 = vcombine.high %v4172_v6, %v4180_v14 }
0x31da   :  { %v4205_v44 = vrot.slane %v4197_v22, %v7143_v31  ;;  %v4212_v24 = vrot.slane %v4198_v43, %v7143_v31 }
0x31dc   :  { %v4214_v45 = vcombine.high %v4189_v2, %v4205_v44  ;;  %v4213_v1 = vcombine.low %v4189_v2, %v4205_v44  ;;  %v4215_v48 = vcombine.low %v4196_v8, %v4212_v24  ;;  %v4216_v50 = vcombine.high %v4196_v8, %v4212_v24 }
0x31de   :  { %v4220_v11 = vsel %vm401_vm3, %v4214_v45, -inf  ;;  %v4217_v46 = vsel %vm401_vm3, %v4213_v1, -inf  ;;  %v4223_v51 = vsel %vm401_vm3, %v4215_v48, -inf  ;;  %v4226_v52 = vsel %vm401_vm3, %v4216_v50, -inf }
0x31df   :  { %4221 = vmax.xlane.f32.xlu0 %v4220_v11  ;;  %4218 = vmax.xlane.f32.xlu1 %v4217_v46 }
0x31e3   :  { %4224 = vmax.xlane.f32.xlu0 %v4223_v51  ;;  %4227 = vmax.xlane.f32.xlu1 %v4226_v52 }
0x3268   :  { %v4222_v53 = vpop.xlane.xlu0 %4221  ;;  %v4219_v55 = vpop.xlane.xlu1 %4218 }
0x3269   :  { %v4240_v57 = vrot.slane %v4222_v53, %v7160_v49  ;;  %v4236_v58 = vrot.slane %v4219_v55, %v7160_v49 }
0x326b   :  { %v4249_v17 = vsel %vm436_vm4, %v4240_v57, %v4236_v58 }
0x326c   :  { %v4225_v59 = vpop.xlane.xlu0 %4224  ;;  %v4228_v60 = vpop.xlane.xlu1 %4227 }
0x326d   :  { %v4244_v62 = vrot.slane %v4225_v59, %v7160_v49  ;;  %v4248_v15 = vrot.slane %v4228_v60, %v7160_v49 }
0x326f   :  { %v4250_v13 = vsel %vm438_vm5, %v4244_v62, %v4249_v17 }
0x3270   :  { %v4251_v21 = vsel %vm440_vm6, %v4248_v15, %v4250_v13 }
0x3271   :  { %6676 = vmatmul.mubr.msk.f32.vlgmr.msra.gmra.mxu0 %vm442_vm7, %v4251_v21 }
0x3272   :  { %6679 = vmatpush3.msra.mxu0 %v8118_v23  ;;  %6680 = vmatprep.mubr.msk.f32.mxu0 %vm6996_vm0, %v6995_v0 }
0x3273   :  { %6683 = vmatprep.subr.mxu0 %v6995_v0 }
0x3331   :  { %v4320_v27 = vpop.f32.mrf.mxu0 }
0x3332   :  { %v4321_v28 = vadd.f32 %v7918_v29, %v4320_v27  ;;  %v8138_v29 = vld [vmem:[%s8525_s2 + $0x10] sm:$0xff] }
0x3333   :  { %v6677_v36 = vpop.f32.mrf.mxu0 }
0x3334   :  { %6883 = vtanh.f32 %v4321_v28 }
0x3341   :  { %v6884_v30 = vpop.eup %6883 }
0x3342   :  { %6350 = vmatmul.mubr.msk.f32.vlgmr.msra.gmra.mxu1 %vm68_vm1, %v6884_v30 }
0x3343   :  { %6695 = vmatpush3.msra.mxu1 %v8129_v39  ;;  %6702 = vmatprep.mubr.msk.f32.mxu1 %vm6996_vm0, %v6995_v0 }
0x3344   :  { %6696 = vmatprep.subr.mxu1 %v6995_v0 }
0x3345   :  { %6697 = vmatpush3.msra.mxu1 %v8138_v29 }
0x3346   :  { %6698 = vmatprep.subr.mxu1 %v6995_v0 }
0x3347   :  { %6699 = vmatpush3.msra.mxu1 %v8145_v63 }
0x3348   :  { %6700 = vmatprep.subr.mxu1 %v6995_v0 }
0x3349   :  { %6701 = vmatpush3.msra.mxu1 %v8152_v56 }
0x334a   :  { %5106 = vmatprep.subr.mxu1 %v7934_v61 }
0x3402   :  { %v4394_v26 = vpop.f32.mrf.mxu1 }
0x3403   :  { %v6351_v5 = vmul.f32 -1.442695, %v4394_v26 }
0x3404   :  { %v4396_v54 = vpop.f32.mrf.mxu1 }
0x3405   :  { %6885 = vpow2.f32 %v6351_v5 }
0x3412   :  { %v6886_v7 = vpop.eup %6885 }
0x3413   :  { %v4402_v6 = vadd.f32 1.0, %v6886_v7 }
0x3415   :  { %6887 = vrcp.f32 %v4402_v6 }
0x3422   :  { %v6888_v14 = vpop.eup %6887 }
0x3423   :  { %v4405_v22 = vmul.f32 %v6888_v14, %v4396_v54  ;;  %v4412_v24 = vsub.f32 1.0, %v6888_v14 }
0x3425   :  { %4407 = vrot.lane.b32.xlu0 %v4405_v22, %s6997_s1 }
0x3429   :  { %4424 = vrot.lane.b32.xlu0 %v4394_v26, %s6997_s1 }
0x3497   :  { %v4408_v43 = vpop.permute.xlu0 %4407 }
0x3498   :  { %v4410_v2 = vadd.f32 %v4408_v43, %v4394_v26 }
0x349a   :  { %6889 = vtanh.f32 %v4410_v2 }
0x349b   :  { %v4425_v46 = vpop.permute.xlu0 %4424 }
0x34a7   :  { %v6890_v44 = vpop.eup %6889 }
0x34a8   :  { %4414 = vrot.lane.b32.xlu1 %v6890_v44, %s6998_s21 }
0x34ac   :  { %4418 = vrot.lane.b32.xlu1 %v6884_v30, %s7008_s14 }
0x351a   :  { %v4415_v61 = vpop.permute.xlu1 %4414 }
0x351b   :  { %v4417_v1 = vmul.f32 %v4415_v61, %v4412_v24 }
0x351e   :  { %v4419_v45 = vpop.permute.xlu1 %4418 }
0x351f   :  { %v4421_v8 = vmul.f32 %v6888_v14, %v4419_v45 }
0x3521   :  { %v4422_v11 = vadd.f32 %v4421_v8, %v4417_v1 }
0x3523   :  { %v4427_v48 = vadd.f32 %v4425_v46, %v4422_v11 }
0x3525   :  { %v4428_v50 = vsel %vm270_vm2, %v4427_v48, 0.0 }
0x3526   :  { %v4429_v51 = vrot.slane %v4428_v50, 4 }
0x3528   :  { %v4430_v52 = vadd.f32 %v4429_v51, %v4428_v50 }
0x352a   :  { %v4431_v53 = vrot.slane %v4430_v52, 2 }
0x352c   :  { %v4432_v55 = vadd.f32 %v4431_v53, %v4430_v52 }
0x352e   :  { %v4433_v57 = vrot.slane %v4432_v55, 1 }
0x3530   :  { %v4434_v58 = vadd.f32 %v4433_v57, %v4432_v55 }
0x3532   :  { %v4435_v59 = vmul.f32 0.25, %v4434_v58 }
0x3534   :  { %v4436_v60 = vsub.f32 %v4427_v48, %v4435_v59 }
0x3536   :  { %v4437_v62 = vmul.f32 %v4436_v60, %v4436_v60 }
0x3538   :  { %v4438_v15 = vsel %vm270_vm2, %v4437_v62, 0.0 }
0x3539   :  { %v4439_v17 = vrot.slane %v4438_v15, 4 }
0x353b   :  { %v4440_v13 = vadd.f32 %v4439_v17, %v4438_v15 }
0x353d   :  { %v4441_v21 = vrot.slane %v4440_v13, 2 }
0x353f   :  { %v4442_v27 = vadd.f32 %v4441_v21, %v4440_v13 }
0x3541   :  { %v4443_v28 = vrot.slane %v4442_v27, 1 }
0x3543   :  { %v4444_v36 = vadd.f32 %v4443_v28, %v4442_v27 }
0x3545   :  { %v4445_v30 = vmul.f32 0.25, %v4444_v36 }
0x3547   :  { %v4446_v26 = vadd.f32 1e-05, %v4445_v30 }
0x3549   :  { %6891 = vrsqrt.f32 %v4446_v26 }
0x3556   :  { %v6892_v5 = vpop.eup %6891 }
0x3557   :  { %v4448_v7 = vmul.f32 %v6892_v5, %v4436_v60 }
0x3559   :  { %v4449_v6 = vmax.f32 %v4448_v7, 0.0 }
0x355b   :  { %4453 = vrot.lane.b32.xlu0 %v4449_v6, %s6999_s22  ;;  %4451 = vrot.lane.b32.xlu1 %v4449_v6, %s7000_s23 }
0x355f   :  { %4457 = vrot.lane.b32.xlu0 %v4449_v6, %s7001_s24  ;;  %4455 = vrot.lane.b32.xlu1 %v4449_v6, %s7002_s25 }
0x3563   :  { %4461 = vrot.lane.b32.xlu0 %v4449_v6, %s7003_s26  ;;  %4459 = vrot.lane.b32.xlu1 %v4449_v6, %s7004_s27 }
0x3567   :  { %4465 = vrot.lane.b32.xlu0 %v4449_v6, %s6998_s21  ;;  %4463 = vrot.lane.b32.xlu1 %v4449_v6, %s7005_s28 }
0x35cd   :  { %v4454_v14 = vpop.permute.xlu0 %4453  ;;  %v4452_v54 = vpop.permute.xlu1 %4451 }
0x35ce   :  { %4469 = vrot.lane.b32.xlu0 %v4454_v14, %s6998_s21  ;;  %4467 = vrot.lane.b32.xlu1 %v4452_v54, %s6998_s21 }
0x35d1   :  { %v4458_v22 = vpop.permute.xlu0 %4457  ;;  %v4456_v43 = vpop.permute.xlu1 %4455 }
0x35d2   :  { %4473 = vrot.lane.b32.xlu0 %v4458_v22, %s6998_s21  ;;  %4471 = vrot.lane.b32.xlu1 %v4456_v43, %s6998_s21 }
0x35d5   :  { %v4462_v2 = vpop.permute.xlu0 %4461  ;;  %v4460_v44 = vpop.permute.xlu1 %4459 }
0x35d6   :  { %4477 = vrot.lane.b32.xlu0 %v4462_v2, %s6998_s21  ;;  %4475 = vrot.lane.b32.xlu1 %v4460_v44, %s6998_s21 }
0x35d9   :  { %v4464_v61 = vpop.permute.xlu1 %4463  ;;  %v4466_v24 = vpop.permute.xlu0 %4465 }
0x35da   :  { %4479 = vrot.lane.b32.xlu1 %v4464_v61, %s6998_s21 }
0x3640   :  { %v4470_v45 = vpop.permute.xlu0 %4469  ;;  %v4468_v1 = vpop.permute.xlu1 %4467 }
0x3641   :  { %v4489_v51 = vcombine.low %v4466_v24, %v4470_v45 }
0x3643   :  { %v4496_v57 = vrot.slane %v4489_v51, %v7137_v19 }
0x3644   :  { %v4474_v8 = vpop.permute.xlu0 %4473  ;;  %v4472_v11 = vpop.permute.xlu1 %4471 }
0x3645   :  { %v4497_v46 = vcombine.low %v4468_v1, %v4472_v11 }
0x3647   :  { %v4504_v52 = vrot.slane %v4497_v46, %v7137_v19 }
0x3648   :  { %v4478_v48 = vpop.permute.xlu0 %4477  ;;  %v4476_v50 = vpop.permute.xlu1 %4475 }
0x3649   :  { %v4505_v53 = vcombine.low %v4474_v8, %v4478_v48  ;;  %v4521_v59 = vcombine.low %v4496_v57, %v4504_v52  ;;  %v4522_v15 = vcombine.high %v4496_v57, %v4504_v52 }
0x364b   :  { %v4512_v60 = vrot.slane %v4505_v53, %v7137_v19  ;;  %v4529_v21 = vrot.slane %v4521_v59, %v7143_v31  ;;  %v4536_v26 = vrot.slane %v4522_v15, %v7143_v31 }
0x364c   :  { %v4480_v55 = vpop.permute.xlu1 %4479 }
0x364d   :  { %v4513_v58 = vcombine.low %v4476_v50, %v4480_v55 }
0x364f   :  { %v4520_v62 = vrot.slane %v4513_v58, %v7137_v19 }
0x3651   :  { %v4537_v17 = vcombine.low %v4512_v60, %v4520_v62  ;;  %v4538_v13 = vcombine.high %v4512_v60, %v4520_v62 }
0x3653   :  { %v4545_v27 = vrot.slane %v4537_v17, %v7143_v31  ;;  %v4552_v28 = vrot.slane %v4538_v13, %v7143_v31 }
0x3655   :  { %v4554_v36 = vcombine.high %v4529_v21, %v4545_v27  ;;  %v4553_v30 = vcombine.low %v4529_v21, %v4545_v27  ;;  %v4555_v6 = vcombine.low %v4536_v26, %v4552_v28  ;;  %v4556_v54 = vcombine.high %v4536_v26, %v4552_v28 }
0x3657   :  { %v4560_v5 = vsel %vm401_vm3, %v4554_v36, -inf  ;;  %v4557_v7 = vsel %vm401_vm3, %v4553_v30, -inf  ;;  %v4563_v14 = vsel %vm401_vm3, %v4555_v6, -inf  ;;  %v4566_v22 = vsel %vm401_vm3, %v4556_v54, -inf }
0x3658   :  { %4561 = vmax.xlane.f32.xlu1 %v4560_v5  ;;  %4558 = vmax.xlane.f32.xlu0 %v4557_v7 }
0x365c   :  { %4564 = vmax.xlane.f32.xlu0 %v4563_v14 }
0x3660   :  { %4567 = vmax.xlane.f32.xlu0 %v4566_v22 }
0x36e1   :  { %v4559_v43 = vpop.xlane.xlu0 %4558  ;;  %v4562_v2 = vpop.xlane.xlu1 %4561 }
0x36e2   :  { %v4580_v61 = vrot.slane %v4562_v2, %v7160_v49  ;;  %v4576_v24 = vrot.slane %v4559_v43, %v7160_v49 }
0x36e4   :  { %v4589_v8 = vsel %vm436_vm4, %v4580_v61, %v4576_v24 }
0x36e5   :  { %v4565_v44 = vpop.xlane.xlu0 %4564 }
0x36e6   :  { %v4584_v45 = vrot.slane %v4565_v44, %v7160_v49 }
0x36e8   :  { %v4590_v46 = vsel %vm438_vm5, %v4584_v45, %v4589_v8 }
0x36e9   :  { %v4568_v1 = vpop.xlane.xlu0 %4567 }
0x36ea   :  { %v4588_v11 = vrot.slane %v4568_v1, %v7160_v49 }
0x36ec   :  { %v4591_v48 = vsel %vm440_vm6, %v4588_v11, %v4590_v46 }
0x36ed   :  { %6681 = vmatmul.mubr.msk.f32.vlgmr.msra.gmra.mxu0 %vm442_vm7, %v4591_v48 }
0x36ee   :  { %6684 = vmatpush3.msra.mxu0 %v7981_v3  ;;  %6691 = vmatprep.mubr.msk.f32.mxu0 %vm6996_vm0, %v6995_v0 }
0x36ef   :  { %6685 = vmatprep.subr.mxu0 %v6995_v0 }
0x36f0   :  { %6686 = vmatpush3.msra.mxu0 %v7990_v33 }
0x36f1   :  { %6687 = vmatprep.subr.mxu0 %v6995_v0 }
0x36f2   :  { %6688 = vmatpush3.msra.mxu0 %v7997_v16 }
0x36f3   :  { %6689 = vmatprep.subr.mxu0 %v6995_v0 }
0x36f4   :  { %6690 = vmatpush3.msra.mxu0 %v8004_v25 }
0x36f5   :  { %6705 = vmatprep.subr.mxu0 %v6995_v0 }
0x37ad   :  { %v4660_v50 = vpop.f32.mrf.mxu0 }
0x37ae   :  { %v4661_v3 = vadd.f32 %v8011_v4, %v4660_v50 }
0x37af   :  { %v6682_v51 = vpop.f32.mrf.mxu0 }
0x37b0   :  { %6893 = vtanh.f32 %v4661_v3 }
0x37bd   :  { %v6894_v52 = vpop.eup %6893 }
0x37be   :  { %6692 = vmatmul.mubr.msk.f32.vlgmr.msra.gmra.mxu0 %vm68_vm1, %v6894_v52  ;;  %6703 = vmatmul.mubr.msk.f32.vlgmr.msra.gmra.mxu1 %vm68_vm1, %v6894_v52 }
0x37bf   :  { %6706 = vmatpush3.msra.mxu0 %v8019_v9  ;;  %6707 = vmatprep.mubr.msk.f32.mxu0 %vm6996_vm0, %v6995_v0 }
0x37c0   :  { %5107 = vmatpush1.msra.mxu1 %v8027_v10  ;;  %5146 = vmatprep.mubr.f32.mxu1 %v6995_v0 }
0x37c1   :  { %5108 = vmatprep.subr.mxu1 %v8034_v34  ;;  %6710 = vmatprep.subr.mxu0 %v6995_v0 }
0x37c2   :  { %5109 = vmatpush1.msra.mxu1 %v8041_v18 }
0x37c3   :  { %5110 = vmatprep.subr.mxu1 %v8047_v35 }
0x37c4   :  { %5111 = vmatpush1.msra.mxu1 %v8053_v37 }
0x37c5   :  { %5112 = vmatprep.subr.mxu1 %v8059_v42 }
0x37c6   :  { %5113 = vmatpush1.msra.mxu1 %v8065_v40 }
0x37c7   :  { %6726 = vmatprep.subr.mxu1 %v6995_v0 }
0x387e   :  { %v8223_v33 = vpop.f32.mrf.mxu0  ;;  %v4804_v16 = vpop.f32.mrf.mxu1 }
0x387f   :  { %4816 = vrot.lane.b32.xlu1 %v4804_v16, %s6997_s1  ;;  %v4808_v9 = vadd.f32 %v7239_v20, %v4804_v16 }
0x3880   :  { %v6693_v25 = vpop.f32.mrf.mxu0  ;;  %v6704_v4 = vpop.f32.mrf.mxu1 }
0x3881   :  { %v6355_v10 = vmul.f32 -1.442695, %v4808_v9 }
0x3883   :  { %6895 = vpow2.f32 %v6355_v10 }
0x3890   :  { %v6896_v34 = vpop.eup %6895 }
0x3891   :  { %v4812_v18 = vadd.f32 1.0, %v6896_v34 }
0x3893   :  { %6897 = vrcp.f32 %v4812_v18 }
0x38a0   :  { %v6898_v35 = vpop.eup %6897 }
0x38a1   :  { %v4826_v58 = vsub.f32 1.0, %v6898_v35 }
0x38f1   :  { %v4817_v37 = vpop.permute.xlu1 %4816 }
0x38f2   :  { %v4819_v42 = vmul.f32 %v6898_v35, %v4817_v37 }
0x38f4   :  { %4821 = vrot.lane.b32.xlu0 %v4819_v42, %s6997_s1 }
0x38f8   :  { %4838 = vrot.lane.b32.xlu0 %v7239_v20, %s6997_s1 }
0x3966   :  { %v4822_v40 = vpop.permute.xlu0 %4821 }
0x3967   :  { %v4824_v53 = vadd.f32 %v7239_v20, %v4822_v40 }
0x3969   :  { %6899 = vtanh.f32 %v4824_v53 }
0x396a   :  { %v8233_v17 = vpop.permute.xlu0 %4838 }
0x3976   :  { %v6900_v55 = vpop.eup %6899 }
0x3977   :  { %4828 = vrot.lane.b32.xlu1 %v6900_v55, %s6998_s21 }
0x397b   :  { %4832 = vrot.lane.b32.xlu1 %v6894_v52, %s7008_s14 }
0x39e9   :  { %v4829_v57 = vpop.permute.xlu1 %4828 }
0x39ea   :  { %v4831_v60 = vmul.f32 %v4829_v57, %v4826_v58 }
0x39ed   :  { %v4833_v59 = vpop.permute.xlu1 %4832 }
0x39ee   :  { %v4835_v62 = vmul.f32 %v6898_v35, %v4833_v59 }
0x39f0   :  { %v4836_v15 = vadd.f32 %v4835_v62, %v4831_v60 }
0x39f2   :  { %v4841_v13 = vadd.f32 %v8233_v17, %v4836_v15 }
0x39f4   :  { %v4842_v21 = vsel %vm270_vm2, %v4841_v13, 0.0 }
0x39f5   :  { %v4843_v27 = vrot.slane %v4842_v21, 4 }
0x39f7   :  { %v4844_v28 = vadd.f32 %v4843_v27, %v4842_v21 }
0x39f9   :  { %v4845_v36 = vrot.slane %v4844_v28, 2 }
0x39fb   :  { %v4846_v30 = vadd.f32 %v4845_v36, %v4844_v28 }
0x39fd   :  { %v4847_v26 = vrot.slane %v4846_v30, 1 }
0x39ff   :  { %v4848_v5 = vadd.f32 %v4847_v26, %v4846_v30 }
0x3a01   :  { %v4849_v7 = vmul.f32 0.25, %v4848_v5 }
0x3a03   :  { %v4850_v6 = vsub.f32 %v4841_v13, %v4849_v7 }
0x3a05   :  { %v4851_v14 = vmul.f32 %v4850_v6, %v4850_v6 }
0x3a07   :  { %v4852_v54 = vsel %vm270_vm2, %v4851_v14, 0.0 }
0x3a08   :  { %v4853_v22 = vrot.slane %v4852_v54, 4 }
0x3a0a   :  { %v4854_v43 = vadd.f32 %v4853_v22, %v4852_v54 }
0x3a0c   :  { %v4855_v2 = vrot.slane %v4854_v43, 2 }
0x3a0e   :  { %v4856_v44 = vadd.f32 %v4855_v2, %v4854_v43 }
0x3a10   :  { %v4857_v61 = vrot.slane %v4856_v44, 1 }
0x3a12   :  { %v4858_v24 = vadd.f32 %v4857_v61, %v4856_v44 }
0x3a14   :  { %v4859_v45 = vmul.f32 0.25, %v4858_v24 }
0x3a16   :  { %v4860_v1 = vadd.f32 1e-05, %v4859_v45 }
0x3a18   :  { %6901 = vrsqrt.f32 %v4860_v1 }
0x3a25   :  { %v6902_v8 = vpop.eup %6901 }
0x3a26   :  { %v4862_v11 = vmul.f32 %v6902_v8, %v4850_v6 }
0x3a28   :  { %v4863_v46 = vmax.f32 %v4862_v11, 0.0 }
0x3a2a   :  { %4867 = vrot.lane.b32.xlu0 %v4863_v46, %s6999_s22  ;;  %4865 = vrot.lane.b32.xlu1 %v4863_v46, %s7000_s23 }
0x3a2e   :  { %4871 = vrot.lane.b32.xlu0 %v4863_v46, %s7001_s24  ;;  %4869 = vrot.lane.b32.xlu1 %v4863_v46, %s7002_s25 }
0x3a32   :  { %4875 = vrot.lane.b32.xlu0 %v4863_v46, %s7003_s26  ;;  %4873 = vrot.lane.b32.xlu1 %v4863_v46, %s7004_s27 }
0x3a36   :  { %4879 = vrot.lane.b32.xlu0 %v4863_v46, %s6998_s21  ;;  %4877 = vrot.lane.b32.xlu1 %v4863_v46, %s7005_s28 }
0x3a9c   :  { %v4868_v48 = vpop.permute.xlu0 %4867  ;;  %v4866_v50 = vpop.permute.xlu1 %4865 }
0x3a9d   :  { %4883 = vrot.lane.b32.xlu0 %v4868_v48, %s6998_s21  ;;  %4881 = vrot.lane.b32.xlu1 %v4866_v50, %s6998_s21 }
0x3aa0   :  { %v4872_v3 = vpop.permute.xlu0 %4871  ;;  %v4870_v51 = vpop.permute.xlu1 %4869 }
0x3aa1   :  { %4887 = vrot.lane.b32.xlu0 %v4872_v3, %s6998_s21  ;;  %4885 = vrot.lane.b32.xlu1 %v4870_v51, %s6998_s21 }
0x3aa4   :  { %v4876_v52 = vpop.permute.xlu0 %4875  ;;  %v4874_v16 = vpop.permute.xlu1 %4873 }
0x3aa5   :  { %4891 = vrot.lane.b32.xlu0 %v4876_v52, %s6998_s21  ;;  %4889 = vrot.lane.b32.xlu1 %v4874_v16, %s6998_s21  ;;  %v8280_v52 = vld [vmem:[%s8529_s5] ss:$0 sm:$0xff] }
0x3aa8   :  { %v4878_v25 = vpop.permute.xlu1 %4877  ;;  %v4880_v4 = vpop.permute.xlu0 %4879 }
0x3aa9   :  { %4893 = vrot.lane.b32.xlu1 %v4878_v25, %s6998_s21 }
0x3b0f   :  { %v4884_v9 = vpop.permute.xlu0 %4883  ;;  %v4882_v10 = vpop.permute.xlu1 %4881 }
0x3b10   :  { %v4903_v40 = vcombine.low %v4880_v4, %v4884_v9 }
0x3b12   :  { %v4910_v58 = vrot.slane %v4903_v40, %v7137_v19 }
0x3b13   :  { %v4888_v34 = vpop.permute.xlu0 %4887  ;;  %v4886_v18 = vpop.permute.xlu1 %4885 }
0x3b14   :  { %v4911_v35 = vcombine.low %v4882_v10, %v4886_v18 }
0x3b16   :  { %v4918_v53 = vrot.slane %v4911_v35, %v7137_v19 }
0x3b17   :  { %v4892_v37 = vpop.permute.xlu0 %4891  ;;  %v4890_v42 = vpop.permute.xlu1 %4889 }
0x3b18   :  { %v4919_v55 = vcombine.low %v4888_v34, %v4892_v37  ;;  %v4935_v60 = vcombine.low %v4910_v58, %v4918_v53  ;;  %v4936_v13 = vcombine.high %v4910_v58, %v4918_v53 }
0x3b1a   :  { %v4926_v62 = vrot.slane %v4919_v55, %v7137_v19  ;;  %v4943_v28 = vrot.slane %v4935_v60, %v7143_v31  ;;  %v4950_v7 = vrot.slane %v4936_v13, %v7143_v31 }
0x3b1b   :  { %v4894_v57 = vpop.permute.xlu1 %4893 }
0x3b1c   :  { %v4927_v59 = vcombine.low %v4890_v42, %v4894_v57 }
0x3b1e   :  { %v4934_v15 = vrot.slane %v4927_v59, %v7137_v19 }
0x3b20   :  { %v4951_v21 = vcombine.low %v4926_v62, %v4934_v15  ;;  %v4952_v27 = vcombine.high %v4926_v62, %v4934_v15 }
0x3b22   :  { %v4959_v36 = vrot.slane %v4951_v21, %v7143_v31  ;;  %v4966_v30 = vrot.slane %v4952_v27, %v7143_v31 }
0x3b24   :  { %v4968_v26 = vcombine.high %v4943_v28, %v4959_v36  ;;  %v4967_v5 = vcombine.low %v4943_v28, %v4959_v36  ;;  %v4969_v54 = vcombine.low %v4950_v7, %v4966_v30  ;;  %v4970_v43 = vcombine.high %v4950_v7, %v4966_v30 }
0x3b26   :  { %v4974_v6 = vsel %vm401_vm3, %v4968_v26, -inf  ;;  %v4971_v14 = vsel %vm401_vm3, %v4967_v5, -inf  ;;  %v4977_v22 = vsel %vm401_vm3, %v4969_v54, -inf  ;;  %v4980_v2 = vsel %vm401_vm3, %v4970_v43, -inf }
0x3b27   :  { %4975 = vmax.xlane.f32.xlu1 %v4974_v6  ;;  %4972 = vmax.xlane.f32.xlu0 %v4971_v14 }
0x3b2b   :  { %4978 = vmax.xlane.f32.xlu0 %v4977_v22 }
0x3b2f   :  { %4981 = vmax.xlane.f32.xlu0 %v4980_v2 }
0x3bb0   :  { %v4973_v44 = vpop.xlane.xlu0 %4972  ;;  %v4976_v61 = vpop.xlane.xlu1 %4975 }
0x3bb1   :  { %v4994_v45 = vrot.slane %v4976_v61, %v7160_v49  ;;  %v4990_v1 = vrot.slane %v4973_v44, %v7160_v49 }
0x3bb3   :  { %v5003_v46 = vsel %vm436_vm4, %v4994_v45, %v4990_v1 }
0x3bb4   :  { %v4979_v24 = vpop.xlane.xlu0 %4978 }
0x3bb5   :  { %v4998_v8 = vrot.slane %v4979_v24, %v7160_v49 }
0x3bb7   :  { %v5004_v50 = vsel %vm438_vm5, %v4998_v8, %v5003_v46 }
0x3bb8   :  { %v4982_v11 = vpop.xlane.xlu0 %4981 }
0x3bb9   :  { %v5002_v48 = vrot.slane %v4982_v11, %v7160_v49 }
0x3bbb   :  { %v5005_v3 = vsel %vm440_vm6, %v5002_v48, %v5004_v50 }
0x3bbc   :  { %6708 = vmatmul.mubr.msk.f32.vlgmr.msra.gmra.mxu0 %vm442_vm7, %v5005_v3 }
0x3bbd   :  { %6711 = vmatpush3.msra.mxu0 %v8118_v23  ;;  %6712 = vmatprep.mubr.msk.f32.mxu0 %vm6996_vm0, %v6995_v0  ;;  %v6980_v23 = vld [vmem:[%s8528_s3 + $0x38] sm:$0xff] }
0x3bbe   :  { %6715 = vmatprep.subr.mxu0 %v6995_v0 }
0x3c7c   :  { %v5074_v51 = vpop.f32.mrf.mxu0 }
0x3c7d   :  { %v5075_v16 = vadd.f32 %v8280_v52, %v5074_v51 }
0x3c7e   :  { %v6709_v25 = vpop.f32.mrf.mxu0 }
0x3c7f   :  { %6903 = vtanh.f32 %v5075_v16 }
0x3c8c   :  { %v6904_v4 = vpop.eup %6903 }
0x3c8d   :  { %6357 = vmatmul.mubr.msk.f32.vlgmr.msra.gmra.mxu1 %vm68_vm1, %v6904_v4 }
0x3c8e   :  { %6727 = vmatpush3.msra.mxu1 %v8129_v39  ;;  %6734 = vmatprep.mubr.msk.f32.mxu1 %vm6996_vm0, %v6995_v0 }
0x3c8f   :  { %6728 = vmatprep.subr.mxu1 %v6995_v0 }
0x3c90   :  { %6729 = vmatpush3.msra.mxu1 %v8138_v29 }
0x3c91   :  { %6730 = vmatprep.subr.mxu1 %v6995_v0 }
0x3c92   :  { %6731 = vmatpush3.msra.mxu1 %v8145_v63 }
0x3c93   :  { %6732 = vmatprep.subr.mxu1 %v6995_v0 }
0x3c94   :  { %6733 = vmatpush3.msra.mxu1 %v8152_v56 }
0x3c95   :  { %5873 = vmatprep.subr.mxu1 %v6980_v23 }
0x3d4d   :  { %v5148_v39 = vpop.f32.mrf.mxu1 }
0x3d4e   :  { %v6358_v9 = vmul.f32 -1.442695, %v5148_v39 }
0x3d4f   :  { %v5150_v18 = vpop.f32.mrf.mxu1 }
0x3d50   :  { %6905 = vpow2.f32 %v6358_v9 }
0x3d5d   :  { %v6906_v10 = vpop.eup %6905 }
0x3d5e   :  { %v5156_v34 = vadd.f32 1.0, %v6906_v10 }
0x3d60   :  { %6907 = vrcp.f32 %v5156_v34 }
0x3d6d   :  { %v6908_v29 = vpop.eup %6907 }
0x3d6e   :  { %v5159_v35 = vmul.f32 %v6908_v29, %v5150_v18  ;;  %v5166_v40 = vsub.f32 1.0, %v6908_v29 }
0x3d70   :  { %5161 = vrot.lane.b32.xlu1 %v5159_v35, %s6997_s1 }
0x3d74   :  { %5172 = vrot.lane.b32.xlu1 %v6904_v4, %s7008_s14 }
0x3d78   :  { %5178 = vrot.lane.b32.xlu1 %v5148_v39, %s6997_s1 }
0x3de2   :  { %v5162_v63 = vpop.permute.xlu1 %5161 }
0x3de3   :  { %v5164_v56 = vadd.f32 %v5162_v63, %v5148_v39 }
0x3de5   :  { %6909 = vtanh.f32 %v5164_v56 }
0x3de6   :  { %v5173_v42 = vpop.permute.xlu1 %5172 }
0x3de7   :  { %v5175_v55 = vmul.f32 %v6908_v29, %v5173_v42 }
0x3dea   :  { %v5179_v59 = vpop.permute.xlu1 %5178 }
0x3df2   :  { %v6910_v37 = vpop.eup %6909 }
0x3df3   :  { %5168 = vrot.lane.b32.xlu0 %v6910_v37, %s6998_s21 }
0x3e65   :  { %v5169_v53 = vpop.permute.xlu0 %5168 }
0x3e66   :  { %v5171_v57 = vmul.f32 %v5169_v53, %v5166_v40 }
0x3e68   :  { %v5176_v58 = vadd.f32 %v5175_v55, %v5171_v57 }
0x3e6a   :  { %v5181_v60 = vadd.f32 %v5179_v59, %v5176_v58 }
0x3e6c   :  { %v5182_v62 = vsel %vm270_vm2, %v5181_v60, 0.0 }
0x3e6d   :  { %v5183_v15 = vrot.slane %v5182_v62, 4 }
0x3e6f   :  { %v5184_v13 = vadd.f32 %v5183_v15, %v5182_v62 }
0x3e71   :  { %v5185_v21 = vrot.slane %v5184_v13, 2 }
0x3e73   :  { %v5186_v27 = vadd.f32 %v5185_v21, %v5184_v13 }
0x3e75   :  { %v5187_v28 = vrot.slane %v5186_v27, 1 }
0x3e77   :  { %v5188_v36 = vadd.f32 %v5187_v28, %v5186_v27 }
0x3e79   :  { %v5189_v30 = vmul.f32 0.25, %v5188_v36 }
0x3e7b   :  { %v5190_v26 = vsub.f32 %v5181_v60, %v5189_v30 }
0x3e7d   :  { %v5191_v5 = vmul.f32 %v5190_v26, %v5190_v26 }
0x3e7f   :  { %v5192_v7 = vsel %vm270_vm2, %v5191_v5, 0.0 }
0x3e80   :  { %v5193_v6 = vrot.slane %v5192_v7, 4 }
0x3e82   :  { %v5194_v14 = vadd.f32 %v5193_v6, %v5192_v7 }
0x3e84   :  { %v5195_v54 = vrot.slane %v5194_v14, 2 }
0x3e86   :  { %v5196_v22 = vadd.f32 %v5195_v54, %v5194_v14 }
0x3e88   :  { %v5197_v43 = vrot.slane %v5196_v22, 1 }
0x3e8a   :  { %v5198_v2 = vadd.f32 %v5197_v43, %v5196_v22 }
0x3e8c   :  { %v5199_v44 = vmul.f32 0.25, %v5198_v2 }
0x3e8e   :  { %v5200_v61 = vadd.f32 1e-05, %v5199_v44 }
0x3e90   :  { %6911 = vrsqrt.f32 %v5200_v61 }
0x3e9d   :  { %v6912_v24 = vpop.eup %6911 }
0x3e9e   :  { %v5202_v45 = vmul.f32 %v6912_v24, %v5190_v26 }
0x3ea0   :  { %v5203_v1 = vmax.f32 %v5202_v45, 0.0 }
0x3ea2   :  { %5207 = vrot.lane.b32.xlu1 %v5203_v1, %s6999_s22  ;;  %5205 = vrot.lane.b32.xlu0 %v5203_v1, %s7000_s23 }
0x3ea6   :  { %5211 = vrot.lane.b32.xlu1 %v5203_v1, %s7001_s24  ;;  %5209 = vrot.lane.b32.xlu0 %v5203_v1, %s7002_s25 }
0x3eaa   :  { %5215 = vrot.lane.b32.xlu1 %v5203_v1, %s7003_s26  ;;  %5213 = vrot.lane.b32.xlu0 %v5203_v1, %s7004_s27 }
0x3eae   :  { %5219 = vrot.lane.b32.xlu1 %v5203_v1, %s6998_s21  ;;  %5217 = vrot.lane.b32.xlu0 %v5203_v1, %s7005_s28  ;;  %v8340_v1 = vld [vmem:[%s8530_s6 + $0x18] sm:$0xff] }
0x3f14   :  { %v5208_v8 = vpop.permute.xlu1 %5207  ;;  %v5206_v11 = vpop.permute.xlu0 %5205 }
0x3f15   :  { %5223 = vrot.lane.b32.xlu1 %v5208_v8, %s6998_s21  ;;  %5221 = vrot.lane.b32.xlu0 %v5206_v11, %s6998_s21  ;;  %v8349_v8 = vld [vmem:[%s8530_s6 + $0x10] sm:$0xff]  ;;  %v8356_v11 = vld [vmem:[%s8530_s6 + $0x8] sm:$0xff] }
0x3f18   :  { %v5212_v46 = vpop.permute.xlu1 %5211  ;;  %v5210_v48 = vpop.permute.xlu0 %5209 }
0x3f19   :  { %5227 = vrot.lane.b32.xlu1 %v5212_v46, %s6998_s21  ;;  %5225 = vrot.lane.b32.xlu0 %v5210_v48, %s6998_s21  ;;  %v8363_v46 = vld [vmem:[%s8530_s6] sm:$0xff] }
0x3f1c   :  { %v5216_v50 = vpop.permute.xlu1 %5215  ;;  %v5214_v3 = vpop.permute.xlu0 %5213 }
0x3f1d   :  { %5231 = vrot.lane.b32.xlu1 %v5216_v50, %s6998_s21  ;;  %5229 = vrot.lane.b32.xlu0 %v5214_v3, %s6998_s21  ;;  %v8370_v50 = vld [vmem:[%s8529_s5 + $0x1] ss:$0 sm:$0xff] }
0x3f20   :  { %v5218_v51 = vpop.permute.xlu0 %5217  ;;  %v5220_v16 = vpop.permute.xlu1 %5219 }
0x3f21   :  { %5233 = vrot.lane.b32.xlu0 %v5218_v51, %s6998_s21 }
0x3f87   :  { %v5224_v25 = vpop.permute.xlu1 %5223  ;;  %v5222_v4 = vpop.permute.xlu0 %5221 }
0x3f88   :  { %v5243_v29 = vcombine.low %v5220_v16, %v5224_v25  ;;  %v6986_v25 = vld [vmem:[%s8527_s4] sm:$0xff] }
0x3f8a   :  { %v5250_v56 = vrot.slane %v5243_v29, %v7137_v19  ;;  %v6993_v29 = vld [vmem:[%s8528_s3] sm:$0xff] }
0x3f8b   :  { %v5228_v23 = vpop.permute.xlu1 %5227  ;;  %v5226_v39 = vpop.permute.xlu0 %5225 }
0x3f8c   :  { %v5251_v9 = vcombine.low %v5222_v4, %v5226_v39  ;;  %v6987_v4 = vld [vmem:[%s8528_s3 + $0x30] sm:$0xff]  ;;  %v6989_v39 = vld [vmem:[%s8528_s3 + $0x20] sm:$0xff] }
0x3f8e   :  { %v5258_v18 = vrot.slane %v5251_v9, %v7137_v19  ;;  %v6990_v9 = vld [vmem:[%s8528_s3 + $0x18] sm:$0xff] }
0x3f8f   :  { %v5232_v10 = vpop.permute.xlu1 %5231  ;;  %v5230_v34 = vpop.permute.xlu0 %5229 }
0x3f90   :  { %v5259_v35 = vcombine.low %v5228_v23, %v5232_v10  ;;  %v5275_v42 = vcombine.low %v5250_v56, %v5258_v18  ;;  %v5276_v55 = vcombine.high %v5250_v56, %v5258_v18  ;;  %v6988_v23 = vld [vmem:[%s8528_s3 + $0x28] sm:$0xff]  ;;  %v6991_v10 = vld [vmem:[%s8528_s3 + $0x10] sm:$0xff] }
0x3f92   :  { %v5266_v40 = vrot.slane %v5259_v35, %v7137_v19  ;;  %v5283_v59 = vrot.slane %v5275_v42, %v7143_v31  ;;  %v5290_v21 = vrot.slane %v5276_v55, %v7143_v31 }
0x3f93   :  { %v5234_v63 = vpop.permute.xlu0 %5233 }
0x3f94   :  { %v5267_v37 = vcombine.low %v5230_v34, %v5234_v63  ;;  %v6992_v34 = vld [vmem:[%s8528_s3 + $0x8] sm:$0xff] }
0x3f96   :  { %v5274_v53 = vrot.slane %v5267_v37, %v7137_v19 }
0x3f98   :  { %v5291_v57 = vcombine.low %v5266_v40, %v5274_v53  ;;  %v5292_v58 = vcombine.high %v5266_v40, %v5274_v53 }
0x3f9a   :  { %v5299_v60 = vrot.slane %v5291_v57, %v7143_v31  ;;  %v5306_v62 = vrot.slane %v5292_v58, %v7143_v31 }
0x3f9c   :  { %v5308_v15 = vcombine.high %v5283_v59, %v5299_v60  ;;  %v5307_v13 = vcombine.low %v5283_v59, %v5299_v60  ;;  %v5309_v36 = vcombine.low %v5290_v21, %v5306_v62  ;;  %v5310_v30 = vcombine.high %v5290_v21, %v5306_v62 }
0x3f9e   :  { %v5314_v27 = vsel %vm401_vm3, %v5308_v15, -inf  ;;  %v5311_v28 = vsel %vm401_vm3, %v5307_v13, -inf  ;;  %v5317_v26 = vsel %vm401_vm3, %v5309_v36, -inf  ;;  %v5320_v5 = vsel %vm401_vm3, %v5310_v30, -inf }
0x3f9f   :  { %5315 = vmax.xlane.f32.xlu0 %v5314_v27  ;;  %5312 = vmax.xlane.f32.xlu1 %v5311_v28 }
0x3fa3   :  { %5318 = vmax.xlane.f32.xlu0 %v5317_v26  ;;  %5321 = vmax.xlane.f32.xlu1 %v5320_v5 }
0x4028   :  { %v5316_v7 = vpop.xlane.xlu0 %5315  ;;  %v5313_v6 = vpop.xlane.xlu1 %5312 }
0x4029   :  { %v5334_v14 = vrot.slane %v5316_v7, %v7160_v49  ;;  %v5330_v54 = vrot.slane %v5313_v6, %v7160_v49 }
0x402b   :  { %v5343_v61 = vsel %vm436_vm4, %v5334_v14, %v5330_v54 }
0x402c   :  { %v5319_v22 = vpop.xlane.xlu0 %5318  ;;  %v5322_v43 = vpop.xlane.xlu1 %5321 }
0x402d   :  { %v5338_v2 = vrot.slane %v5319_v22, %v7160_v49  ;;  %v5342_v44 = vrot.slane %v5322_v43, %v7160_v49 }
0x402f   :  { %v5344_v24 = vsel %vm438_vm5, %v5338_v2, %v5343_v61 }
0x4030   :  { %v5345_v45 = vsel %vm440_vm6, %v5342_v44, %v5344_v24 }
0x4031   :  { %6713 = vmatmul.mubr.msk.f32.vlgmr.msra.gmra.mxu0 %vm442_vm7, %v5345_v45 }
0x4032   :  { %6716 = vmatpush3.msra.mxu0 %v8340_v1  ;;  %6723 = vmatprep.mubr.msk.f32.mxu0 %vm6996_vm0, %v6995_v0 }
0x4033   :  { %6717 = vmatprep.subr.mxu0 %v6995_v0 }
0x4034   :  { %6718 = vmatpush3.msra.mxu0 %v8349_v8 }
0x4035   :  { %6719 = vmatprep.subr.mxu0 %v6995_v0 }
0x4036   :  { %6720 = vmatpush3.msra.mxu0 %v8356_v11 }
0x4037   :  { %6721 = vmatprep.subr.mxu0 %v6995_v0 }
0x4038   :  { %6722 = vmatpush3.msra.mxu0 %v8363_v46 }
0x4039   :  { %6737 = vmatprep.subr.mxu0 %v6995_v0 }
0x40f1   :  { %v5414_v48 = vpop.f32.mrf.mxu0 }
0x40f2   :  { %v5415_v3 = vadd.f32 %v8370_v50, %v5414_v48 }
0x40f3   :  { %v6714_v51 = vpop.f32.mrf.mxu0 }
0x40f4   :  { %6913 = vtanh.f32 %v5415_v3 }
0x4101   :  { %v6914_v16 = vpop.eup %6913 }
0x4102   :  { %6724 = vmatmul.mubr.msk.f32.vlgmr.msra.gmra.mxu0 %vm68_vm1, %v6914_v16  ;;  %6735 = vmatmul.mubr.msk.f32.vlgmr.msra.gmra.mxu1 %vm68_vm1, %v6914_v16  ;;  %v5588_v42 = vrot.slane %v6914_v16, 4 }
0x4103   :  { %6738 = vmatpush3.msra.mxu0 %v6986_v25  ;;  %6739 = vmatprep.mubr.msk.f32.mxu0 %vm6996_vm0, %v6995_v0 }
0x4104   :  { %5874 = vmatpush1.msra.mxu1 %v6987_v4  ;;  %5913 = vmatprep.mubr.f32.mxu1 %v6995_v0 }
0x4105   :  { %5875 = vmatprep.subr.mxu1 %v6988_v23  ;;  %6742 = vmatprep.subr.mxu0 %v6995_v0 }
0x4106   :  { %5876 = vmatpush1.msra.mxu1 %v6989_v39 }
0x4107   :  { %5877 = vmatprep.subr.mxu1 %v6990_v9 }
0x4108   :  { %5878 = vmatpush1.msra.mxu1 %v6991_v10 }
0x4109   :  { %5879 = vmatprep.subr.mxu1 %v6992_v34 }
0x410a   :  { %5880 = vmatpush1.msra.mxu1 %v6993_v29 }
0x41c2   :  { %v8403_v18 = vpop.f32.mrf.mxu0  ;;  %v5558_v35 = vpop.f32.mrf.mxu1 }
0x41c3   :  { %v5563_v63 = vrot.slane %v5558_v35, 4 }
0x41c4   :  { %v6725_v56 = vpop.f32.mrf.mxu0  ;;  %v6736_v37 = vpop.f32.mrf.mxu1 }
0x41c5   :  { %5572 = vrot.lane.b32.xlu0 %v5563_v63, %s6997_s1  ;;  %v5565_v40 = vadd.f32 %v7239_v20, %v5563_v63 }
0x41c7   :  { %v6362_v53 = vmul.f32 -1.442695, %v5565_v40 }
0x41c9   :  { %5589 = vrot.lane.b32.xlu0 %v5588_v42, %s7008_s14  ;;  %6915 = vpow2.f32 %v6362_v53 }
0x41d6   :  { %v6916_v55 = vpop.eup %6915 }
0x41d7   :  { %v5569_v57 = vadd.f32 1.0, %v6916_v55 }
0x41d9   :  { %6917 = vrcp.f32 %v5569_v57 }
0x41e6   :  { %v6918_v58 = vpop.eup %6917 }
0x41e7   :  { %v5582_v27 = vsub.f32 1.0, %v6918_v58 }
0x4237   :  { %v5573_v59 = vpop.permute.xlu0 %5572 }
0x4238   :  { %v5575_v60 = vmul.f32 %v6918_v58, %v5573_v59 }
0x423a   :  { %5577 = vrot.lane.b32.xlu1 %v5575_v60, %s6997_s1 }
0x423b   :  { %v5590_v21 = vpop.permute.xlu0 %5589 }
0x423c   :  { %v5592_v36 = vmul.f32 %v6918_v58, %v5590_v21 }
0x42ac   :  { %v5578_v62 = vpop.permute.xlu1 %5577 }
0x42ad   :  { %v5580_v15 = vadd.f32 %v7239_v20, %v5578_v62 }
0x42af   :  { %6919 = vtanh.f32 %v5580_v15 }
0x42bc   :  { %v6920_v13 = vpop.eup %6919 }
0x42bd   :  { %5584 = vrot.lane.b32.xlu1 %v6920_v13, %s6998_s21 }
0x432f   :  { %v5585_v28 = vpop.permute.xlu1 %5584 }
0x4330   :  { %v5587_v30 = vmul.f32 %v5585_v28, %v5582_v27 }
0x4332   :  { %v5593_v26 = vadd.f32 %v5592_v36, %v5587_v30 }
0x4334   :  { %v5594_v5 = vadd.f32 %v5593_v26, %v8233_v17 }
0x4336   :  { %v5596_v7 = vrot.slane %v5594_v5, 4 }
0x4338   :  { %v5598_v6 = vsel %vm270_vm2, %v5596_v7, 0.0 }
0x4339   :  { %v5599_v14 = vrot.slane %v5598_v6, 4 }
0x433b   :  { %v5600_v54 = vadd.f32 %v5599_v14, %v5598_v6 }
0x433d   :  { %v5601_v22 = vrot.slane %v5600_v54, 2 }
0x433f   :  { %v5602_v43 = vadd.f32 %v5601_v22, %v5600_v54 }
0x4341   :  { %v5603_v20 = vrot.slane %v5602_v43, 1 }
0x4343   :  { %v5604_v2 = vadd.f32 %v5603_v20, %v5602_v43 }
0x4345   :  { %v5605_v44 = vmul.f32 0.25, %v5604_v2 }
0x4347   :  { %v5606_v61 = vsub.f32 %v5594_v5, %v5605_v44 }
0x4349   :  { %v5607_v24 = vmul.f32 %v5606_v61, %v5606_v61 }
0x434b   :  { %v5609_v45 = vrot.slane %v5607_v24, 4 }
0x434d   :  { %v5611_v48 = vsel %vm270_vm2, %v5609_v45, 0.0 }
0x434e   :  { %v5612_v3 = vrot.slane %v5611_v48, 4 }
0x4350   :  { %v5613_v51 = vadd.f32 %v5612_v3, %v5611_v48 }
0x4352   :  { %v5614_v16 = vrot.slane %v5613_v51, 2 }
0x4354   :  { %v5615_v25 = vadd.f32 %v5614_v16, %v5613_v51 }
0x4356   :  { %v5616_v17 = vrot.slane %v5615_v25, 1 }
0x4358   :  { %v5617_v4 = vadd.f32 %v5616_v17, %v5615_v25 }
0x435a   :  { %v5618_v23 = vmul.f32 0.25, %v5617_v4 }
0x435c   :  { %v5619_v39 = vadd.f32 1e-05, %v5618_v23 }
0x435e   :  { %6921 = vrsqrt.f32 %v5619_v39 }
0x436b   :  { %v6922_v9 = vpop.eup %6921 }
0x436c   :  { %v5621_v10 = vmul.f32 %v6922_v9, %v5606_v61 }
0x436e   :  { %v5622_v34 = vmax.f32 %v5621_v10, 0.0 }
0x4370   :  { %5626 = vrot.lane.b32.xlu0 %v5622_v34, %s6999_s22  ;;  %5624 = vrot.lane.b32.xlu1 %v5622_v34, %s7000_s23  ;;  %v5638_v29 = vrot.slane %v5622_v34, 4 }
0x4374   :  { %5630 = vrot.lane.b32.xlu0 %v5622_v34, %s7001_s24  ;;  %5628 = vrot.lane.b32.xlu1 %v5622_v34, %s7002_s25 }
0x4378   :  { %5634 = vrot.lane.b32.xlu0 %v5622_v34, %s7003_s26  ;;  %5632 = vrot.lane.b32.xlu1 %v5622_v34, %s7004_s27 }
0x437c   :  { %5636 = vrot.lane.b32.xlu1 %v5622_v34, %s7005_s28  ;;  %5646 = vrot.lane.b32.xlu0 %v5638_v29, %s6998_s21 }
0x43e2   :  { %v5627_v35 = vpop.permute.xlu0 %5626  ;;  %v5625_v63 = vpop.permute.xlu1 %5624 }
0x43e3   :  { %v5640_v56 = vrot.slane %v5627_v35, 4  ;;  %v5639_v37 = vrot.slane %v5625_v63, 4 }
0x43e5   :  { %5648 = vrot.lane.b32.xlu1 %v5639_v37, %s6998_s21  ;;  %5650 = vrot.lane.b32.xlu0 %v5640_v56, %s6998_s21 }
0x43e6   :  { %v5631_v42 = vpop.permute.xlu0 %5630  ;;  %v5629_v40 = vpop.permute.xlu1 %5628 }
0x43e7   :  { %v5642_v53 = vrot.slane %v5631_v42, 4  ;;  %v5641_v55 = vrot.slane %v5629_v40, 4 }
0x43e9   :  { %5652 = vrot.lane.b32.xlu1 %v5641_v55, %s6998_s21  ;;  %5654 = vrot.lane.b32.xlu0 %v5642_v53, %s6998_s21 }
0x43ea   :  { %v5635_v57 = vpop.permute.xlu0 %5634  ;;  %v5633_v58 = vpop.permute.xlu1 %5632 }
0x43eb   :  { %v5644_v59 = vrot.slane %v5635_v57, 4  ;;  %v5643_v60 = vrot.slane %v5633_v58, 4 }
0x43ed   :  { %5656 = vrot.lane.b32.xlu1 %v5643_v60, %s6998_s21  ;;  %5658 = vrot.lane.b32.xlu0 %v5644_v59, %s6998_s21  ;;  %v6994_v59 = vld [vmem:[%s8527_s4 + $0x8] sm:$0xff]  ;;  %s7009_s4 = smov 48  }
0x43ee   :  { %v5637_v62 = vpop.permute.xlu1 %5636  ;;  %v5647_v13 = vpop.permute.xlu0 %5646 }
0x43ef   :  { %v5645_v15 = vrot.slane %v5637_v62, 4 }
0x43f1   :  { %5660 = vrot.lane.b32.xlu1 %v5645_v15, %s6998_s21 }
0x4457   :  { %v5649_v21 = vpop.permute.xlu1 %5648  ;;  %v5651_v27 = vpop.permute.xlu0 %5650 }
0x4458   :  { %v5670_v7 = vcombine.low %v5647_v13, %v5651_v27 }
0x445a   :  { %v5677_v22 = vrot.slane %v5670_v7, %v7137_v19 }
0x445b   :  { %v5653_v28 = vpop.permute.xlu1 %5652  ;;  %v5655_v36 = vpop.permute.xlu0 %5654 }
0x445c   :  { %v5678_v30 = vcombine.low %v5649_v21, %v5653_v28 }
0x445e   :  { %v5685_v6 = vrot.slane %v5678_v30, %v7137_v19 }
0x445f   :  { %v5657_v26 = vpop.permute.xlu1 %5656  ;;  %v5659_v5 = vpop.permute.xlu0 %5658 }
0x4460   :  { %v5686_v14 = vcombine.low %v5655_v36, %v5659_v5  ;;  %v5702_v20 = vcombine.low %v5677_v22, %v5685_v6  ;;  %v5703_v61 = vcombine.high %v5677_v22, %v5685_v6 }
0x4462   :  { %v5693_v2 = vrot.slane %v5686_v14, %v7137_v19  ;;  %v5710_v48 = vrot.slane %v5702_v20, %v7143_v31  ;;  %v5717_v17 = vrot.slane %v5703_v61, %v7143_v31 }
0x4463   :  { %v5661_v54 = vpop.permute.xlu1 %5660 }
0x4464   :  { %v5694_v43 = vcombine.low %v5657_v26, %v5661_v54 }
0x4466   :  { %v5701_v44 = vrot.slane %v5694_v43, %v7137_v19 }
0x4468   :  { %v5718_v24 = vcombine.low %v5693_v2, %v5701_v44  ;;  %v5719_v45 = vcombine.high %v5693_v2, %v5701_v44 }
0x446a   :  { %v5726_v3 = vrot.slane %v5718_v24, %v7143_v31  ;;  %v5733_v51 = vrot.slane %v5719_v45, %v7143_v31 }
0x446c   :  { %v5735_v16 = vcombine.high %v5710_v48, %v5726_v3  ;;  %v5734_v25 = vcombine.low %v5710_v48, %v5726_v3  ;;  %v5736_v39 = vcombine.low %v5717_v17, %v5733_v51  ;;  %v5737_v10 = vcombine.high %v5717_v17, %v5733_v51 }
0x446e   :  { %v5741_v4 = vsel %vm401_vm3, %v5735_v16, -inf  ;;  %v5738_v23 = vsel %vm401_vm3, %v5734_v25, -inf  ;;  %v5744_v9 = vsel %vm401_vm3, %v5736_v39, -inf  ;;  %v5747_v34 = vsel %vm401_vm3, %v5737_v10, -inf }
0x446f   :  { %5742 = vmax.xlane.f32.xlu1 %v5741_v4  ;;  %5739 = vmax.xlane.f32.xlu0 %v5738_v23 }
0x4473   :  { %5745 = vmax.xlane.f32.xlu0 %v5744_v9 }
0x4477   :  { %5748 = vmax.xlane.f32.xlu0 %v5747_v34 }
0x44f8   :  { %v5740_v29 = vpop.xlane.xlu0 %5739  ;;  %v5743_v35 = vpop.xlane.xlu1 %5742 }
0x44f9   :  { %v5761_v56 = vrot.slane %v5743_v35, %v7160_v49  ;;  %v5757_v37 = vrot.slane %v5740_v29, %v7160_v49 }
0x44fb   :  { %v5770_v53 = vsel %vm436_vm4, %v5761_v56, %v5757_v37 }
0x44fc   :  { %v5746_v63 = vpop.xlane.xlu0 %5745 }
0x44fd   :  { %v5765_v42 = vrot.slane %v5746_v63, %v7160_v49 }
0x44ff   :  { %v5771_v57 = vsel %vm438_vm5, %v5765_v42, %v5770_v53 }
0x4500   :  { %v5749_v40 = vpop.xlane.xlu0 %5748 }
0x4501   :  { %v5769_v55 = vrot.slane %v5749_v40, %v7160_v49 }
0x4503   :  { %v5772_v58 = vsel %vm440_vm6, %v5769_v55, %v5771_v57 }
0x4504   :  { %6740 = vmatmul.mubr.msk.f32.vlgmr.msra.gmra.mxu0 %vm442_vm7, %v5772_v58 }
0x4505   :  { %6743 = vmatpush3.msra.mxu0 %v6994_v59  ;;  %6744 = vmatprep.mubr.msk.f32.mxu0 %vm6996_vm0, %v6995_v0 }
0x4506   :  { %6747 = vmatprep.subr.mxu0 %v6995_v0 }
0x45c4   :  { %v5841_v60 = vpop.f32.mrf.mxu0 }
0x45c5   :  { %v5842_v62 = vadd.f32 %v8280_v52, %v5841_v60 }
0x45c6   :  { %v6741_v15 = vpop.f32.mrf.mxu0 }
0x45c7   :  { %6923 = vtanh.f32 %v5842_v62 }
0x45d4   :  { %v6924_v13 = vpop.eup %6923 }
0x45d5   :  { %6364 = vmatmul.mubr.msk.f32.vlgmr.msra.gmra.mxu1 %vm68_vm1, %v6924_v13 }
0x4695   :  { %v5915_v21 = vpop.f32.mrf.mxu1 }
0x4696   :  { %v6365_v27 = vmul.f32 -1.442695, %v5915_v21 }
0x4697   :  { %v5917_v26 = vpop.f32.mrf.mxu1 }
0x4698   :  { %6925 = vpow2.f32 %v6365_v27 }
0x46a5   :  { %v6926_v28 = vpop.eup %6925 }
0x46a6   :  { %v5923_v36 = vadd.f32 1.0, %v6926_v28 }
0x46a8   :  { %6927 = vrcp.f32 %v5923_v36 }
0x46b5   :  { %v6928_v30 = vpop.eup %6927 }
0x46b6   :  { %v5926_v5 = vmul.f32 %v6928_v30, %v5917_v26  ;;  %v5933_v54 = vsub.f32 1.0, %v6928_v30 }
0x46b8   :  { %5928 = vrot.lane.b32.xlu1 %v5926_v5, %s6997_s1 }
0x46bc   :  { %5939 = vrot.lane.b32.xlu1 %v6924_v13, %s7008_s14 }
0x46c0   :  { %5945 = vrot.lane.b32.xlu1 %v5915_v21, %s6997_s1 }
0x472a   :  { %v5929_v52 = vpop.permute.xlu1 %5928 }
0x472b   :  { %v5931_v7 = vadd.f32 %v5929_v52, %v5915_v21 }
0x472d   :  { %6929 = vtanh.f32 %v5931_v7 }
0x472e   :  { %v5940_v14 = vpop.permute.xlu1 %5939 }
0x472f   :  { %v5942_v43 = vmul.f32 %v6928_v30, %v5940_v14 }
0x4732   :  { %v5946_v44 = vpop.permute.xlu1 %5945 }
0x473a   :  { %v6930_v6 = vpop.eup %6929 }
0x473b   :  { %5935 = vrot.lane.b32.xlu0 %v6930_v6, %s6998_s21 }
0x47ad   :  { %v5936_v22 = vpop.permute.xlu0 %5935 }
0x47ae   :  { %v5938_v20 = vmul.f32 %v5936_v22, %v5933_v54 }
0x47b0   :  { %v5943_v2 = vadd.f32 %v5942_v43, %v5938_v20 }
0x47b2   :  { %v5948_v61 = vadd.f32 %v5946_v44, %v5943_v2 }
0x47b4   :  { %v5949_v24 = vsel %vm270_vm2, %v5948_v61, 0.0 }
0x47b5   :  { %v5950_v45 = vrot.slane %v5949_v24, 4 }
0x47b7   :  { %v5951_v48 = vadd.f32 %v5950_v45, %v5949_v24 }
0x47b9   :  { %v5952_v3 = vrot.slane %v5951_v48, 2 }
0x47bb   :  { %v5953_v51 = vadd.f32 %v5952_v3, %v5951_v48 }
0x47bd   :  { %v5954_v16 = vrot.slane %v5953_v51, 1 }
0x47bf   :  { %v5955_v25 = vadd.f32 %v5954_v16, %v5953_v51 }
0x47c1   :  { %v5956_v17 = vmul.f32 0.25, %v5955_v25 }
0x47c3   :  { %v5957_v4 = vsub.f32 %v5948_v61, %v5956_v17 }
0x47c5   :  { %v5958_v23 = vmul.f32 %v5957_v4, %v5957_v4 }
0x47c7   :  { %v5959_v39 = vsel %vm270_vm2, %v5958_v23, 0.0 }
0x47c8   :  { %v5960_v9 = vrot.slane %v5959_v39, 4 }
0x47ca   :  { %v5961_v10 = vadd.f32 %v5960_v9, %v5959_v39 }
0x47cc   :  { %v5962_v34 = vrot.slane %v5961_v10, 2 }
0x47ce   :  { %v5963_v29 = vadd.f32 %v5962_v34, %v5961_v10 }
0x47d0   :  { %v5964_v35 = vrot.slane %v5963_v29, 1 }
0x47d2   :  { %v5965_v63 = vadd.f32 %v5964_v35, %v5963_v29 }
0x47d4   :  { %v5966_v56 = vmul.f32 0.25, %v5965_v63 }
0x47d6   :  { %v5967_v37 = vadd.f32 1e-05, %v5966_v56 }
0x47d8   :  { %6931 = vrsqrt.f32 %v5967_v37 }
0x47e5   :  { %v6932_v42 = vpop.eup %6931 }
0x47e6   :  { %v5969_v40 = vmul.f32 %v6932_v42, %v5957_v4 }
0x47e8   :  { %v5970_v53 = vmax.f32 %v5969_v40, 0.0 }
0x47ea   :  { %5974 = vrot.lane.b32.xlu1 %v5970_v53, %s6999_s22  ;;  %5972 = vrot.lane.b32.xlu0 %v5970_v53, %s7000_s23  ;;  %s7010_s22 = smov 16   ;;  %s7011_s23 = smov 80  }
0x47ee   :  { %5978 = vrot.lane.b32.xlu1 %v5970_v53, %s7001_s24  ;;  %5976 = vrot.lane.b32.xlu0 %v5970_v53, %s7002_s25 }
0x47f2   :  { %5982 = vrot.lane.b32.xlu1 %v5970_v53, %s7003_s26  ;;  %5980 = vrot.lane.b32.xlu0 %v5970_v53, %s7004_s27 }
0x47f6   :  { %5986 = vrot.lane.b32.xlu1 %v5970_v53, %s6998_s21  ;;  %5984 = vrot.lane.b32.xlu0 %v5970_v53, %s7005_s28 }
0x485c   :  { %v5975_v55 = vpop.permute.xlu1 %5974  ;;  %v5973_v57 = vpop.permute.xlu0 %5972 }
0x485d   :  { %5990 = vrot.lane.b32.xlu1 %v5975_v55, %s6998_s21  ;;  %5988 = vrot.lane.b32.xlu0 %v5973_v57, %s6998_s21 }
0x4860   :  { %v5979_v58 = vpop.permute.xlu1 %5978  ;;  %v5977_v59 = vpop.permute.xlu0 %5976 }
0x4861   :  { %5994 = vrot.lane.b32.xlu1 %v5979_v58, %s6998_s21  ;;  %5992 = vrot.lane.b32.xlu0 %v5977_v59, %s6998_s21 }
0x4864   :  { %v5983_v60 = vpop.permute.xlu1 %5982  ;;  %v5981_v62 = vpop.permute.xlu0 %5980 }
0x4865   :  { %5998 = vrot.lane.b32.xlu1 %v5983_v60, %s6998_s21  ;;  %5996 = vrot.lane.b32.xlu0 %v5981_v62, %s6998_s21 }
0x4868   :  { %v5985_v15 = vpop.permute.xlu0 %5984  ;;  %v5987_v13 = vpop.permute.xlu1 %5986 }
0x4869   :  { %6000 = vrot.lane.b32.xlu0 %v5985_v15, %s6998_s21 }
0x48cf   :  { %v5991_v21 = vpop.permute.xlu1 %5990  ;;  %v5989_v27 = vpop.permute.xlu0 %5988 }
0x48d0   :  { %v6010_v52 = vcombine.low %v5987_v13, %v5991_v21 }
0x48d2   :  { %v6017_v54 = vrot.slane %v6010_v52, %v7137_v19 }
0x48d3   :  { %v5995_v28 = vpop.permute.xlu1 %5994  ;;  %v5993_v36 = vpop.permute.xlu0 %5992 }
0x48d4   :  { %v6018_v30 = vcombine.low %v5989_v27, %v5993_v36 }
0x48d6   :  { %v6025_v7 = vrot.slane %v6018_v30, %v7137_v19 }
0x48d7   :  { %v5999_v26 = vpop.permute.xlu1 %5998  ;;  %v5997_v5 = vpop.permute.xlu0 %5996 }
0x48d8   :  { %v6026_v6 = vcombine.low %v5995_v28, %v5999_v26  ;;  %v6042_v43 = vcombine.low %v6017_v54, %v6025_v7  ;;  %v6043_v44 = vcombine.high %v6017_v54, %v6025_v7 }
0x48da   :  { %v6033_v20 = vrot.slane %v6026_v6, %v7137_v19  ;;  %v6050_v45 = vrot.slane %v6042_v43, %v7143_v31  ;;  %v6057_v25 = vrot.slane %v6043_v44, %v7143_v31 }
0x48db   :  { %v6001_v14 = vpop.permute.xlu0 %6000 }
0x48dc   :  { %v6034_v22 = vcombine.low %v5997_v5, %v6001_v14 }
0x48de   :  { %v6041_v2 = vrot.slane %v6034_v22, %v7137_v19 }
0x48e0   :  { %v6058_v61 = vcombine.low %v6033_v20, %v6041_v2  ;;  %v6059_v24 = vcombine.high %v6033_v20, %v6041_v2 }
0x48e2   :  { %v6066_v48 = vrot.slane %v6058_v61, %v7143_v31  ;;  %v6073_v3 = vrot.slane %v6059_v24, %v7143_v31 }
0x48e4   :  { %v6075_v51 = vcombine.high %v6050_v45, %v6066_v48  ;;  %v6074_v16 = vcombine.low %v6050_v45, %v6066_v48  ;;  %v6076_v23 = vcombine.low %v6057_v25, %v6073_v3  ;;  %v6077_v39 = vcombine.high %v6057_v25, %v6073_v3 }
0x48e6   :  { %v6081_v17 = vsel %vm401_vm3, %v6075_v51, -inf  ;;  %v6078_v4 = vsel %vm401_vm3, %v6074_v16, -inf  ;;  %v6084_v19 = vsel %vm401_vm3, %v6076_v23, -inf  ;;  %v6087_v9 = vsel %vm401_vm3, %v6077_v39, -inf }
0x48e7   :  { %6082 = vmax.xlane.f32.xlu0 %v6081_v17  ;;  %6079 = vmax.xlane.f32.xlu1 %v6078_v4 }
0x48eb   :  { %6085 = vmax.xlane.f32.xlu0 %v6084_v19  ;;  %6088 = vmax.xlane.f32.xlu1 %v6087_v9 }
0x48fc   :  { %6264 = vrot.lane.b32.xlu1 %v7707_v12, %s7008_s14 }
0x4900   :  { %6268 = vrot.lane.b32.xlu1 %v7861_v32, %s7009_s4 }
0x4901   :  { %6260 = vrot.lane.b32.xlu0 %v7499_v47, %s7010_s22 }
0x4904   :  { %6276 = vrot.lane.b32.xlu1 %v8223_v33, %s7011_s23 }
0x4905   :  { %6272 = vrot.lane.b32.xlu0 %v8069_v41, %s6997_s1 }
0x4909   :  { %6280 = vrot.lane.b32.xlu0 %v8403_v18, %s6998_s21 }
0x4970   :  { %v6083_v31 = vpop.xlane.xlu0 %6082  ;;  %v6080_v10 = vpop.xlane.xlu1 %6079 }
0x4971   :  { %v6101_v34 = vrot.slane %v6083_v31, %v7160_v49  ;;  %v6097_v12 = vrot.slane %v6080_v10, %v7160_v49 }
0x4973   :  { %v6110_v33 = vsel %vm436_vm4, %v6101_v34, %v6097_v12 }
0x4974   :  { %v6086_v29 = vpop.xlane.xlu0 %6085  ;;  %v6089_v32 = vpop.xlane.xlu1 %6088 }
0x4975   :  { %v6105_v35 = vrot.slane %v6086_v29, %v7160_v49  ;;  %v6109_v47 = vrot.slane %v6089_v32, %v7160_v49 }
0x4977   :  { %v6111_v63 = vsel %vm438_vm5, %v6105_v35, %v6110_v33 }
0x4978   :  { %v6112_v41 = vsel %vm440_vm6, %v6109_v47, %v6111_v63  ;;  %v6265_v42 = vpop.permute.xlu1 %6264  ;;  %v6261_v40 = vpop.permute.xlu0 %6260 }
0x4979   :  { %6745 = vmatmul.mubr.msk.f32.vlgmr.msra.gmra.mxu0 %vm442_vm7, %v6112_v41 }
0x497a   :  { %6748 = vmatpush3.msra.mxu0 %v8340_v1  ;;  %6755 = vmatprep.mubr.msk.f32.mxu0 %vm6996_vm0, %v6995_v0 }
0x497b   :  { %6749 = vmatprep.subr.mxu0 %v6995_v0 }
0x497c   :  { %6750 = vmatpush3.msra.mxu0 %v8349_v8 }
0x497d   :  { %6751 = vmatprep.subr.mxu0 %v6995_v0 }
0x497e   :  { %6752 = vmatpush3.msra.mxu0 %v8356_v11  ;;  %v6269_v11 = vpop.permute.xlu1 %6268 }
0x497f   :  { %6753 = vmatprep.subr.mxu0 %v6995_v0  ;;  %v6288_v0 = vsel %vm6287_vm8, %v7345_v38, %v6261_v40 }
0x4980   :  { %6754 = vmatpush3.msra.mxu0 %v8363_v46  ;;  %v6273_v46 = vpop.permute.xlu0 %6272  ;;  %v6289_v53 = vsel %vm68_vm1, %v6288_v0, %v6265_v42 }
0x4982   :  { %v6277_v55 = vpop.permute.xlu1 %6276 }
0x4984   :  { %v6281_v58 = vpop.permute.xlu0 %6280 }
0x4a39   :  { %v6181_v49 = vpop.f32.mrf.mxu0 }
0x4a3a   :  { %v6182_v18 = vadd.f32 %v8370_v50, %v6181_v49  ;;  %v6291_v50 = vsel %vm6290_vm9, %v6289_v53, %v6269_v11 }
0x4a3b   :  { %v6746_v56 = vpop.f32.mrf.mxu0  ;;  %v6293_v57 = vsel %vm6292_vm10, %v6291_v50, %v6273_v46 }
0x4a3c   :  { %6933 = vtanh.f32 %v6182_v18  ;;  %v6295_v59 = vsel %vm6294_vm11, %v6293_v57, %v6277_v55 }
0x4a3d   :  { %v6297_v60 = vsel %vm6296_vm12, %v6295_v59, %v6281_v58 }
0x4a49   :  { %v6934_v1 = vpop.eup %6933 }
0x4a4a   :  { %6756 = vmatmul.mubr.msk.f32.vlgmr.msra.gmra.mxu0 %vm68_vm1, %v6934_v1 }
0x4b0a   :  { %v6255_v37 = vpop.f32.mrf.mxu0 }
0x4b0b   :  { %6284 = vrot.lane.b32.xlu1 %v6255_v37, %s7001_s24 }
0x4b0c   :  { %v6757_v8 = vpop.f32.mrf.mxu0 }
0x4b7d   :  { %v6285_v62 = vpop.permute.xlu1 %6284 }
0x4b7e   :  { %v6299_v15 = vsel %vm6298_vm13, %v6297_v60, %v6285_v62 }
0x4b7f   :  { %6300 = vst [vmem:[%s8531_s7] sm:$0xf] %v6299_v15 }

</bundles_post_ra>
